<compile_context>
chip_gen: v6e
topology: v6e:2x2x1
jax: 0.10.0
libtpu: 0.0.40
codegen_flags: <defaults>
</compile_context>

<pallas_src>
import jax
import jax.numpy as jnp
from jax import lax
from jax.experimental import pallas as pl
from jax.experimental.pallas import tpu as pltpu

# ---------------- config (small, consistent with a T5 encoder) ----------------
VOCAB = 256
D_MODEL = 64
N_HEADS = 4
D_KV = 16              # N_HEADS * D_KV == D_MODEL (T5-style inner dim)
D_FF = 128
N_LAYERS = 2
REL_BUCKETS = 32
REL_MAX_DIST = 128
EPS = 1e-6

BATCH = 2
SEQ = 16

H_D = N_HEADS * D_KV   # 64

# pl.reciprocal(approx=True) uses the EUP and is nearly free, at a few-ULP deviation
# from exact softmax vs the ONNX/PyTorch reference. Set False for bit-faithful divide.
USE_APPROX_RECIPROCAL = True


# ------------------------------ in-kernel helpers ------------------------------
def _rms(x, w):
    # T5 RMSNorm: no mean subtraction; stats in f32
    var = jnp.mean(x * x, axis=-1, keepdims=True)
    return x * lax.rsqrt(var + EPS) * w


def _bf(x):
    return x.astype(jnp.bfloat16)


def _recip(x):
    if USE_APPROX_RECIPROCAL:
        return pl.reciprocal(x, approx=True)
    return 1.0 / x


# --------------------- fully fused encoder-stack kernel ------------------------
def _t5_encoder_kernel(x_ref, bias_ref, mask_ref,
                       ln1_ref, wqkv_ref, wo_ref, ln2_ref, wi_ref, woff_ref,
                       final_ln_ref, o_ref):
    # per-batch block; x_ref/o_ref: (S, D); bias_ref: (H, S, S); mask_ref: (1, S)
    x = x_ref[...]                                           # (S, D) f32
    S, D = x.shape

    # key-padding mask -> additive bias, combined with the shared rel-pos bias ONCE
    # (hoisted out of the head dim and out of the layer loop).
    mask_bias = (1.0 - mask_ref[...]) * (-1e9)               # (1, S) f32
    full_bias = bias_ref[...] + mask_bias[None, :, :]        # (H, S, S) f32

    for l in range(N_LAYERS):                                # static in-kernel layer loop
        # ----- self-attention block (pre-norm, residual kept in VMEM) -----
        n = _rms(x, ln1_ref[l])                              # (S, D)
        # fused QKV projection: one lane-dense (S, 3*H*DK) MXU matmul, bf16 in / f32 acc
        qkv = jnp.dot(_bf(n), wqkv_ref[l],
                      preferred_element_type=jnp.float32)    # (S, 3*H_D) f32
        # slice only at 64-lane (H_D) boundaries, then split heads
        q = qkv[:, :H_D].reshape(S, N_HEADS, D_KV)
        k = qkv[:, H_D:2 * H_D].reshape(S, N_HEADS, D_KV)
        v = qkv[:, 2 * H_D:].reshape(S, N_HEADS, D_KV)
        # head-batched QK^T (NOTE: T5 does NOT scale q by 1/sqrt(d_k))
        s = jnp.einsum('qhd,khd->hqk', _bf(q), _bf(k),
                       preferred_element_type=jnp.float32)   # (H, S, S) f32
        s = s + full_bias
        s = s - jnp.max(s, axis=-1, keepdims=True)
        p = jnp.exp(s)
        p = p * _recip(jnp.sum(p, axis=-1, keepdims=True))   # EUP reciprocal
        # head-batched PV; heads land concatenated along the lane dim
        ctx = jnp.einsum('hqk,khd->qhd', _bf(p), _bf(v),
                         preferred_element_type=jnp.float32) # (S, H, DK) f32
        # ONE output projection for all heads
        attn = jnp.dot(_bf(ctx.reshape(S, H_D)), wo_ref[l],
                       preferred_element_type=jnp.float32)   # (S, D) f32
        x = x + attn                                         # residual fused in VMEM

        # ----- feed-forward block (pre-norm, residual fused) -----
        n2 = _rms(x, ln2_ref[l])
        hmid = jnp.dot(_bf(n2), wi_ref[l], preferred_element_type=jnp.float32)
        hmid = jnp.maximum(hmid, 0.0)                        # T5 v1.0 uses ReLU
        x = x + jnp.dot(_bf(hmid), woff_ref[l], preferred_element_type=jnp.float32)

    # final RMSNorm fused into the same kernel (no extra pallas_call / HBM round-trip)
    o_ref[...] = _rms(x, final_ln_ref[...])


def t5_encoder_stack(p, x, pos_bias, mask):
    B, S, D = x.shape
    return pl.pallas_call(
        _t5_encoder_kernel,
        out_shape=jax.ShapeDtypeStruct((B, S, D), jnp.float32),
        grid=(B,),
        in_specs=[
            pl.BlockSpec((None, S, D), lambda b: (b, 0, 0)),            # x (per batch)
            pl.BlockSpec((N_HEADS, S, S), lambda b: (0, 0, 0)),         # rel-pos bias (shared)
            pl.BlockSpec((None, 1, S), lambda b: (b, 0, 0)),            # key mask (per batch)
            pl.BlockSpec((N_LAYERS, 1, D), lambda b: (0, 0, 0)),        # ln1 (stacked)
            pl.BlockSpec((N_LAYERS, D, 3 * H_D), lambda b: (0, 0, 0)),  # fused Wqkv (bf16)
            pl.BlockSpec((N_LAYERS, H_D, D), lambda b: (0, 0, 0)),      # Wo (bf16)
            pl.BlockSpec((N_LAYERS, 1, D), lambda b: (0, 0, 0)),        # ln2 (stacked)
            pl.BlockSpec((N_LAYERS, D, D_FF), lambda b: (0, 0, 0)),     # Wi (bf16)
            pl.BlockSpec((N_LAYERS, D_FF, D), lambda b: (0, 0, 0)),     # Wo_ff (bf16)
            pl.BlockSpec((1, D), lambda b: (0, 0)),                     # final ln
        ],
        out_specs=pl.BlockSpec((None, S, D), lambda b: (b, 0, 0)),
        compiler_params=pltpu.CompilerParams(
            dimension_semantics=("parallel",)),              # v7x: one batch per TC
    )(x, pos_bias, mask, p["ln1s"], p["wqkvs"], p["wos"], p["ln2s"],
      p["wis"], p["wo_ffs"], p["final_ln"])


# ------------------------------ plain-JAX glue ---------------------------------
def _relative_position_bucket(rel_pos, num_buckets=REL_BUCKETS, max_distance=REL_MAX_DIST):
    # bidirectional (encoder) bucketing, matches HF T5
    num_buckets //= 2
    ret = (rel_pos > 0).astype(jnp.int32) * num_buckets
    n = jnp.abs(rel_pos)
    max_exact = num_buckets // 2
    is_small = n < max_exact
    val_if_large = max_exact + (
        jnp.log(jnp.maximum(n, 1).astype(jnp.float32) / max_exact)
        / jnp.log(max_distance / max_exact)
        * (num_buckets - max_exact)
    ).astype(jnp.int32)
    val_if_large = jnp.minimum(val_if_large, num_buckets - 1)
    return ret + jnp.where(is_small, n, val_if_large)


def compute_position_bias(rel_emb, seq_len):
    ctx = jnp.arange(seq_len)[:, None]
    mem = jnp.arange(seq_len)[None, :]
    buckets = _relative_position_bucket(mem - ctx)            # [S, S]
    bias = rel_emb[buckets]                                   # [S, S, H]  (gather — glue)
    return jnp.transpose(bias, (2, 0, 1))                     # [H, S, S]


@jax.jit
def t5_encoder_forward(params, input_ids, attention_mask):
    B, S = input_ids.shape
    x = params["emb"][input_ids]                              # embedding gather — glue
    mask = attention_mask.astype(jnp.float32).reshape(B, 1, S)
    # pos_bias precomputed once at init (depends only on rel_emb and S)
    last_hidden_state = t5_encoder_stack(params, x, params["pos_bias"], mask)
    # BaseModelOutput(last_hidden_state=...)
    return last_hidden_state


# ------------------------------ parameter init ---------------------------------
def init_params(key):
    def nrm(k, shape, scale=0.02):
        return scale * jax.random.normal(k, shape, dtype=jnp.float32)

    keys = jax.random.split(key, 2 + N_LAYERS)
    rel_emb = nrm(keys[1], (REL_BUCKETS, N_HEADS))
    params = {
        "emb": nrm(keys[0], (VOCAB, D_MODEL), 1.0),
        "rel_emb": rel_emb,
        # position bias cached at init (fixed S); removes bucket math / gather /
        # transpose XLA kernels from every forward call.
        "pos_bias": compute_position_bias(rel_emb, SEQ),      # [H, S, S]
        "final_ln": jnp.ones((1, D_MODEL), jnp.float32),
    }
    ln1s, ln2s, wqkvs, wos, wis, woffs = [], [], [], [], [], []
    for li in range(N_LAYERS):
        lk = jax.random.split(keys[2 + li], 6)
        wq = nrm(lk[0], (D_MODEL, H_D))
        wk = nrm(lk[1], (D_MODEL, H_D))
        wv = nrm(lk[2], (D_MODEL, H_D))
        ln1s.append(jnp.ones((1, D_MODEL), jnp.float32))
        ln2s.append(jnp.ones((1, D_MODEL), jnp.float32))
        # fused QKV weight, stored bf16 for the MXU (f32 accumulation in-kernel)
        wqkvs.append(jnp.concatenate([wq, wk, wv], axis=1).astype(jnp.bfloat16))
        wos.append(nrm(lk[3], (H_D, D_MODEL)).astype(jnp.bfloat16))
        wis.append(nrm(lk[4], (D_MODEL, D_FF)).astype(jnp.bfloat16))
        woffs.append(nrm(lk[5], (D_FF, D_MODEL)).astype(jnp.bfloat16))
    # per-layer weights stacked on a leading [L, ...] axis for the fused kernel
    params["ln1s"] = jnp.stack(ln1s)        # (L, 1, D) f32
    params["ln2s"] = jnp.stack(ln2s)        # (L, 1, D) f32
    params["wqkvs"] = jnp.stack(wqkvs)      # (L, D, 3*H_D) bf16
    params["wos"] = jnp.stack(wos)          # (L, H_D, D) bf16
    params["wis"] = jnp.stack(wis)          # (L, D, D_FF) bf16
    params["wo_ffs"] = jnp.stack(woffs)     # (L, D_FF, D) bf16
    return params


# TODO(synk): the original module loads an ONNX session from disk; weights here are synthetic.

if __name__ == "__main__":
    root = jax.random.PRNGKey(0)
    k_param, k_ids = jax.random.split(root)
    params = init_params(k_param)

    input_ids = jax.random.randint(k_ids, (BATCH, SEQ), 0, VOCAB, dtype=jnp.int32)
    attention_mask = jnp.ones((BATCH, SEQ), dtype=jnp.int32)
    attention_mask = attention_mask.at[1, SEQ - 4:].set(0)    # pad tail of second sequence

    out = t5_encoder_forward(params, input_ids, attention_mask)
    jax.block_until_ready(out)
    assert out.shape == (BATCH, SEQ, D_MODEL) and out.dtype == jnp.float32
    assert bool(jnp.all(jnp.isfinite(out)))
    print("KERNEL_OK")
</pallas_src>

<mosaic_0001>
module attributes {stable_mosaic.version = 11 : i64} {
  func.func @_t5_encoder_kernel(%arg0: i32, %arg1: memref<1x16x64xf32, #tpu.memory_space<vmem>>, %arg2: memref<4x16x16xf32, #tpu.memory_space<vmem>>, %arg3: memref<1x1x16xf32, #tpu.memory_space<vmem>>, %arg4: memref<2x1x64xf32, #tpu.memory_space<vmem>>, %arg5: memref<2x64x192xbf16, #tpu.memory_space<vmem>>, %arg6: memref<2x64x64xbf16, #tpu.memory_space<vmem>>, %arg7: memref<2x1x64xf32, #tpu.memory_space<vmem>>, %arg8: memref<2x64x128xbf16, #tpu.memory_space<vmem>>, %arg9: memref<2x128x64xbf16, #tpu.memory_space<vmem>>, %arg10: memref<1x64xf32, #tpu.memory_space<vmem>>, %arg11: memref<1x16x64xf32, #tpu.memory_space<vmem>>) attributes {dimension_semantics = [#tpu.dimension_semantics<parallel>], iteration_bounds = array<i64: 2>, scalar_prefetch = 0 : i64, scratch_operands = 0 : i64, tpu.core_type = #tpu.core_type<tc>, window_params = [{transform_indices = @transform_0, window_bounds = array<i64: 1, 16, 64>}, {pipeline_mode = #tpu.pipeline_mode<synchronous>, transform_indices = @transform_1, window_bounds = array<i64: 4, 16, 16>}, {transform_indices = @transform_2, window_bounds = array<i64: 1, 1, 16>}, {pipeline_mode = #tpu.pipeline_mode<synchronous>, transform_indices = @transform_3, window_bounds = array<i64: 2, 1, 64>}, {pipeline_mode = #tpu.pipeline_mode<synchronous>, transform_indices = @transform_4, window_bounds = array<i64: 2, 64, 192>}, {pipeline_mode = #tpu.pipeline_mode<synchronous>, transform_indices = @transform_5, window_bounds = array<i64: 2, 64, 64>}, {pipeline_mode = #tpu.pipeline_mode<synchronous>, transform_indices = @transform_6, window_bounds = array<i64: 2, 1, 64>}, {pipeline_mode = #tpu.pipeline_mode<synchronous>, transform_indices = @transform_7, window_bounds = array<i64: 2, 64, 128>}, {pipeline_mode = #tpu.pipeline_mode<synchronous>, transform_indices = @transform_8, window_bounds = array<i64: 2, 128, 64>}, {pipeline_mode = #tpu.pipeline_mode<synchronous>, transform_indices = @transform_9, window_bounds = array<i64: 1, 64>}, {transform_indices = @transform_10, window_bounds = array<i64: 1, 16, 64>}]} {
    %c0 = arith.constant 0 : index
    %c0_0 = arith.constant 0 : index
    %c0_1 = arith.constant 0 : index
    %0 = vector.load %arg1[%c0, %c0_0, %c0_1] : memref<1x16x64xf32, #tpu.memory_space<vmem>>, vector<1x16x64xf32>
    %1 = vector.shape_cast %0 : vector<1x16x64xf32> to vector<16x64xf32>
    %c0_2 = arith.constant 0 : index
    %c0_3 = arith.constant 0 : index
    %c0_4 = arith.constant 0 : index
    %2 = vector.load %arg3[%c0_2, %c0_3, %c0_4] : memref<1x1x16xf32, #tpu.memory_space<vmem>>, vector<1x1x16xf32>
    %3 = vector.shape_cast %2 : vector<1x1x16xf32> to vector<1x16xf32>
    %cst = arith.constant 1.000000e+00 : f32
    %4 = vector.broadcast %cst : f32 to vector<1x16xf32>
    %5 = arith.subf %4, %3 : vector<1x16xf32>
    %cst_5 = arith.constant -1.000000e+09 : f32
    %6 = vector.broadcast %cst_5 : f32 to vector<1x16xf32>
    %7 = arith.mulf %5, %6 : vector<1x16xf32>
    %c0_6 = arith.constant 0 : index
    %c0_7 = arith.constant 0 : index
    %c0_8 = arith.constant 0 : index
    %8 = vector.load %arg2[%c0_6, %c0_7, %c0_8] : memref<4x16x16xf32, #tpu.memory_space<vmem>>, vector<4x16x16xf32>
    %9 = vector.shape_cast %7 : vector<1x16xf32> to vector<1x1x16xf32>
    %10 = vector.broadcast %9 : vector<1x1x16xf32> to vector<4x16x16xf32>
    %11 = arith.addf %8, %10 : vector<4x16x16xf32>
    %c0_9 = arith.constant 0 : index
    %c0_10 = arith.constant 0 : index
    %c0_11 = arith.constant 0 : index
    %12 = vector.load %arg4[%c0_9, %c0_10, %c0_11] : memref<2x1x64xf32, #tpu.memory_space<vmem>>, vector<1x1x64xf32>
    %13 = vector.shape_cast %12 : vector<1x1x64xf32> to vector<1x64xf32>
    %14 = arith.mulf %1, %1 : vector<16x64xf32>
    %cst_12 = arith.constant dense<0.000000e+00> : vector<16xf32>
    %15 = vector.multi_reduction <add>, %14, %cst_12 [1] : vector<16x64xf32> to vector<16xf32>
    %16 = vector.shape_cast %15 : vector<16xf32> to vector<16x1xf32>
    %cst_13 = arith.constant 6.400000e+01 : f32
    %17 = vector.broadcast %cst_13 : f32 to vector<16x1xf32>
    %18 = arith.divf %16, %17 : vector<16x1xf32>
    %cst_14 = arith.constant 9.99999997E-7 : f32
    %19 = vector.broadcast %cst_14 : f32 to vector<16x1xf32>
    %20 = arith.addf %18, %19 : vector<16x1xf32>
    %21 = math.rsqrt %20 : vector<16x1xf32>
    %22 = vector.broadcast %21 : vector<16x1xf32> to vector<16x64xf32>
    %23 = arith.mulf %1, %22 : vector<16x64xf32>
    %24 = vector.broadcast %13 : vector<1x64xf32> to vector<16x64xf32>
    %25 = arith.mulf %23, %24 : vector<16x64xf32>
    %26 = arith.truncf %25 : vector<16x64xf32> to vector<16x64xbf16>
    %c0_15 = arith.constant 0 : index
    %c0_16 = arith.constant 0 : index
    %c0_17 = arith.constant 0 : index
    %27 = vector.load %arg5[%c0_15, %c0_16, %c0_17] : memref<2x64x192xbf16, #tpu.memory_space<vmem>>, vector<1x64x192xbf16>
    %28 = vector.shape_cast %27 : vector<1x64x192xbf16> to vector<64x192xbf16>
    %cst_18 = arith.constant dense<0.000000e+00> : vector<16x192xf32>
    %29 = tpu.matmul %26, %28, %cst_18 {dimension_numbers = #tpu.dot_dimension_numbers<[1], [0], [0], [1], [0, 0, 1, 1], [], []>} : vector<16x64xbf16>, vector<64x192xbf16>, vector<16x192xf32> -> vector<16x192xf32>
    %30 = vector.extract_strided_slice %29 {offsets = [0, 0], sizes = [16, 64], strides = [1, 1]} : vector<16x192xf32> to vector<16x64xf32>
    %31 = vector.shape_cast %30 : vector<16x64xf32> to vector<16x4x16xf32>
    %32 = vector.extract_strided_slice %29 {offsets = [0, 64], sizes = [16, 64], strides = [1, 1]} : vector<16x192xf32> to vector<16x64xf32>
    %33 = vector.shape_cast %32 : vector<16x64xf32> to vector<16x4x16xf32>
    %34 = vector.extract_strided_slice %29 {offsets = [0, 128], sizes = [16, 64], strides = [1, 1]} : vector<16x192xf32> to vector<16x64xf32>
    %35 = vector.shape_cast %34 : vector<16x64xf32> to vector<16x4x16xf32>
    %36 = arith.truncf %31 : vector<16x4x16xf32> to vector<16x4x16xbf16>
    %37 = arith.truncf %33 : vector<16x4x16xf32> to vector<16x4x16xbf16>
    "tpu.trace_start"() <{level = 10 : i32, message = "qhd,khd->hqk"}> : () -> ()
    %cst_19 = arith.constant dense<0.000000e+00> : vector<4x16x16xf32>
    %38 = tpu.matmul %36, %37, %cst_19 {dimension_numbers = #tpu.dot_dimension_numbers<[2], [2], [0], [0], [0, 1, 0, 0, 1, 0], [1], [1]>} : vector<16x4x16xbf16>, vector<16x4x16xbf16>, vector<4x16x16xf32> -> vector<4x16x16xf32>
    "tpu.trace_stop"() : () -> ()
    %39 = arith.addf %38, %11 : vector<4x16x16xf32>
    %cst_20 = arith.constant dense<0xFF800000> : vector<4x16xf32>
    %40 = vector.multi_reduction <maximumf>, %39, %cst_20 [2] : vector<4x16x16xf32> to vector<4x16xf32>
    %41 = vector.shape_cast %40 : vector<4x16xf32> to vector<4x16x1xf32>
    %42 = vector.broadcast %41 : vector<4x16x1xf32> to vector<4x16x16xf32>
    %43 = arith.subf %39, %42 : vector<4x16x16xf32>
    %44 = math.exp %43 : vector<4x16x16xf32>
    %cst_21 = arith.constant dense<0.000000e+00> : vector<4x16xf32>
    %45 = vector.multi_reduction <add>, %44, %cst_21 [2] : vector<4x16x16xf32> to vector<4x16xf32>
    %46 = vector.shape_cast %45 : vector<4x16xf32> to vector<4x16x1xf32>
    %47 = tpu.reciprocal %46 {approx = true} : vector<4x16x1xf32> -> vector<4x16x1xf32>
    %48 = vector.broadcast %47 : vector<4x16x1xf32> to vector<4x16x16xf32>
    %49 = arith.mulf %44, %48 : vector<4x16x16xf32>
    %50 = arith.truncf %49 : vector<4x16x16xf32> to vector<4x16x16xbf16>
    %51 = arith.truncf %35 : vector<16x4x16xf32> to vector<16x4x16xbf16>
    "tpu.trace_start"() <{level = 10 : i32, message = "hqk,khd->qhd"}> : () -> ()
    %cst_22 = arith.constant dense<0.000000e+00> : vector<4x16x16xf32>
    %52 = tpu.matmul %51, %50, %cst_22 {dimension_numbers = #tpu.dot_dimension_numbers<[0], [2], [2], [1], [0, 1, 0, 2, 1, 1], [1], [0]>} : vector<16x4x16xbf16>, vector<4x16x16xbf16>, vector<4x16x16xf32> -> vector<4x16x16xf32>
    %53 = tpu.transpose %52, [2, 0, 1] : vector<4x16x16xf32> -> vector<16x4x16xf32>
    "tpu.trace_stop"() : () -> ()
    %54 = vector.shape_cast %53 : vector<16x4x16xf32> to vector<16x64xf32>
    %55 = arith.truncf %54 : vector<16x64xf32> to vector<16x64xbf16>
    %c0_23 = arith.constant 0 : index
    %c0_24 = arith.constant 0 : index
    %c0_25 = arith.constant 0 : index
    %56 = vector.load %arg6[%c0_23, %c0_24, %c0_25] : memref<2x64x64xbf16, #tpu.memory_space<vmem>>, vector<1x64x64xbf16>
    %57 = vector.shape_cast %56 : vector<1x64x64xbf16> to vector<64x64xbf16>
    %cst_26 = arith.constant dense<0.000000e+00> : vector<16x64xf32>
    %58 = tpu.matmul %55, %57, %cst_26 {dimension_numbers = #tpu.dot_dimension_numbers<[1], [0], [0], [1], [0, 0, 1, 1], [], []>} : vector<16x64xbf16>, vector<64x64xbf16>, vector<16x64xf32> -> vector<16x64xf32>
    %59 = arith.addf %1, %58 : vector<16x64xf32>
    %c0_27 = arith.constant 0 : index
    %c0_28 = arith.constant 0 : index
    %c0_29 = arith.constant 0 : index
    %60 = vector.load %arg7[%c0_27, %c0_28, %c0_29] : memref<2x1x64xf32, #tpu.memory_space<vmem>>, vector<1x1x64xf32>
    %61 = vector.shape_cast %60 : vector<1x1x64xf32> to vector<1x64xf32>
    %62 = arith.mulf %59, %59 : vector<16x64xf32>
    %cst_30 = arith.constant dense<0.000000e+00> : vector<16xf32>
    %63 = vector.multi_reduction <add>, %62, %cst_30 [1] : vector<16x64xf32> to vector<16xf32>
    %64 = vector.shape_cast %63 : vector<16xf32> to vector<16x1xf32>
    %cst_31 = arith.constant 6.400000e+01 : f32
    %65 = vector.broadcast %cst_31 : f32 to vector<16x1xf32>
    %66 = arith.divf %64, %65 : vector<16x1xf32>
    %cst_32 = arith.constant 9.99999997E-7 : f32
    %67 = vector.broadcast %cst_32 : f32 to vector<16x1xf32>
    %68 = arith.addf %66, %67 : vector<16x1xf32>
    %69 = math.rsqrt %68 : vector<16x1xf32>
    %70 = vector.broadcast %69 : vector<16x1xf32> to vector<16x64xf32>
    %71 = arith.mulf %59, %70 : vector<16x64xf32>
    %72 = vector.broadcast %61 : vector<1x64xf32> to vector<16x64xf32>
    %73 = arith.mulf %71, %72 : vector<16x64xf32>
    %74 = arith.truncf %73 : vector<16x64xf32> to vector<16x64xbf16>
    %c0_33 = arith.constant 0 : index
    %c0_34 = arith.constant 0 : index
    %c0_35 = arith.constant 0 : index
    %75 = vector.load %arg8[%c0_33, %c0_34, %c0_35] : memref<2x64x128xbf16, #tpu.memory_space<vmem>>, vector<1x64x128xbf16>
    %76 = vector.shape_cast %75 : vector<1x64x128xbf16> to vector<64x128xbf16>
    %cst_36 = arith.constant dense<0.000000e+00> : vector<16x128xf32>
    %77 = tpu.matmul %74, %76, %cst_36 {dimension_numbers = #tpu.dot_dimension_numbers<[1], [0], [0], [1], [0, 0, 1, 1], [], []>} : vector<16x64xbf16>, vector<64x128xbf16>, vector<16x128xf32> -> vector<16x128xf32>
    %cst_37 = arith.constant 0.000000e+00 : f32
    %78 = vector.broadcast %cst_37 : f32 to vector<16x128xf32>
    %79 = arith.maximumf %77, %78 : vector<16x128xf32>
    %80 = arith.truncf %79 : vector<16x128xf32> to vector<16x128xbf16>
    %c0_38 = arith.constant 0 : index
    %c0_39 = arith.constant 0 : index
    %c0_40 = arith.constant 0 : index
    %81 = vector.load %arg9[%c0_38, %c0_39, %c0_40] : memref<2x128x64xbf16, #tpu.memory_space<vmem>>, vector<1x128x64xbf16>
    %82 = vector.shape_cast %81 : vector<1x128x64xbf16> to vector<128x64xbf16>
    %cst_41 = arith.constant dense<0.000000e+00> : vector<16x64xf32>
    %83 = tpu.matmul %80, %82, %cst_41 {dimension_numbers = #tpu.dot_dimension_numbers<[1], [0], [0], [1], [0, 0, 1, 1], [], []>} : vector<16x128xbf16>, vector<128x64xbf16>, vector<16x64xf32> -> vector<16x64xf32>
    %84 = arith.addf %59, %83 : vector<16x64xf32>
    %c1 = arith.constant 1 : index
    %c0_42 = arith.constant 0 : index
    %c0_43 = arith.constant 0 : index
    %85 = vector.load %arg4[%c1, %c0_42, %c0_43] : memref<2x1x64xf32, #tpu.memory_space<vmem>>, vector<1x1x64xf32>
    %86 = vector.shape_cast %85 : vector<1x1x64xf32> to vector<1x64xf32>
    %87 = arith.mulf %84, %84 : vector<16x64xf32>
    %cst_44 = arith.constant dense<0.000000e+00> : vector<16xf32>
    %88 = vector.multi_reduction <add>, %87, %cst_44 [1] : vector<16x64xf32> to vector<16xf32>
    %89 = vector.shape_cast %88 : vector<16xf32> to vector<16x1xf32>
    %cst_45 = arith.constant 6.400000e+01 : f32
    %90 = vector.broadcast %cst_45 : f32 to vector<16x1xf32>
    %91 = arith.divf %89, %90 : vector<16x1xf32>
    %cst_46 = arith.constant 9.99999997E-7 : f32
    %92 = vector.broadcast %cst_46 : f32 to vector<16x1xf32>
    %93 = arith.addf %91, %92 : vector<16x1xf32>
    %94 = math.rsqrt %93 : vector<16x1xf32>
    %95 = vector.broadcast %94 : vector<16x1xf32> to vector<16x64xf32>
    %96 = arith.mulf %84, %95 : vector<16x64xf32>
    %97 = vector.broadcast %86 : vector<1x64xf32> to vector<16x64xf32>
    %98 = arith.mulf %96, %97 : vector<16x64xf32>
    %99 = arith.truncf %98 : vector<16x64xf32> to vector<16x64xbf16>
    %c1_47 = arith.constant 1 : index
    %c0_48 = arith.constant 0 : index
    %c0_49 = arith.constant 0 : index
    %100 = vector.load %arg5[%c1_47, %c0_48, %c0_49] : memref<2x64x192xbf16, #tpu.memory_space<vmem>>, vector<1x64x192xbf16>
    %101 = vector.shape_cast %100 : vector<1x64x192xbf16> to vector<64x192xbf16>
    %cst_50 = arith.constant dense<0.000000e+00> : vector<16x192xf32>
    %102 = tpu.matmul %99, %101, %cst_50 {dimension_numbers = #tpu.dot_dimension_numbers<[1], [0], [0], [1], [0, 0, 1, 1], [], []>} : vector<16x64xbf16>, vector<64x192xbf16>, vector<16x192xf32> -> vector<16x192xf32>
    %103 = vector.extract_strided_slice %102 {offsets = [0, 0], sizes = [16, 64], strides = [1, 1]} : vector<16x192xf32> to vector<16x64xf32>
    %104 = vector.shape_cast %103 : vector<16x64xf32> to vector<16x4x16xf32>
    %105 = vector.extract_strided_slice %102 {offsets = [0, 64], sizes = [16, 64], strides = [1, 1]} : vector<16x192xf32> to vector<16x64xf32>
    %106 = vector.shape_cast %105 : vector<16x64xf32> to vector<16x4x16xf32>
    %107 = vector.extract_strided_slice %102 {offsets = [0, 128], sizes = [16, 64], strides = [1, 1]} : vector<16x192xf32> to vector<16x64xf32>
    %108 = vector.shape_cast %107 : vector<16x64xf32> to vector<16x4x16xf32>
    %109 = arith.truncf %104 : vector<16x4x16xf32> to vector<16x4x16xbf16>
    %110 = arith.truncf %106 : vector<16x4x16xf32> to vector<16x4x16xbf16>
    "tpu.trace_start"() <{level = 10 : i32, message = "qhd,khd->hqk"}> : () -> ()
    %cst_51 = arith.constant dense<0.000000e+00> : vector<4x16x16xf32>
    %111 = tpu.matmul %109, %110, %cst_51 {dimension_numbers = #tpu.dot_dimension_numbers<[2], [2], [0], [0], [0, 1, 0, 0, 1, 0], [1], [1]>} : vector<16x4x16xbf16>, vector<16x4x16xbf16>, vector<4x16x16xf32> -> vector<4x16x16xf32>
    "tpu.trace_stop"() : () -> ()
    %112 = arith.addf %111, %11 : vector<4x16x16xf32>
    %cst_52 = arith.constant dense<0xFF800000> : vector<4x16xf32>
    %113 = vector.multi_reduction <maximumf>, %112, %cst_52 [2] : vector<4x16x16xf32> to vector<4x16xf32>
    %114 = vector.shape_cast %113 : vector<4x16xf32> to vector<4x16x1xf32>
    %115 = vector.broadcast %114 : vector<4x16x1xf32> to vector<4x16x16xf32>
    %116 = arith.subf %112, %115 : vector<4x16x16xf32>
    %117 = math.exp %116 : vector<4x16x16xf32>
    %cst_53 = arith.constant dense<0.000000e+00> : vector<4x16xf32>
    %118 = vector.multi_reduction <add>, %117, %cst_53 [2] : vector<4x16x16xf32> to vector<4x16xf32>
    %119 = vector.shape_cast %118 : vector<4x16xf32> to vector<4x16x1xf32>
    %120 = tpu.reciprocal %119 {approx = true} : vector<4x16x1xf32> -> vector<4x16x1xf32>
    %121 = vector.broadcast %120 : vector<4x16x1xf32> to vector<4x16x16xf32>
    %122 = arith.mulf %117, %121 : vector<4x16x16xf32>
    %123 = arith.truncf %122 : vector<4x16x16xf32> to vector<4x16x16xbf16>
    %124 = arith.truncf %108 : vector<16x4x16xf32> to vector<16x4x16xbf16>
    "tpu.trace_start"() <{level = 10 : i32, message = "hqk,khd->qhd"}> : () -> ()
    %cst_54 = arith.constant dense<0.000000e+00> : vector<4x16x16xf32>
    %125 = tpu.matmul %124, %123, %cst_54 {dimension_numbers = #tpu.dot_dimension_numbers<[0], [2], [2], [1], [0, 1, 0, 2, 1, 1], [1], [0]>} : vector<16x4x16xbf16>, vector<4x16x16xbf16>, vector<4x16x16xf32> -> vector<4x16x16xf32>
    %126 = tpu.transpose %125, [2, 0, 1] : vector<4x16x16xf32> -> vector<16x4x16xf32>
    "tpu.trace_stop"() : () -> ()
    %127 = vector.shape_cast %126 : vector<16x4x16xf32> to vector<16x64xf32>
    %128 = arith.truncf %127 : vector<16x64xf32> to vector<16x64xbf16>
    %c1_55 = arith.constant 1 : index
    %c0_56 = arith.constant 0 : index
    %c0_57 = arith.constant 0 : index
    %129 = vector.load %arg6[%c1_55, %c0_56, %c0_57] : memref<2x64x64xbf16, #tpu.memory_space<vmem>>, vector<1x64x64xbf16>
    %130 = vector.shape_cast %129 : vector<1x64x64xbf16> to vector<64x64xbf16>
    %cst_58 = arith.constant dense<0.000000e+00> : vector<16x64xf32>
    %131 = tpu.matmul %128, %130, %cst_58 {dimension_numbers = #tpu.dot_dimension_numbers<[1], [0], [0], [1], [0, 0, 1, 1], [], []>} : vector<16x64xbf16>, vector<64x64xbf16>, vector<16x64xf32> -> vector<16x64xf32>
    %132 = arith.addf %84, %131 : vector<16x64xf32>
    %c1_59 = arith.constant 1 : index
    %c0_60 = arith.constant 0 : index
    %c0_61 = arith.constant 0 : index
    %133 = vector.load %arg7[%c1_59, %c0_60, %c0_61] : memref<2x1x64xf32, #tpu.memory_space<vmem>>, vector<1x1x64xf32>
    %134 = vector.shape_cast %133 : vector<1x1x64xf32> to vector<1x64xf32>
    %135 = arith.mulf %132, %132 : vector<16x64xf32>
    %cst_62 = arith.constant dense<0.000000e+00> : vector<16xf32>
    %136 = vector.multi_reduction <add>, %135, %cst_62 [1] : vector<16x64xf32> to vector<16xf32>
    %137 = vector.shape_cast %136 : vector<16xf32> to vector<16x1xf32>
    %cst_63 = arith.constant 6.400000e+01 : f32
    %138 = vector.broadcast %cst_63 : f32 to vector<16x1xf32>
    %139 = arith.divf %137, %138 : vector<16x1xf32>
    %cst_64 = arith.constant 9.99999997E-7 : f32
    %140 = vector.broadcast %cst_64 : f32 to vector<16x1xf32>
    %141 = arith.addf %139, %140 : vector<16x1xf32>
    %142 = math.rsqrt %141 : vector<16x1xf32>
    %143 = vector.broadcast %142 : vector<16x1xf32> to vector<16x64xf32>
    %144 = arith.mulf %132, %143 : vector<16x64xf32>
    %145 = vector.broadcast %134 : vector<1x64xf32> to vector<16x64xf32>
    %146 = arith.mulf %144, %145 : vector<16x64xf32>
    %147 = arith.truncf %146 : vector<16x64xf32> to vector<16x64xbf16>
    %c1_65 = arith.constant 1 : index
    %c0_66 = arith.constant 0 : index
    %c0_67 = arith.constant 0 : index
    %148 = vector.load %arg8[%c1_65, %c0_66, %c0_67] : memref<2x64x128xbf16, #tpu.memory_space<vmem>>, vector<1x64x128xbf16>
    %149 = vector.shape_cast %148 : vector<1x64x128xbf16> to vector<64x128xbf16>
    %cst_68 = arith.constant dense<0.000000e+00> : vector<16x128xf32>
    %150 = tpu.matmul %147, %149, %cst_68 {dimension_numbers = #tpu.dot_dimension_numbers<[1], [0], [0], [1], [0, 0, 1, 1], [], []>} : vector<16x64xbf16>, vector<64x128xbf16>, vector<16x128xf32> -> vector<16x128xf32>
    %cst_69 = arith.constant 0.000000e+00 : f32
    %151 = vector.broadcast %cst_69 : f32 to vector<16x128xf32>
    %152 = arith.maximumf %150, %151 : vector<16x128xf32>
    %153 = arith.truncf %152 : vector<16x128xf32> to vector<16x128xbf16>
    %c1_70 = arith.constant 1 : index
    %c0_71 = arith.constant 0 : index
    %c0_72 = arith.constant 0 : index
    %154 = vector.load %arg9[%c1_70, %c0_71, %c0_72] : memref<2x128x64xbf16, #tpu.memory_space<vmem>>, vector<1x128x64xbf16>
    %155 = vector.shape_cast %154 : vector<1x128x64xbf16> to vector<128x64xbf16>
    %cst_73 = arith.constant dense<0.000000e+00> : vector<16x64xf32>
    %156 = tpu.matmul %153, %155, %cst_73 {dimension_numbers = #tpu.dot_dimension_numbers<[1], [0], [0], [1], [0, 0, 1, 1], [], []>} : vector<16x128xbf16>, vector<128x64xbf16>, vector<16x64xf32> -> vector<16x64xf32>
    %157 = arith.addf %132, %156 : vector<16x64xf32>
    %c0_74 = arith.constant 0 : index
    %c0_75 = arith.constant 0 : index
    %158 = vector.load %arg10[%c0_74, %c0_75] : memref<1x64xf32, #tpu.memory_space<vmem>>, vector<1x64xf32>
    %159 = arith.mulf %157, %157 : vector<16x64xf32>
    %cst_76 = arith.constant dense<0.000000e+00> : vector<16xf32>
    %160 = vector.multi_reduction <add>, %159, %cst_76 [1] : vector<16x64xf32> to vector<16xf32>
    %161 = vector.shape_cast %160 : vector<16xf32> to vector<16x1xf32>
    %cst_77 = arith.constant 6.400000e+01 : f32
    %162 = vector.broadcast %cst_77 : f32 to vector<16x1xf32>
    %163 = arith.divf %161, %162 : vector<16x1xf32>
    %cst_78 = arith.constant 9.99999997E-7 : f32
    %164 = vector.broadcast %cst_78 : f32 to vector<16x1xf32>
    %165 = arith.addf %163, %164 : vector<16x1xf32>
    %166 = math.rsqrt %165 : vector<16x1xf32>
    %167 = vector.broadcast %166 : vector<16x1xf32> to vector<16x64xf32>
    %168 = arith.mulf %157, %167 : vector<16x64xf32>
    %169 = vector.broadcast %158 : vector<1x64xf32> to vector<16x64xf32>
    %170 = arith.mulf %168, %169 : vector<16x64xf32>
    %c0_79 = arith.constant 0 : index
    %c0_80 = arith.constant 0 : index
    %c0_81 = arith.constant 0 : index
    %171 = vector.load %arg11[%c0_79, %c0_80, %c0_81] : memref<1x16x64xf32, #tpu.memory_space<vmem>>, vector<1x16x64xf32>
    %172 = vector.shape_cast %171 : vector<1x16x64xf32> to vector<16x64xf32>
    %173 = vector.shape_cast %170 : vector<16x64xf32> to vector<1x16x64xf32>
    tpu.vector_store %arg11[%c0_79, %c0_80, %c0_81], %173 {strides = array<i32>} : memref<1x16x64xf32, #tpu.memory_space<vmem>>, vector<1x16x64xf32>,
    return
  }
  func.func @transform_0(%arg0: i32) -> (i32, i32, i32) {
    %c0_i32 = arith.constant 0 : i32
    %c0_i32_0 = arith.constant 0 : i32
    %c0_i32_1 = arith.constant 0 : i32
    return %arg0, %c0_i32, %c0_i32_0 : i32, i32, i32
  }
  func.func @transform_1(%arg0: i32) -> (i32, i32, i32) {
    %c0_i32 = arith.constant 0 : i32
    %c0_i32_0 = arith.constant 0 : i32
    %c0_i32_1 = arith.constant 0 : i32
    %c0_i32_2 = arith.constant 0 : i32
    return %c0_i32, %c0_i32_0, %c0_i32_1 : i32, i32, i32
  }
  func.func @transform_2(%arg0: i32) -> (i32, i32, i32) {
    %c0_i32 = arith.constant 0 : i32
    %c0_i32_0 = arith.constant 0 : i32
    %c0_i32_1 = arith.constant 0 : i32
    return %arg0, %c0_i32, %c0_i32_0 : i32, i32, i32
  }
  func.func @transform_3(%arg0: i32) -> (i32, i32, i32) {
    %c0_i32 = arith.constant 0 : i32
    %c0_i32_0 = arith.constant 0 : i32
    %c0_i32_1 = arith.constant 0 : i32
    %c0_i32_2 = arith.constant 0 : i32
    return %c0_i32, %c0_i32_0, %c0_i32_1 : i32, i32, i32
  }
  func.func @transform_4(%arg0: i32) -> (i32, i32, i32) {
    %c0_i32 = arith.constant 0 : i32
    %c0_i32_0 = arith.constant 0 : i32
    %c0_i32_1 = arith.constant 0 : i32
    %c0_i32_2 = arith.constant 0 : i32
    return %c0_i32, %c0_i32_0, %c0_i32_1 : i32, i32, i32
  }
  func.func @transform_5(%arg0: i32) -> (i32, i32, i32) {
    %c0_i32 = arith.constant 0 : i32
    %c0_i32_0 = arith.constant 0 : i32
    %c0_i32_1 = arith.constant 0 : i32
    %c0_i32_2 = arith.constant 0 : i32
    return %c0_i32, %c0_i32_0, %c0_i32_1 : i32, i32, i32
  }
  func.func @transform_6(%arg0: i32) -> (i32, i32, i32) {
    %c0_i32 = arith.constant 0 : i32
    %c0_i32_0 = arith.constant 0 : i32
    %c0_i32_1 = arith.constant 0 : i32
    %c0_i32_2 = arith.constant 0 : i32
    return %c0_i32, %c0_i32_0, %c0_i32_1 : i32, i32, i32
  }
  func.func @transform_7(%arg0: i32) -> (i32, i32, i32) {
    %c0_i32 = arith.constant 0 : i32
    %c0_i32_0 = arith.constant 0 : i32
    %c0_i32_1 = arith.constant 0 : i32
    %c0_i32_2 = arith.constant 0 : i32
    return %c0_i32, %c0_i32_0, %c0_i32_1 : i32, i32, i32
  }
  func.func @transform_8(%arg0: i32) -> (i32, i32, i32) {
    %c0_i32 = arith.constant 0 : i32
    %c0_i32_0 = arith.constant 0 : i32
    %c0_i32_1 = arith.constant 0 : i32
    %c0_i32_2 = arith.constant 0 : i32
    return %c0_i32, %c0_i32_0, %c0_i32_1 : i32, i32, i32
  }
  func.func @transform_9(%arg0: i32) -> (i32, i32) {
    %c0_i32 = arith.constant 0 : i32
    %c0_i32_0 = arith.constant 0 : i32
    %c0_i32_1 = arith.constant 0 : i32
    return %c0_i32, %c0_i32_0 : i32, i32
  }
  func.func @transform_10(%arg0: i32) -> (i32, i32, i32) {
    %c0_i32 = arith.constant 0 : i32
    %c0_i32_0 = arith.constant 0 : i32
    %c0_i32_1 = arith.constant 0 : i32
    return %arg0, %c0_i32, %c0_i32_0 : i32, i32, i32
  }
}

</mosaic_0001>

<bundles_post_ra>
// kernel: t5_encoder_forward.1
= control target key start
LH: loop header
LB: loop body
LE: loop exit
PB: predicated region body
PF: predicated region fallthrough
CT: control target
= control target key end

     0   :  { %15 = vsyncpa [#allocation3], 0  ;;  %s10430_s0 = inlined_call_operand.vmem [shape: f32[2,16,64], index: 0, kind: input, shape index: {}]   ;;  %s10431_s1 = inlined_call_operand.vmem [shape: f32[4,16,16], index: 1, kind: input, shape index: {}]   ;;  %s10432_s2 = inlined_call_operand.vmem [shape: f32[2,1,16], index: 2, kind: input, shape index: {}]   ;;  %s10433_s3 = inlined_call_operand.vmem [shape: f32[2,1,64], index: 3, kind: input, shape index: {}]   ;;  %s10434_s4 = inlined_call_operand.vmem [shape: bf16[2,64,192], index: 4, kind: input, shape index: {}]   ;;  %s10435_s5 = inlined_call_operand.vmem [shape: bf16[2,64,64], index: 5, kind: input, shape index: {}]   ;;  %s10436_s6 = inlined_call_operand.vmem [shape: f32[2,1,64], index: 6, kind: input, shape index: {}]   ;;  %s10437_s7 = inlined_call_operand.vmem [shape: bf16[2,64,128], index: 7, kind: input, shape index: {}]   ;;  %s10438_s8 = inlined_call_operand.vmem [shape: bf16[2,128,64], index: 8, kind: input, shape index: {}]   ;;  %s10439_s9 = inlined_call_operand.vmem [shape: f32[1,64], index: 9, kind: input, shape index: {}]   ;;  %s10440_s10 = inlined_call_operand.hbm [shape: f32[2,16,64], index: 10, kind: output, shape index: {}]  }
   0x1   :  { %17 = vsyncpa [#allocation3 + $0x1], 0  ;;  %s8995_s13 = smov 0   ;;  %s8997_s14 = smov 0  }
   0x2   :  { %s8999_s15 = smov 0   ;;  %s9001_s16 = smov 0  }
   0x3 LB: > { %s9016_s17 = sadd.s32 4294967295, %s8923_s16   ;;  %s8229_s18 = sadd.s32 4294967294, %s8923_s16   ;;  %s8923_s16 = sphi %s9001_s16, %s10461_s16   ;;  %s8919_s15 = sphi %s8999_s15, %s10460_s15   ;;  %s8915_s14 = sphi %s8997_s14, %s10459_s14   ;;  %s8911_s13 = sphi %s8995_s13, %s10458_s13  }
   0x4   : > { %s9020_s19 = sadd.s32 1, %s8923_s16   ;;  %s250_s20 = sadd.s32 1, %s8919_s15 }
   0x5   : > { %s247_s21 = ssub.s32 %s8923_s16, %s9020_s19  ;;  %p260_p0 = scmp.ne.s32.totalorder %s8919_s15, %s8915_s14 }
   0x6   : > { %p248_p1 = scmp.eq.s32.totalorder %s247_s21, 0  ;;  %p261_p2 = scmp.eq.s32.totalorder %s9016_s17, 1 }
   0x7   : > { %p266_p3 = scmp.ne.s32.totalorder %s8915_s14, %s8911_s13  ;;  %p267_p4 = scmp.eq.s32.totalorder %s8229_s18, 1 }
   0x8   : > { %s9031_s22 = scalar_select %p248_p1, %s8919_s15, %s250_s20  }
   0x9   : > { %p9033_p5 = por %p261_p2, %p260_p0  ;;  %p9037_p6 = por %p267_p4, %p266_p3 }
   0xa   : > { %p8232_p7 = scmp.ge.s32.totalorder %s8923_s16, 1  ;;  %p323_p8 = scmp.lt.s32.totalorder %s8923_s16, 3 }
   0xc   : > { %p324_p9 = pnand %p8232_p7, %p323_p8 }
   0xd   : > { %p364_p10 = scmp.lt.s32.totalorder (!%p324_p9), %s9016_s17, 1  ;;  %s10448_s30 = smov (!%p324_p9), 96  }
   0xe   : > { %327 = sbr.rel (%p324_p9) target bundleno = 5633 (0x1601), region = 60  ;;  %s8928_s11 = smov (!%p324_p9), 112  }
   0xf   : > { %s10443_s18 = smov (!%p324_p9), 80   ;;  %s10441_s20 = smov (!%p324_p9), 64  }
  0x10   : > { %s10447_s21 = smov (!%p324_p9), 32   ;;  %s10454_s27 = smov (!%p324_p9), 64  }
  0x13   : > { %v387_v0 = vlaneseq  ;;  %s365_s25 = scalar_select %p364_p10, %s9016_s17, 1  ;;  %vm403_vm0 = vcmask 523264   ;;  %v8721_v13 = vld [vmem:[%s10434_s4 + $0x34] ss:$8 sps:$4 sm:$0xff]   ;;  %v8723_v14 = vld [vmem:[%s10434_s4 + $0x30] ss:$8 sps:$4 sm:$0xff]  }
  0x14   : > { %v8724_v15 = vld [vmem:[%s10434_s4 + $0x24] ss:$8 sps:$4 sm:$0xff]   ;;  %487 = vmatprep.subr.bf16.mxu0 %v8721_v13  ;;  %v8726_v16 = vld [vmem:[%s10434_s4 + $0x20] ss:$8 sps:$4 sm:$0xff]   ;;  %v8727_v17 = vld [vmem:[%s10434_s4 + $0x14] ss:$8 sps:$4 sm:$0xff]  }
  0x15   : > { %s8382_s26 = sshll.u32 %s365_s25, 4  ;;  %s371_s29 = scalar_lea.vmem %s10432_s2, %s365_s25  ;;  %v9048_v1 = vshrl.u32 %v387_v0, 7  ;;  %488 = vmatpush1.bf16.msra.mxu0 %v8723_v14  ;;  %v8925_v18 = vmov 0   ;;  %v8729_v19 = vld [vmem:[%s10434_s4 + $0x10] ss:$8 sps:$4 sm:$0xff]   ;;  %v8926_v36 = vmov 0.0  }
  0x16   : > { %s9053_s12 = scalar_lea.vmem %s10430_s0, %s8382_s26  ;;  %v375_v2 = vld [vmem:[%s371_s29] sm:$0x1]  ;;  %511 = vmatprep.mubr.bf16.mxu0 %v8925_v18  ;;  %489 = vmatprep.subr.bf16.mxu0 %v8724_v15  ;;  %v8730_v20 = vld [vmem:[%s10434_s4 + $0x4] ss:$8 sps:$4 sm:$0xff]   ;;  %v8931_v49 = vmov 1983009808  }
  0x17   : > { %v373_v3 = vld [vmem:[%s9053_s12] sm:$0xff]  ;;  %v376_v4 = vsub.f32 1.0, %v375_v2  ;;  %v389_v5 = vsub.s32 0, %v9048_v1  ;;  %v374_v6 = vld [vmem:[%s9053_s12 + $0x8] sm:$0xff]  ;;  %8454 = vmatprep.subr.bf16.mxu1 %v8926_v36  ;;  %v545_v50 = vunpack.c.l.s4 %v8931_v49  ;;  %v8932_v53 = vmov 1934713408  }
  0x18   : > { %v401_v7 = vmul.f32 %v373_v3, %v373_v3  ;;  %v402_v8 = vmul.f32 %v374_v6, %v374_v6  ;;  %v8732_v21 = vld [vmem:[%s10434_s4] ss:$8 sps:$4 sm:$0xff]   ;;  %v577_v54 = vunpack.c.l.s4 %v8932_v53  ;;  %vm8933_vm1 = vmmov 0   ;;  %s10446_s25 = smov 16   ;;  %s10453_s26 = smov 80  }
  0x19   : > { %v377_v9 = vmul.f32 -1e+09, %v376_v4  ;;  %490 = vmatpush1.bf16.msra.mxu0 %v8726_v16  ;;  %v8236_v31 = vld [vmem:[%s10433_s3] ss:$0 sm:$0xff]  ;;  %v546_v52 = vunpack.c.0.s8 %v545_v50  ;;  %8456 = vmatprep.mubr.msk.bf16.mxu1 %vm8933_vm1, %v8926_v36  ;;  %vm2102_vm2 = vcmask 130048   ;;  %vm3961_vm3 = vcmask 261120  }
  0x1a   : > { %v404_v10 = vsel %vm403_vm0, %v401_v7, 0.0  ;;  %v407_v11 = vsel %vm403_vm0, %v402_v8, 0.0  ;;  %491 = vmatprep.subr.bf16.mxu0 %v8727_v17  ;;  %v578_v59 = vunpack.c.0.s8 %v577_v54  ;;  %vm3964_vm4 = vcmask 392192  }
  0x1b   : > { %v9060_v12 = vrot.slane %v377_v9, %v389_v5  ;;  %405 = vadd.xlane.f32.xlu0 %v404_v10  ;;  %v9140_v58 = vsub.s32 %v546_v52, %v9048_v1 }
  0x1c   : > { %v9147_v4 = vsub.s32 %v578_v59, %v9048_v1 }
  0x1d   : > { %492 = vmatpush1.bf16.msra.mxu0 %v8729_v19 }
  0x1e   : > { %493 = vmatprep.subr.bf16.mxu0 %v8730_v20 }
  0x1f   : > { %408 = vadd.xlane.f32.xlu0 %v407_v11 }
  0x21   : > { %494 = vmatpush1.bf16.msra.mxu0 %v8732_v21 }
  0x22   : > { %8472 = vmatprep.subr.bf16.mxu0 %v8926_v36 }
  0xa4   : > { %v406_v22 = vpop.xlane.xlu0 %405 }
  0xa5   : > { %v411_v23 = vmul.f32 0.015625, %v406_v22 }
  0xa7   : > { %v413_v24 = vadd.f32 1e-06, %v411_v23 }
  0xa8   : > { %v409_v25 = vpop.xlane.xlu0 %408 }
  0xa9   : > { %8777 = vrsqrt.f32 %v413_v24  ;;  %v412_v26 = vmul.f32 0.015625, %v409_v25 }
  0xab   : > { %v414_v27 = vadd.f32 1e-06, %v412_v26 }
  0xad   : > { %8779 = vrsqrt.f32 %v414_v27 }
  0xb6   : > { %v8778_v28 = vpop.eup %8777 }
  0xb7   : > { %v417_v29 = vmul.f32 %v8778_v28, %v373_v3 }
  0xb9   : > { %v425_v33 = vmul.f32 %v8236_v31, %v417_v29 }
  0xba   : > { %v8780_v30 = vpop.eup %8779 }
  0xbb   : > { %v418_v32 = vmul.f32 %v8780_v30, %v374_v6 }
  0xbd   : > { %v426_v34 = vmul.f32 %v8236_v31, %v418_v32 }
  0xbf   : > { %v427_v35 = vpack.c.bf16 %v426_v34, %v425_v33 }
  0xc1   : > { %8245 = vmatmul.mubr.msk.bf16.vlgmr.msra.gmra.mxu0 %vm403_vm0, %v427_v35 }
  0xc2   : > { %8474 = vmatprep.mubr.msk.bf16.mxu0 %vm8933_vm1, %v8926_v36 }
 0x181   : > { %v9093_v37 = vpop.f32.mrf.mxu0 }
 0x182   : > { %530 = vrot.lane.b32.xlu0 %v9093_v37, %s10448_s30  ;;  %524 = vrot.lane.b32.xlu1 %v9093_v37, %s8928_s11 }
 0x183   : > { %v9099_v38 = vpop.f32.mrf.mxu0 }
 0x185   : > { %v9103_v39 = vpop.f32.mrf.mxu0 }
 0x186   : > { %536 = vrot.lane.b32.xlu1 %v9093_v37, %s10443_s18 }
 0x18a   : > { %526 = vrot.lane.b32.xlu1 %v9103_v39, %s8928_s11 }
 0x18e   : > { %532 = vrot.lane.b32.xlu1 %v9103_v39, %s10448_s30 }
 0x192   : > { %538 = vrot.lane.b32.xlu1 %v9103_v39, %s10443_s18 }
 0x196   : > { %678 = vrot.lane.b32.xlu1 %v9093_v37, %s10441_s20 }
 0x19a   : > { %680 = vrot.lane.b32.xlu1 %v9103_v39, %s10441_s20 }
 0x1f4   : > { %v9115_v40 = vpop.permute.xlu1 %524  ;;  %v9119_v41 = vpop.permute.xlu0 %530 }
 0x1f5   : > { %682 = vrot.lane.b32.xlu1 %v9115_v40, %s10441_s20 }
 0x1f8   : > { %v9121_v42 = vpop.permute.xlu1 %536 }
 0x1f9   : > { %686 = vrot.lane.b32.xlu1 %v9119_v41, %s10441_s20 }
 0x1fc   : > { %v9125_v43 = vpop.permute.xlu1 %526 }
 0x1fd   : > { %690 = vrot.lane.b32.xlu1 %v9121_v42, %s10441_s20  ;;  %684 = vrot.lane.b32.xlu0 %v9125_v43, %s10441_s20 }
 0x200   : > { %v9131_v44 = vpop.permute.xlu1 %532 }
 0x201   : > { %688 = vrot.lane.b32.xlu0 %v9131_v44, %s10441_s20 }
 0x204   : > { %v9135_v45 = vpop.permute.xlu1 %538 }
 0x205   : > { %692 = vrot.lane.b32.xlu0 %v9135_v45, %s10441_s20  ;;  %s10452_s20 = smov 96  }
 0x208   : > { %v679_v46 = vpop.permute.xlu1 %678 }
 0x20c   : > { %v681_v47 = vpop.permute.xlu1 %680 }
 0x267   : > { %v683_v48 = vpop.permute.xlu1 %682 }
 0x26b   : > { %v687_v51 = vpop.permute.xlu1 %686 }
 0x26c   : > { %v702_v55 = vcombine.low %v679_v46, %v687_v51  ;;  %v703_v56 = vcombine.high %v679_v46, %v687_v51 }
 0x26e   : > { %v710_v63 = vrot.slane %v702_v55, %v9140_v58  ;;  %v717_v0 = vrot.slane %v703_v56, %v9140_v58 }
 0x26f   : > { %v691_v57 = vpop.permute.xlu1 %690  ;;  %v685_v60 = vpop.permute.xlu0 %684 }
 0x270   : > { %v718_v61 = vcombine.low %v683_v48, %v691_v57  ;;  %v719_v62 = vcombine.high %v683_v48, %v691_v57 }
 0x272   : > { %v726_v2 = vrot.slane %v718_v61, %v9140_v58  ;;  %v733_v3 = vrot.slane %v719_v62, %v9140_v58 }
 0x273   : > { %v689_v5 = vpop.permute.xlu0 %688 }
 0x274   : > { %v735_v6 = vcombine.high %v710_v63, %v726_v2  ;;  %v734_v7 = vcombine.low %v710_v63, %v726_v2  ;;  %v750_v8 = vcombine.low %v717_v0, %v733_v3  ;;  %v770_v11 = vcombine.low %v681_v47, %v689_v5 }
 0x275   : > { %v751_v13 = vcombine.high %v717_v0, %v733_v3  ;;  %v771_v28 = vcombine.high %v681_v47, %v689_v5 }
 0x276   : > { %v749_v9 = vrot.slane %v735_v6, %v9147_v4  ;;  %v742_v10 = vrot.slane %v734_v7, %v9147_v4  ;;  %v758_v17 = vrot.slane %v750_v8, %v9147_v4  ;;  %v778_v1 = vrot.slane %v770_v11, %v9140_v58 }
 0x277   : > { %v693_v14 = vpop.permute.xlu0 %692  ;;  %v765_v22 = vrot.slane %v751_v13, %v9147_v4  ;;  %v785_v46 = vrot.slane %v771_v28, %v9140_v58 }
 0x278   : > { %v1012_v15 = vpack.c.bf16 %v749_v9, %v749_v9  ;;  %v1010_v16 = vpack.c.bf16 %v742_v10, %v742_v10  ;;  %v767_v19 = vcombine.high %v749_v9, %v8926_v36  ;;  %v786_v20 = vcombine.low %v685_v60, %v693_v14 }
 0x279   : > { %v787_v23 = vcombine.high %v685_v60, %v693_v14  ;;  %v1014_v24 = vpack.c.bf16 %v758_v17, %v758_v17  ;;  %v768_v26 = vcombine.high %v758_v17, %v8926_v36  ;;  %v1016_v29 = vpack.c.bf16 %v765_v22, %v765_v22 }
 0x27a   : > { %1170 = vxpose.xlu0.c.b16.start.end [1/1] (short) (narrow) %v1012_v15, 16  ;;  %1138 = vxpose.xlu1.c.b16.start.end [1/1] (short) (narrow) %v1010_v16, 16  ;;  %v794_v21 = vrot.slane %v786_v20, %v9140_v58  ;;  %v1013_v25 = vpack.c.bf16 %v767_v19, %v767_v19  ;;  %v769_v30 = vcombine.high %v765_v22, %v8926_v36 }
 0x27b   : > { %v766_v31 = vcombine.high %v742_v10, %v8926_v36  ;;  %v801_v32 = vrot.slane %v787_v23, %v9140_v58  ;;  %v1015_v33 = vpack.c.bf16 %v768_v26, %v768_v26 }
 0x27c   : > { %v802_v27 = vcombine.low %v778_v1, %v794_v21  ;;  %v803_v35 = vcombine.high %v778_v1, %v794_v21  ;;  %v1017_v48 = vpack.c.bf16 %v769_v30, %v769_v30 }
 0x27d   : > { %v1011_v49 = vpack.c.bf16 %v766_v31, %v766_v31  ;;  %v818_v51 = vcombine.low %v785_v46, %v801_v32  ;;  %v819_v52 = vcombine.high %v785_v46, %v801_v32 }
 0x27e   : > { %1202 = vxpose.xlu0.c.b16.start.end [1/1] (short) (narrow) %v1014_v24, 16  ;;  %1186 = vxpose.xlu1.c.b16.start.end [1/1] (short) (narrow) %v1013_v25, 16  ;;  %v810_v34 = vrot.slane %v802_v27, %v9147_v4  ;;  %v817_v50 = vrot.slane %v803_v35, %v9147_v4 }
 0x27f   : > { %v826_v56 = vrot.slane %v818_v51, %v9147_v4  ;;  %v833_v61 = vrot.slane %v819_v52, %v9147_v4 }
 0x280   : > { %v834_v47 = vcombine.high %v810_v34, %v8926_v36  ;;  %v1018_v54 = vpack.c.bf16 %v810_v34, %v810_v34  ;;  %v835_v55 = vcombine.high %v817_v50, %v8926_v36  ;;  %v1020_v59 = vpack.c.bf16 %v817_v50, %v817_v50 }
 0x281   : > { %v836_v60 = vcombine.high %v826_v56, %v8926_v36  ;;  %v1022_v63 = vpack.c.bf16 %v826_v56, %v826_v56  ;;  %v837_v0 = vcombine.high %v833_v61, %v8926_v36  ;;  %v1024_v3 = vpack.c.bf16 %v833_v61, %v833_v61 }
 0x282   : > { %1234 = vxpose.xlu0.c.b16.start.end [1/1] (short) (narrow) %v1016_v29, 16  ;;  %1218 = vxpose.xlu1.c.b16.start.end [1/1] (short) (narrow) %v1015_v33, 16  ;;  %v1019_v53 = vpack.c.bf16 %v834_v47, %v834_v47  ;;  %v1021_v57 = vpack.c.bf16 %v835_v55, %v835_v55 }
 0x283   : > { %v1023_v62 = vpack.c.bf16 %v836_v60, %v836_v60  ;;  %v1025_v2 = vpack.c.bf16 %v837_v0, %v837_v0 }
 0x286   : > { %1250 = vxpose.xlu1.c.b16.start.end [1/1] (short) (narrow) %v1017_v48, 16  ;;  %1154 = vxpose.xlu0.c.b16.start.end [1/1] (short) (narrow) %v1011_v49, 16 }
 0x28a   : > { %1282 = vxpose.xlu1.c.b16.start.end [1/1] (short) (narrow) %v1019_v53, 16  ;;  %1266 = vxpose.xlu0.c.b16.start.end [1/1] (short) (narrow) %v1018_v54, 16 }
 0x28e   : > { %1314 = vxpose.xlu1.c.b16.start.end [1/1] (short) (narrow) %v1021_v57, 16  ;;  %1298 = vxpose.xlu0.c.b16.start.end [1/1] (short) (narrow) %v1020_v59, 16 }
 0x292   : > { %1346 = vxpose.xlu1.c.b16.start.end [1/1] (short) (narrow) %v1023_v62, 16  ;;  %1330 = vxpose.xlu0.c.b16.start.end [1/1] (short) (narrow) %v1022_v63, 16 }
 0x296   : > { %1378 = vxpose.xlu1.c.b16.start.end [1/1] (short) (narrow) %v1025_v2, 16  ;;  %1362 = vxpose.xlu0.c.b16.start.end [1/1] (short) (narrow) %v1024_v3, 16 }
 0x2dc   : > { %v1178_v5 = vpop.trf.xlu0  ;;  %v9169_v6 = vpop.trf.xlu1 }
 0x2e0   : > { %v9171_v7 = vpop.trf.xlu0  ;;  %v1194_v8 = vpop.trf.xlu1 }
 0x2e1   : > { %v1394_v21 = vcombine.low %v9169_v6, %v9171_v7  ;;  %v1395_v33 = vcombine.high %v9169_v6, %v9171_v7 }
 0x2e3   : > { %v1402_v30 = vrot.slane %v1394_v21, %v9140_v58 }
 0x2e4   : > { %v1242_v9 = vpop.trf.xlu0  ;;  %v1226_v10 = vpop.trf.xlu1 }
 0x2e5   : > { %v1410_v19 = vcombine.low %v1178_v5, %v1242_v9  ;;  %v1411_v24 = vcombine.high %v1178_v5, %v1242_v9 }
 0x2e7   : > { %v1418_v25 = vrot.slane %v1410_v19, %v9140_v58  ;;  %v9182_v46 = vrot.slane %v1411_v24, %v9140_v58 }
 0x2e8   : > { %v1258_v11 = vpop.trf.xlu1  ;;  %v1162_v13 = vpop.trf.xlu0 }
 0x2e9   : > { %v1546_v20 = vcombine.low %v1194_v8, %v1258_v11  ;;  %v1530_v1 = vcombine.low %v1162_v13, %v1226_v10  ;;  %v1547_v48 = vcombine.high %v1194_v8, %v1258_v11  ;;  %v1458_v49 = vcombine.low %v1402_v30, %v1418_v25 }
 0x2ea   : > { %v1531_v54 = vcombine.high %v1162_v13, %v1226_v10  ;;  %v1459_v57 = vcombine.high %v1402_v30, %v1418_v25 }
 0x2eb   : > { %v1554_v26 = vrot.slane %v1546_v20, %v9140_v58  ;;  %v1538_v27 = vrot.slane %v1530_v1, %v9140_v58  ;;  %v9189_v63 = vrot.slane %v1547_v48, %v9140_v58  ;;  %v1466_v3 = vrot.slane %v1458_v49, %v9147_v4 }
 0x2ec   : > { %v1290_v14 = vpop.trf.xlu1  ;;  %v1274_v15 = vpop.trf.xlu0  ;;  %v1545_v19 = vrot.slane %v1531_v54, %v9140_v58  ;;  %v1473_v21 = vrot.slane %v1459_v57, %v9147_v4 }
 0x2ed   : > { %v1594_v47 = vcombine.low %v1538_v27, %v1554_v26  ;;  %v1595_v8 = vcombine.high %v1538_v27, %v1554_v26  ;;  %v1409_v26 = vrot.slane %v1395_v33, %v9140_v58 }
 0x2ee   : > { %v1610_v49 = vcombine.low %v1545_v19, %v9189_v63 }
 0x2ef   : > { %v1602_v6 = vrot.slane %v1594_v47, %v9147_v4  ;;  %v1609_v25 = vrot.slane %v1595_v8, %v9147_v4  ;;  %v1474_v48 = vcombine.low %v1409_v26, %v9182_v46 }
 0x2f0   : > { %v1322_v16 = vpop.trf.xlu1  ;;  %v1306_v17 = vpop.trf.xlu0  ;;  %v1618_v57 = vrot.slane %v1610_v49, %v9147_v4  ;;  %v626_v49 = vcombine.low %v9125_v43, %v9135_v45 }
 0x2f4   : > { %v1354_v22 = vpop.trf.xlu1  ;;  %v1338_v23 = vpop.trf.xlu0 }
 0x2f5   : > { %v1562_v28 = vcombine.low %v1290_v14, %v1354_v22  ;;  %v1426_v29 = vcombine.low %v1274_v15, %v1338_v23  ;;  %v1563_v0 = vcombine.high %v1290_v14, %v1354_v22  ;;  %v1427_v2 = vcombine.high %v1274_v15, %v1338_v23 }
 0x2f7   : > { %v1570_v50 = vrot.slane %v1562_v28, %v9140_v58  ;;  %v1434_v51 = vrot.slane %v1426_v29, %v9140_v58  ;;  %v1577_v20 = vrot.slane %v1563_v0, %v9140_v58  ;;  %v1441_v1 = vrot.slane %v1427_v2, %v9140_v58 }
 0x2f8   : > { %v1386_v31 = vpop.trf.xlu1  ;;  %v1370_v32 = vpop.trf.xlu0 }
 0x2f9   : > { %v1578_v34 = vcombine.low %v1322_v16, %v1386_v31  ;;  %v1442_v35 = vcombine.low %v1306_v17, %v1370_v32  ;;  %v1579_v55 = vcombine.high %v1322_v16, %v1386_v31  ;;  %v1443_v56 = vcombine.high %v1306_v17, %v1370_v32 }
 0x2fb   : > { %v1586_v52 = vrot.slane %v1578_v34, %v9140_v58  ;;  %v1450_v53 = vrot.slane %v1442_v35, %v9140_v58  ;;  %v1593_v9 = vrot.slane %v1579_v55, %v9140_v58  ;;  %v1457_v10 = vrot.slane %v1443_v56, %v9140_v58 }
 0x2fc   : > { %v1482_v56 = vrot.slane %v1474_v48, %v9147_v4 }
 0x2fd   : > { %v1490_v59 = vcombine.low %v1434_v51, %v1450_v53  ;;  %v1626_v60 = vcombine.low %v1570_v50, %v1586_v52  ;;  %v1491_v61 = vcombine.high %v1434_v51, %v1450_v53  ;;  %v1627_v62 = vcombine.high %v1570_v50, %v1586_v52 }
 0x2fe   : > { %v1506_v28 = vcombine.low %v1441_v1, %v1457_v10  ;;  %v1642_v29 = vcombine.low %v1577_v20, %v1593_v9 }
 0x2ff   : > { %v1498_v5 = vrot.slane %v1490_v59, %v9147_v4  ;;  %v1634_v7 = vrot.slane %v1626_v60, %v9147_v4  ;;  %v1505_v11 = vrot.slane %v1491_v61, %v9147_v4  ;;  %v1641_v13 = vrot.slane %v1627_v62, %v9147_v4 }
 0x300   : > { %v1514_v50 = vrot.slane %v1506_v28, %v9147_v4  ;;  %v1650_v51 = vrot.slane %v1642_v29, %v9147_v4  ;;  %v1507_v60 = vcombine.high %v1441_v1, %v1457_v10  ;;  %v1643_v61 = vcombine.high %v1577_v20, %v1593_v9 }
 0x301   : > { %v1522_v16 = vcombine.low %v1466_v3, %v1498_v5  ;;  %v1658_v14 = vcombine.low %v1602_v6, %v1634_v7  ;;  %v1523_v15 = vcombine.high %v1466_v3, %v1498_v5  ;;  %v1659_v17 = vcombine.high %v1602_v6, %v1634_v7 }
 0x302   : > { %v1524_v27 = vcombine.low %v1473_v21, %v1505_v11  ;;  %v1660_v34 = vcombine.low %v1609_v25, %v1641_v13  ;;  %v1525_v47 = vcombine.high %v1473_v21, %v1505_v11  ;;  %v1661_v54 = vcombine.high %v1609_v25, %v1641_v13 }
 0x303   : > { %v1668_v22 = vpack.i.b16 %v1658_v14, %v1522_v16  ;;  %v1670_v23 = vshrl.u32 %v1522_v16, 16  ;;  %v1671_v24 = vshrl.u32 %v1658_v14, 16  ;;  %v1678_v31 = vshrl.u32 %v1523_v15, 16 }
 0x304   : > { %v1679_v32 = vshrl.u32 %v1659_v17, 16  ;;  %v1676_v35 = vpack.i.b16 %v1659_v17, %v1523_v15  ;;  %v1686_v52 = vshrl.u32 %v1524_v27, 16  ;;  %v1687_v53 = vshrl.u32 %v1660_v34, 16 }
 0x305   : > { %1730 = vxpose.xlu0.c.b16.start.end [1/1] (short) (narrow) %v1668_v22, 16  ;;  %v1672_v30 = vpack.i.b16 %v1671_v24, %v1670_v23  ;;  %v1684_v55 = vpack.i.b16 %v1660_v34, %v1524_v27  ;;  %v1694_v59 = vshrl.u32 %v1525_v47, 16  ;;  %v1695_v0 = vshrl.u32 %v1661_v54, 16 }
 0x306   : > { %v1680_v33 = vpack.i.b16 %v1679_v32, %v1678_v31  ;;  %v1688_v62 = vpack.i.b16 %v1687_v53, %v1686_v52  ;;  %v1526_v2 = vcombine.low %v1482_v56, %v1514_v50  ;;  %v1662_v3 = vcombine.low %v1618_v57, %v1650_v51 }
 0x307   : > { %1746 = vxpose.xlu1.c.b16.start.end [1/1] (short) (narrow) %v1672_v30, 16  ;;  %v1475_v5 = vcombine.high %v1409_v26, %v9182_v46  ;;  %v1692_v6 = vpack.i.b16 %v1661_v54, %v1525_v47  ;;  %v1611_v7 = vcombine.high %v1545_v19, %v9189_v63  ;;  %v1527_v8 = vcombine.high %v1482_v56, %v1514_v50 }
 0x308   : > { %v1521_v11 = vrot.slane %v1507_v60, %v9147_v4  ;;  %v1657_v13 = vrot.slane %v1643_v61, %v9147_v4  ;;  %v1696_v16 = vpack.i.b16 %v1695_v0, %v1694_v59  ;;  %v1702_v10 = vshrl.u32 %v1526_v2, 16 }
 0x309   : > { %1762 = vxpose.xlu0.c.b16.start.end [1/1] (short) (narrow) %v1676_v35, 16  ;;  %v1703_v9 = vshrl.u32 %v1662_v3, 16  ;;  %v1663_v14 = vcombine.high %v1618_v57, %v1650_v51  ;;  %v1489_v15 = vrot.slane %v1475_v5, %v9147_v4  ;;  %v1700_v17 = vpack.i.b16 %v1662_v3, %v1526_v2  ;;  %v9221_v35 = vpop.f32.mrf.mxu0 }
 0x30a   : > { %v1625_v46 = vrot.slane %v1611_v7, %v9147_v4  ;;  %v1710_v20 = vshrl.u32 %v1527_v8, 16  ;;  %v627_v47 = vcombine.high %v9125_v43, %v9135_v45  ;;  %v558_v51 = vcombine.low %v9115_v40, %v9121_v42 }
 0x30b   : > { %1778 = vxpose.xlu1.c.b16.start.end [1/1] (short) (narrow) %v1680_v33, 16  ;;  %v1528_v63 = vcombine.low %v1489_v15, %v1521_v11  ;;  %v1704_v19 = vpack.i.b16 %v1703_v9, %v1702_v10  ;;  %v1711_v1 = vshrl.u32 %v1663_v14, 16  ;;  %v1708_v22 = vpack.i.b16 %v1663_v14, %v1527_v8 }
 0x30c   : > { %v1664_v21 = vcombine.low %v1625_v46, %v1657_v13  ;;  %v1529_v26 = vcombine.high %v1489_v15, %v1521_v11  ;;  %v1665_v27 = vcombine.high %v1625_v46, %v1657_v13  ;;  %v559_v33 = vcombine.high %v9115_v40, %v9121_v42 }
 0x30d   : > { %1794 = vxpose.xlu0.c.b16.start.end [1/1] (short) (narrow) %v1684_v55, 16  ;;  %v1718_v23 = vshrl.u32 %v1528_v63, 16  ;;  %v1712_v24 = vpack.i.b16 %v1711_v1, %v1710_v20  ;;  %v610_v52 = vcombine.low %v9103_v39, %v9131_v44  ;;  %v611_v53 = vcombine.high %v9103_v39, %v9131_v44 }
 0x30e   : > { %v1719_v25 = vshrl.u32 %v1664_v21, 16  ;;  %v1716_v28 = vpack.i.b16 %v1664_v21, %v1528_v63  ;;  %v1726_v30 = vshrl.u32 %v1529_v26, 16  ;;  %v1727_v31 = vshrl.u32 %v1665_v27, 16 }
 0x30f   : > { %1810 = vxpose.xlu1.c.b16.start.end [1/1] (short) (narrow) %v1688_v62, 16  ;;  %v1724_v32 = vpack.i.b16 %v1665_v27, %v1529_v26  ;;  %v542_v55 = vcombine.low %v9093_v37, %v9119_v41  ;;  %v543_v43 = vcombine.high %v9093_v37, %v9119_v41  ;;  %v634_v45 = vrot.slane %v626_v49, %v9140_v58 }
 0x310   : > { %v1720_v29 = vpack.i.b16 %v1719_v25, %v1718_v23  ;;  %v1728_v34 = vpack.i.b16 %v1727_v31, %v1726_v30  ;;  %v641_v56 = vrot.slane %v627_v47, %v9140_v58  ;;  %v566_v40 = vrot.slane %v558_v51, %v9140_v58 }
 0x311   : > { %1826 = vxpose.xlu0.c.b16.start.end [1/1] (short) (narrow) %v1692_v6, 16  ;;  %v573_v42 = vrot.slane %v559_v33, %v9140_v58  ;;  %v618_v59 = vrot.slane %v610_v52, %v9140_v58  ;;  %v625_v39 = vrot.slane %v611_v53, %v9140_v58  ;;  %v550_v60 = vrot.slane %v542_v55, %v9140_v58 }
 0x312   : > { %v557_v61 = vrot.slane %v543_v43, %v9140_v58 }
 0x313   : > { %1842 = vxpose.xlu1.c.b16.start.end [1/1] (short) (narrow) %v1696_v16, 16  ;;  %v642_v37 = vcombine.low %v618_v59, %v634_v45  ;;  %v643_v41 = vcombine.high %v618_v59, %v634_v45  ;;  %v658_v62 = vcombine.low %v625_v39, %v641_v56  ;;  %v659_v0 = vcombine.high %v625_v39, %v641_v56 }
 0x314   : > { %v574_v3 = vcombine.low %v550_v60, %v566_v40  ;;  %v575_v5 = vcombine.high %v550_v60, %v566_v40  ;;  %v590_v6 = vcombine.low %v557_v61, %v573_v42  ;;  %v591_v7 = vcombine.high %v557_v61, %v573_v42 }
 0x315   : > { %1858 = vxpose.xlu0.c.b16.start.end [1/1] (short) (narrow) %v1700_v17, 16  ;;  %v650_v11 = vrot.slane %v642_v37, %v9147_v4  ;;  %v657_v13 = vrot.slane %v643_v41, %v9147_v4  ;;  %v666_v16 = vrot.slane %v658_v62, %v9147_v4  ;;  %v673_v10 = vrot.slane %v659_v0, %v9147_v4 }
 0x316   : > { %v582_v14 = vrot.slane %v574_v3, %v9147_v4  ;;  %v589_v15 = vrot.slane %v575_v5, %v9147_v4  ;;  %v598_v17 = vrot.slane %v590_v6, %v9147_v4  ;;  %v605_v46 = vrot.slane %v591_v7, %v9147_v4 }
 0x317   : > { %1874 = vxpose.xlu1.c.b16.start.end [1/1] (short) (narrow) %v1704_v19, 16  ;;  %v674_v19 = vcombine.high %v650_v11, %v8926_v36  ;;  %v675_v20 = vcombine.high %v657_v13, %v8926_v36  ;;  %v676_v1 = vcombine.high %v666_v16, %v8926_v36  ;;  %v677_v21 = vcombine.high %v673_v10, %v8926_v36 }
 0x318   : > { %v606_v23 = vcombine.high %v582_v14, %v8926_v36  ;;  %v608_v25 = vcombine.high %v598_v17, %v8926_v36  ;;  %v609_v26 = vcombine.high %v605_v46, %v8926_v36  ;;  %v8248_v49 = vpack.c.bf16 %v666_v16, %v650_v11 }
 0x319   : > { %1890 = vxpose.xlu0.c.b16.start.end [1/1] (short) (narrow) %v1708_v22, 16  ;;  %v8249_v47 = vpack.c.bf16 %v673_v10, %v657_v13  ;;  %v8246_v33 = vpack.c.bf16 %v598_v17, %v582_v14  ;;  %v8247_v55 = vpack.c.bf16 %v605_v46, %v589_v15 }
 0x31a   : > { %v1049_v59 = vrot.slane %v8248_v49, %v9140_v58 }
 0x31b   : > { %1906 = vxpose.xlu1.c.b16.start.end [1/1] (short) (narrow) %v1712_v24, 16  ;;  %v607_v24 = vcombine.high %v589_v15, %v8926_v36  ;;  %v1057_v39 = vrot.slane %v8249_v47, %v9140_v58  ;;  %v1033_v0 = vrot.slane %v8246_v33, %v9140_v58 }
 0x31d   : > { %1922 = vxpose.xlu0.c.b16.start.end [1/1] (short) (narrow) %v1716_v28, 16  ;;  %v8252_v28 = vpack.c.bf16 %v676_v1, %v674_v19  ;;  %v1066_v11 = vcombine.low %v1049_v59, %v1057_v39 }
 0x31f   : > { %1938 = vxpose.xlu1.c.b16.start.end [1/1] (short) (narrow) %v1720_v29, 16  ;;  %v8253_v29 = vpack.c.bf16 %v677_v21, %v675_v20  ;;  %v1099_v56 = vrot.slane %v8252_v28, %v9140_v58  ;;  %v1073_v20 = vrot.slane %v1066_v11, %v9147_v4 }
 0x321   : > { %1954 = vxpose.xlu0.c.b16.start.end [1/1] (short) (narrow) %v1724_v32, 16  ;;  %v8250_v32 = vpack.c.bf16 %v608_v25, %v606_v23  ;;  %v1107_v40 = vrot.slane %v8253_v29, %v9140_v58 }
 0x323   : > { %1970 = vxpose.xlu1.c.b16.start.end [1/1] (short) (narrow) %v1728_v34, 16  ;;  %v8251_v34 = vpack.c.bf16 %v609_v26, %v607_v24  ;;  %v1116_v3 = vcombine.low %v1099_v56, %v1107_v40 }
 0x325   : > { %v1123_v17 = vrot.slane %v1116_v3, %v9147_v4 }
 0x327   : > { %842 = vrot.lane.b32.xlu1 %v9221_v35, %s8928_s11 }
 0x32a   : > { %840 = vrot.lane.b32.xlu0 %v9099_v38, %s8928_s11 }
 0x32b   : > { %846 = vrot.lane.b32.xlu1 %v9099_v38, %s10448_s30 }
 0x32e   : > { %848 = vrot.lane.b32.xlu0 %v9221_v35, %s10448_s30 }
 0x32f   : > { %852 = vrot.lane.b32.xlu1 %v9099_v38, %s10443_s18 }
 0x332   : > { %854 = vrot.lane.b32.xlu0 %v9221_v35, %s10443_s18  ;;  %s10445_s18 = smov 48  }
 0x367   : > { %v9235_v48 = vpop.trf.xlu0 }
 0x369   : > { %v9241_v50 = vpop.trf.xlu1 }
 0x36b   : > { %v1770_v54 = vpop.trf.xlu0 }
 0x36d   : > { %v9257_v57 = vpop.trf.xlu1 }
 0x36f   : > { %v1802_v44 = vpop.trf.xlu0 }
 0x370   : > { %v1986_v52 = vcombine.low %v9235_v48, %v1802_v44  ;;  %v1083_v48 = vrot.slane %v8250_v32, %v9140_v58 }
 0x371   : > { %v1818_v2 = vpop.trf.xlu1 }
 0x372   : > { %v2036_v43 = vcombine.low %v9241_v50, %v1818_v2  ;;  %v1993_v44 = vrot.slane %v1986_v52, %v9140_v58  ;;  %v1041_v2 = vrot.slane %v8247_v55, %v9140_v58 }
 0x373   : > { %v1834_v8 = vpop.trf.xlu0 }
 0x374   : > { %v1994_v31 = vcombine.low %v1770_v54, %v1834_v8  ;;  %v2043_v41 = vrot.slane %v2036_v43, %v9140_v58  ;;  %v1058_v15 = vcombine.low %v1033_v0, %v1041_v2 }
 0x375   : > { %v1850_v9 = vpop.trf.xlu1 }
 0x376   : > { %v2044_v53 = vcombine.low %v9257_v57, %v1850_v9  ;;  %v2001_v54 = vrot.slane %v1994_v31, %v9140_v58  ;;  %v1091_v57 = vrot.slane %v8251_v34, %v9140_v58  ;;  %v1065_v24 = vrot.slane %v1058_v15, %v9147_v4 }
 0x377   : > { %v1866_v63 = vpop.trf.xlu0 }
 0x378   : > { %v2051_v50 = vrot.slane %v2044_v53, %v9140_v58  ;;  %v2018_v5 = vcombine.low %v1993_v44, %v2001_v54  ;;  %v1108_v13 = vcombine.low %v1083_v48, %v1091_v57  ;;  %v1075_v29 = vcombine.high %v1065_v24, %v1073_v20 }
 0x379   : > { %v1882_v22 = vpop.trf.xlu1  ;;  %v1074_v47 = vcombine.low %v1065_v24, %v1073_v20 }
 0x37a   : > { %v2068_v16 = vcombine.low %v2043_v41, %v2051_v50  ;;  %v1115_v1 = vrot.slane %v1108_v13, %v9147_v4  ;;  %v1135_v55 = vshrl.u32 %v1075_v29, 16 }
 0x37b   : > { %v1898_v27 = vpop.trf.xlu0  ;;  %v1129_v40 = vshrl.u32 %v1074_v47, 16 }
 0x37c   : > { %v1125_v25 = vcombine.high %v1115_v1, %v1123_v17 }
 0x37d   : > { %v1914_v30 = vpop.trf.xlu1 }
 0x37e   : > { %v1134_v41 = vpack.i.b16 %v1125_v25, %v1075_v29 }
 0x37f   : > { %v1930_v51 = vpop.trf.xlu0 }
 0x380   : > { %v2002_v42 = vcombine.low %v1866_v63, %v1930_v51  ;;  %v2025_v63 = vrot.slane %v2018_v5, %v9147_v4  ;;  %v1136_v51 = vshrl.u32 %v1125_v25, 16 }
 0x381   : > { %v1946_v45 = vpop.trf.xlu1 }
 0x382   : > { %v2052_v61 = vcombine.low %v1882_v22, %v1946_v45  ;;  %v2009_v6 = vrot.slane %v2002_v42, %v9140_v58  ;;  %v2075_v22 = vrot.slane %v2068_v16, %v9147_v4  ;;  %v1137_v45 = vpack.i.b16 %v1136_v51, %v1135_v55 }
 0x383   : > { %v1962_v60 = vpop.trf.xlu0 }
 0x384   : > { %v2010_v37 = vcombine.low %v1898_v27, %v1962_v60  ;;  %v2059_v10 = vrot.slane %v2052_v61, %v9140_v58 }
 0x385   : > { %v1978_v62 = vpop.trf.xlu1 }
 0x386   : > { %v2017_v7 = vrot.slane %v2010_v37, %v9140_v58  ;;  %v2060_v8 = vcombine.low %v1914_v30, %v1978_v62  ;;  %v1124_v30 = vcombine.low %v1115_v1, %v1123_v17 }
 0x388   : > { %v2026_v9 = vcombine.low %v2009_v6, %v2017_v7  ;;  %v2067_v14 = vrot.slane %v2060_v8, %v9140_v58  ;;  %v1128_v53 = vpack.i.b16 %v1124_v30, %v1074_v47  ;;  %v1130_v56 = vshrl.u32 %v1124_v30, 16 }
 0x38a   : > { %v2076_v46 = vcombine.low %v2059_v10, %v2067_v14  ;;  %v2033_v19 = vrot.slane %v2026_v9, %v9147_v4  ;;  %v1131_v42 = vpack.i.b16 %v1130_v56, %v1129_v40 }
 0x38c   : > { %v2035_v21 = vcombine.high %v2025_v63, %v2033_v19  ;;  %v2083_v23 = vrot.slane %v2076_v46, %v9147_v4  ;;  %v2034_v26 = vcombine.low %v2025_v63, %v2033_v19 }
 0x38e   : > { %v2084_v27 = vcombine.low %v2075_v22, %v2083_v23  ;;  %v2085_v28 = vcombine.high %v2075_v22, %v2083_v23  ;;  %v2098_v34 = vshrl.u32 %v2035_v21, 16  ;;  %v2090_v33 = vshrl.u32 %v2034_v26, 16 }
 0x390   : > { %v2088_v31 = vpack.i.b16 %v2084_v27, %v2034_v26  ;;  %v2091_v32 = vshrl.u32 %v2084_v27, 16  ;;  %v2099_v49 = vshrl.u32 %v2085_v28, 16  ;;  %v2096_v39 = vpack.i.b16 %v2085_v28, %v2035_v21 }
 0x392   : > { %8455 = vmatpush3.bf16.msra.mxu1 %v2088_v31  ;;  %v2100_v52 = vpack.i.b16 %v2099_v49, %v2098_v34  ;;  %v2092_v43 = vpack.i.b16 %v2091_v32, %v2090_v33 }
 0x393   : > { %8460 = vmatprep.subr.bf16.mxu1 %v8926_v36 }
 0x394   : > { %8473 = vmatpush3.bf16.msra.mxu0 %v2100_v52 }
 0x395   : > { %8457 = vmatmul.mubr.msk.bf16.vlgmr.msra.gmra.mxu1 %vm2102_vm2, %v1128_v53  ;;  %8484 = vmatprep.subr.bf16.mxu0 %v8926_v36 }
 0x396   : > { %8461 = vmatpush3.bf16.msra.mxu1 %v2092_v43  ;;  %8462 = vmatprep.mubr.msk.bf16.mxu1 %vm8933_vm1, %v8926_v36 }
 0x397   : > { %8475 = vmatmul.mubr.msk.bf16.vlgmr.msra.gmra.mxu0 %vm2102_vm2, %v1137_v45  ;;  %8466 = vmatprep.subr.bf16.mxu1 %v8926_v36 }
 0x398   : > { %8486 = vmatprep.mubr.msk.bf16.mxu0 %vm8933_vm1, %v8926_v36 }
 0x399   : > { %v843_v54 = vpop.permute.xlu1 %842 }
 0x39c   : > { %v841_v59 = vpop.permute.xlu0 %840 }
 0x39d   : > { %8463 = vmatmul.mubr.msk.bf16.vlgmr.msra.gmra.mxu1 %vm2102_vm2, %v1131_v42  ;;  %v847_v60 = vpop.permute.xlu1 %846 }
 0x39e   : > { %8467 = vmatpush3.bf16.msra.mxu1 %v2096_v39  ;;  %8468 = vmatprep.mubr.msk.bf16.mxu1 %vm8933_vm1, %v8926_v36  ;;  %v858_v48 = vcombine.low %v9099_v38, %v847_v60  ;;  %v859_v57 = vcombine.high %v9099_v38, %v847_v60 }
 0x39f   : > { %8478 = vmatprep.subr.bf16.mxu1 %v8926_v36 }
 0x3a0   : > { %v849_v44 = vpop.permute.xlu0 %848  ;;  %v866_v62 = vrot.slane %v858_v48, %v9140_v58  ;;  %v873_v0 = vrot.slane %v859_v57, %v9140_v58 }
 0x3a1   : > { %v853_v50 = vpop.permute.xlu1 %852  ;;  %v926_v11 = vcombine.low %v9221_v35, %v849_v44  ;;  %v927_v24 = vcombine.high %v9221_v35, %v849_v44 }
 0x3a2   : > { %v874_v61 = vcombine.low %v841_v59, %v853_v50  ;;  %v875_v37 = vcombine.high %v841_v59, %v853_v50 }
 0x3a3   : > { %v934_v63 = vrot.slane %v926_v11, %v9140_v58  ;;  %v941_v31 = vrot.slane %v927_v24, %v9140_v58 }
 0x3a4   : > { %v882_v2 = vrot.slane %v874_v61, %v9140_v58  ;;  %v889_v3 = vrot.slane %v875_v37, %v9140_v58  ;;  %v855_v5 = vpop.permute.xlu0 %854 }
 0x3a5   : > { %v942_v6 = vcombine.low %v843_v54, %v855_v5  ;;  %8469 = vmatmul.mubr.msk.bf16.vlgmr.msra.gmra.mxu1 %vm2102_vm2, %v1134_v41  ;;  %v943_v20 = vcombine.high %v843_v54, %v855_v5 }
 0x3a6   : > { %v890_v7 = vcombine.low %v866_v62, %v882_v2  ;;  %v891_v8 = vcombine.high %v866_v62, %v882_v2  ;;  %v906_v38 = vcombine.low %v873_v0, %v889_v3  ;;  %8480 = vmatprep.mubr.msk.bf16.mxu1 %vm8933_vm1, %v8926_v36  ;;  %v907_v9 = vcombine.high %v873_v0, %v889_v3 }
 0x3a7   : > { %v950_v10 = vrot.slane %v942_v6, %v9140_v58  ;;  %v957_v26 = vrot.slane %v943_v20, %v9140_v58 }
 0x3a8   : > { %v898_v13 = vrot.slane %v890_v7, %v9147_v4  ;;  %v905_v16 = vrot.slane %v891_v8, %v9147_v4  ;;  %v914_v46 = vrot.slane %v906_v38, %v9147_v4  ;;  %v921_v22 = vrot.slane %v907_v9, %v9147_v4 }
 0x3a9   : > { %v958_v23 = vcombine.low %v934_v63, %v950_v10  ;;  %v959_v30 = vcombine.high %v934_v63, %v950_v10  ;;  %v974_v47 = vcombine.low %v941_v31, %v957_v26  ;;  %v975_v55 = vcombine.high %v941_v31, %v957_v26 }
 0x3aa   : > { %v2371_v14 = vpack.c.bf16 %v898_v13, %v898_v13  ;;  %v922_v15 = vcombine.high %v898_v13, %v8926_v36  ;;  %v923_v17 = vcombine.high %v905_v16, %v8926_v36  ;;  %v924_v21 = vcombine.high %v914_v46, %v8926_v36 }
 0x3ab   : > { %v2373_v25 = vpack.c.bf16 %v905_v16, %v905_v16  ;;  %v925_v28 = vcombine.high %v921_v22, %v8926_v36  ;;  %v966_v29 = vrot.slane %v958_v23, %v9147_v4  ;;  %v2375_v32 = vpack.c.bf16 %v914_v46, %v914_v46 }
 0x3ac   : > { %2387 = vxpose.xlu1.c.b16.start.end [1/1] (short) (narrow) %v2371_v14, 16  ;;  %v2372_v19 = vpack.c.bf16 %v922_v15, %v922_v15  ;;  %v2374_v1 = vpack.c.bf16 %v923_v17, %v923_v17  ;;  %v2376_v27 = vpack.c.bf16 %v924_v21, %v924_v21  ;;  %v973_v35 = vrot.slane %v959_v30, %v9147_v4 }
 0x3ad   : > { %v2378_v34 = vpack.c.bf16 %v925_v28, %v925_v28  ;;  %v990_v49 = vcombine.high %v966_v29, %v8926_v36  ;;  %v2377_v51 = vpack.c.bf16 %v921_v22, %v921_v22  ;;  %v982_v53 = vrot.slane %v974_v47, %v9147_v4 }
 0x3ae   : > { %2403 = vxpose.xlu0.c.b16.start.end [1/1] (short) (narrow) %v2372_v19, 16  ;;  %v991_v52 = vcombine.high %v973_v35, %v8926_v36  ;;  %v2379_v43 = vpack.c.bf16 %v966_v29, %v966_v29  ;;  %v989_v40 = vrot.slane %v975_v55, %v9147_v4  ;;  %v2381_v54 = vpack.c.bf16 %v973_v35, %v973_v35 }
 0x3af   : > { %v2380_v33 = vpack.c.bf16 %v990_v49, %v990_v49  ;;  %v992_v56 = vcombine.high %v982_v53, %v8926_v36  ;;  %v2383_v39 = vpack.c.bf16 %v982_v53, %v982_v53 }
 0x3b0   : > { %2435 = vxpose.xlu1.c.b16.start.end [1/1] (short) (narrow) %v2374_v1, 16  ;;  %v2382_v45 = vpack.c.bf16 %v991_v52, %v991_v52  ;;  %v993_v59 = vcombine.high %v989_v40, %v8926_v36  ;;  %v2385_v48 = vpack.c.bf16 %v989_v40, %v989_v40 }
 0x3b1   : > { %v2384_v42 = vpack.c.bf16 %v992_v56, %v992_v56 }
 0x3b2   : > { %2419 = vxpose.xlu0.c.b16.start.end [1/1] (short) (narrow) %v2373_v25, 16  ;;  %v2386_v60 = vpack.c.bf16 %v993_v59, %v993_v59 }
 0x3b4   : > { %2467 = vxpose.xlu1.c.b16.start.end [1/1] (short) (narrow) %v2376_v27, 16 }
 0x3b6   : > { %2451 = vxpose.xlu0.c.b16.start.end [1/1] (short) (narrow) %v2375_v32, 16 }
 0x3b8   : > { %2499 = vxpose.xlu1.c.b16.start.end [1/1] (short) (narrow) %v2378_v34, 16 }
 0x3ba   : > { %2483 = vxpose.xlu0.c.b16.start.end [1/1] (short) (narrow) %v2377_v51, 16 }
 0x3bc   : > { %2531 = vxpose.xlu1.c.b16.start.end [1/1] (short) (narrow) %v2380_v33, 16 }
 0x3be   : > { %2515 = vxpose.xlu0.c.b16.start.end [1/1] (short) (narrow) %v2379_v43, 16 }
 0x3c0   : > { %2563 = vxpose.xlu1.c.b16.start.end [1/1] (short) (narrow) %v2382_v45, 16 }
 0x3c2   : > { %2547 = vxpose.xlu0.c.b16.start.end [1/1] (short) (narrow) %v2381_v54, 16 }
 0x3c4   : > { %2595 = vxpose.xlu1.c.b16.start.end [1/1] (short) (narrow) %v2384_v42, 16 }
 0x3c6   : > { %2579 = vxpose.xlu0.c.b16.start.end [1/1] (short) (narrow) %v2383_v39, 16 }
 0x3c8   : > { %2627 = vxpose.xlu1.c.b16.start.end [1/1] (short) (narrow) %v2386_v60, 16 }
 0x3ca   : > { %2611 = vxpose.xlu0.c.b16.start.end [1/1] (short) (narrow) %v2385_v48, 16 }
 0x40e   : > { %v2395_v57 = vpop.trf.xlu1 }
 0x410   : > { %v2411_v44 = vpop.trf.xlu0 }
 0x412   : > { %v2443_v50 = vpop.trf.xlu1 }
 0x414   : > { %v2427_v61 = vpop.trf.xlu0 }
 0x416   : > { %v2475_v37 = vpop.trf.xlu1 }
 0x417   : > { %v2779_v41 = vcombine.low %v2411_v44, %v2475_v37  ;;  %v2780_v19 = vcombine.high %v2411_v44, %v2475_v37 }
 0x418   : > { %v2459_v62 = vpop.trf.xlu0 }
 0x419   : > { %v2643_v0 = vcombine.low %v2395_v57, %v2459_v62  ;;  %v2787_v3 = vrot.slane %v2779_v41, %v9140_v58  ;;  %v2644_v25 = vcombine.high %v2395_v57, %v2459_v62  ;;  %v9358_v30 = vrot.slane %v2780_v19, %v9140_v58 }
 0x41a   : > { %v2507_v2 = vpop.trf.xlu1 }
 0x41b   : > { %v2795_v5 = vcombine.low %v2443_v50, %v2507_v2  ;;  %v2651_v7 = vrot.slane %v2643_v0, %v9140_v58  ;;  %v2796_v26 = vcombine.high %v2443_v50, %v2507_v2  ;;  %v9370_v43 = vrot.slane %v2644_v25, %v9140_v58 }
 0x41c   : > { %v2491_v6 = vpop.trf.xlu0 }
 0x41d   : > { %v2803_v8 = vrot.slane %v2795_v5, %v9140_v58  ;;  %v2659_v38 = vcombine.low %v2427_v61, %v2491_v6  ;;  %v2660_v27 = vcombine.high %v2427_v61, %v2491_v6  ;;  %v9373_v45 = vrot.slane %v2796_v26, %v9140_v58 }
 0x41e   : > { %v2539_v11 = vpop.trf.xlu1 }
 0x41f   : > { %v2844_v13 = vcombine.high %v2787_v3, %v2803_v8  ;;  %v2667_v16 = vrot.slane %v2659_v38, %v9140_v58  ;;  %v2843_v29 = vcombine.low %v2787_v3, %v2803_v8  ;;  %v9376_v56 = vrot.slane %v2660_v27, %v9140_v58 }
 0x420   : > { %v2523_v10 = vpop.trf.xlu0 }
 0x421   : > { %v2708_v9 = vcombine.high %v2651_v7, %v2667_v16  ;;  %v2707_v53 = vcombine.low %v2651_v7, %v2667_v16  ;;  %v2851_v40 = vrot.slane %v2843_v29, %v9147_v4  ;;  %v2858_v57 = vrot.slane %v2844_v13, %v9147_v4 }
 0x422   : > { %v2571_v14 = vpop.trf.xlu1  ;;  %v2724_v6 = vcombine.high %v9370_v43, %v9376_v56  ;;  %v2860_v7 = vcombine.high %v9358_v30, %v9373_v45 }
 0x423   : > { %v2715_v50 = vrot.slane %v2707_v53, %v9147_v4  ;;  %v2722_v62 = vrot.slane %v2708_v9, %v9147_v4  ;;  %v384_v53 = vld [vmem:[%s10431_s1 + $0x30] sm:$0xff] }
 0x424   : > { %v2555_v15 = vpop.trf.xlu0 }
 0x426   : > { %v2603_v17 = vpop.trf.xlu1 }
 0x427   : > { %v2811_v46 = vcombine.low %v2539_v11, %v2603_v17  ;;  %v2812_v1 = vcombine.high %v2539_v11, %v2603_v17 }
 0x428   : > { %v2587_v63 = vpop.trf.xlu0 }
 0x429   : > { %v2675_v20 = vcombine.low %v2523_v10, %v2587_v63  ;;  %v2819_v22 = vrot.slane %v2811_v46, %v9140_v58  ;;  %v9363_v49 = vrot.slane %v2812_v1, %v9140_v58  ;;  %v2676_v35 = vcombine.high %v2523_v10, %v2587_v63 }
 0x42a   : > { %v2635_v21 = vpop.trf.xlu1 }
 0x42b   : > { %v2827_v23 = vcombine.low %v2571_v14, %v2635_v21  ;;  %v2828_v24 = vcombine.high %v2571_v14, %v2635_v21  ;;  %v2683_v31 = vrot.slane %v2675_v20, %v9140_v58  ;;  %v9382_v60 = vrot.slane %v2676_v35, %v9140_v58 }
 0x42c   : > { %v2619_v28 = vpop.trf.xlu0 }
 0x42d   : > { %v2835_v32 = vrot.slane %v2827_v23, %v9140_v58  ;;  %v2691_v34 = vcombine.low %v2555_v15, %v2619_v28  ;;  %v9366_v47 = vrot.slane %v2828_v24, %v9140_v58  ;;  %v2692_v51 = vcombine.high %v2555_v15, %v2619_v28 }
 0x42e   : > { %v9422_v23 = vrot.slane %v2724_v6, %v9147_v4  ;;  %v9425_v24 = vrot.slane %v2860_v7, %v9147_v4 }
 0x42f   : > { %v2876_v33 = vcombine.high %v2819_v22, %v2835_v32  ;;  %v2699_v52 = vrot.slane %v2691_v34, %v9140_v58  ;;  %v2875_v55 = vcombine.low %v2819_v22, %v2835_v32  ;;  %v9385_v48 = vrot.slane %v2692_v51, %v9140_v58 }
 0x430   : > { %v2892_v44 = vcombine.high %v9363_v49, %v9366_v47 }
 0x431   : > { %v2740_v54 = vcombine.high %v2683_v31, %v2699_v52  ;;  %v2739_v42 = vcombine.low %v2683_v31, %v2699_v52  ;;  %v2883_v59 = vrot.slane %v2875_v55, %v9147_v4  ;;  %v2890_v39 = vrot.slane %v2876_v33, %v9147_v4  ;;  %v378_v52 = vld [vmem:[%s10431_s1] sm:$0xff] }
 0x432   : > { %v2756_v11 = vcombine.high %v9382_v60, %v9385_v48  ;;  %v9409_v13 = vrot.slane %v2892_v44, %v9147_v4  ;;  %v9453_v55 = vadd.f32 %v9060_v12, %v378_v52 }
 0x433   : > { %v2747_v61 = vrot.slane %v2739_v42, %v9147_v4  ;;  %v2907_v37 = vcombine.low %v2851_v40, %v2883_v59  ;;  %v2754_v41 = vrot.slane %v2740_v54, %v9147_v4  ;;  %v9394_v0 = vcombine.low %v2858_v57, %v2890_v39 }
 0x434   : > { %v9396_v2 = vcombine.high %v2858_v57, %v2890_v39  ;;  %v2908_v14 = vcombine.high %v2851_v40, %v2883_v59  ;;  %v9430_v28 = vrot.slane %v2756_v11, %v9147_v4  ;;  %v9434_v29 = vcombine.high %v9425_v24, %v9409_v13  ;;  %v379_v40 = vld [vmem:[%s10431_s1 + $0x8] sm:$0xff]  ;;  %v385_v59 = vld [vmem:[%s10431_s1 + $0x38] sm:$0xff] }
 0x435   : > { %v2771_v3 = vcombine.low %v2715_v50, %v2747_v61  ;;  %v2772_v5 = vcombine.high %v2715_v50, %v2747_v61  ;;  %v9402_v8 = vcombine.low %v2722_v62, %v2754_v41  ;;  %v9404_v38 = vcombine.high %v2722_v62, %v2754_v41  ;;  %v380_v61 = vld [vmem:[%s10431_s1 + $0x10] sm:$0xff] }
 0x436   : > { %v2920_v9 = vshrl.u32 %v2907_v37, 16  ;;  %v2936_v46 = vshrl.u32 %v9394_v0, 16  ;;  %v2944_v21 = vshrl.u32 %v9396_v2, 16  ;;  %v2928_v26 = vshrl.u32 %v2908_v14, 16 }
 0x437   : > { %v2917_v16 = vpack.i.b16 %v2907_v37, %v2771_v3  ;;  %v2919_v10 = vshrl.u32 %v2771_v3, 16  ;;  %v2933_v15 = vpack.i.b16 %v9394_v0, %v9402_v8  ;;  %v2935_v17 = vshrl.u32 %v9402_v8, 16 }
 0x438   : > { %v2941_v63 = vpack.i.b16 %v9396_v2, %v9404_v38  ;;  %v2927_v20 = vshrl.u32 %v2772_v5, 16  ;;  %v2943_v1 = vshrl.u32 %v9404_v38, 16  ;;  %v2925_v25 = vpack.i.b16 %v2908_v14, %v2772_v5 }
 0x439   : > { %2979 = vxpose.xlu0.c.b16.start.end [1/1] (short) (narrow) %v2917_v16, 16  ;;  %v2921_v19 = vpack.i.b16 %v2920_v9, %v2919_v10  ;;  %v9419_v22 = vpack.i.b16 %v2936_v46, %v2935_v17  ;;  %v9438_v32 = vcombine.high %v9422_v23, %v9430_v28  ;;  %v2976_v51 = vshrl.u32 %v9434_v29, 16  ;;  %v381_v10 = vld [vmem:[%s10431_s1 + $0x18] sm:$0xff] }
 0x43a   : > { %v9427_v27 = vpack.i.b16 %v2944_v21, %v2943_v1  ;;  %v2929_v31 = vpack.i.b16 %v2928_v26, %v2927_v20  ;;  %v9459_v54 = vadd.f32 %v9060_v12, %v384_v53  ;;  %v9468_v57 = vadd.f32 %v9060_v12, %v379_v40 }
 0x43b   : > { %2995 = vxpose.xlu1.c.b16.start.end [1/1] (short) (narrow) %v2921_v19, 16  ;;  %v2973_v34 = vpack.i.b16 %v9434_v29, %v9438_v32  ;;  %v2975_v35 = vshrl.u32 %v9438_v32, 16  ;;  %v9479_v62 = vadd.f32 %v9060_v12, %v385_v59  ;;  %v9485_v7 = vadd.f32 %v9060_v12, %v380_v61  ;;  %v383_v61 = vld [vmem:[%s10431_s1 + $0x28] sm:$0xff] }
 0x43c   : > { %v9501_v1 = vadd.f32 %v9060_v12, %v381_v10  ;;  %v2913_v2 = vcombine.low %v9425_v24, %v9409_v13 }
 0x43d   : > { %3011 = vxpose.xlu0.c.b16.start.end [1/1] (short) (narrow) %v2925_v25, 16  ;;  %v9444_v33 = vpack.i.b16 %v2976_v51, %v2975_v35 }
 0x43f   : > { %3027 = vxpose.xlu1.c.b16.start.end [1/1] (short) (narrow) %v2929_v31, 16 }
 0x455   : > { %v2140_v42 = vpop.f32.mrf.mxu1 }
 0x456   : > { %v9465_v39 = vadd.f32 %v2140_v42, %v9453_v55 }
 0x457   : > { %v8458_v44 = vpop.f32.mrf.mxu1  ;;  %v2272_v50 = vpop.f32.mrf.mxu0 }
 0x458   : > { %v9474_v37 = vadd.f32 %v2272_v50, %v9459_v54  ;;  %v2279_v41 = vsel %vm2102_vm2, %v9465_v39, -inf  ;;  %v382_v44 = vld [vmem:[%s10431_s1 + $0x20] sm:$0xff] }
 0x459   : > { %v2143_v3 = vpop.f32.mrf.mxu1  ;;  %2280 = vmax.xlane.f32.xlu0 %v2279_v41  ;;  %v8476_v5 = vpop.f32.mrf.mxu0  ;;  %v9519_v50 = vadd.f32 %v9060_v12, %v382_v44 }
 0x45a   : > { %v9482_v6 = vadd.f32 %v2143_v3, %v9468_v57  ;;  %v2297_v17 = vsel %vm2102_vm2, %v9474_v37, -inf  ;;  %v9529_v3 = vadd.f32 %v9060_v12, %v383_v61  ;;  %v2723_v5 = vcombine.low %v9370_v43, %v9376_v56 }
 0x45b   : > { %v8459_v11 = vpop.f32.mrf.mxu1  ;;  %v2275_v16 = vpop.f32.mrf.mxu0  ;;  %v2891_v12 = vcombine.low %v9363_v49, %v9366_v47 }
 0x45c   : > { %v9491_v9 = vadd.f32 %v2275_v16, %v9479_v62  ;;  %v2282_v14 = vsel %vm2102_vm2, %v9482_v6, -inf  ;;  %v2859_v16 = vcombine.low %v9358_v30, %v9373_v45  ;;  %v2731_v10 = vrot.slane %v2723_v5, %v9147_v4 }
 0x45d   : > { %v2184_v46 = vpop.f32.mrf.mxu1  ;;  %2283 = vmax.xlane.f32.xlu1 %v2282_v14  ;;  %2298 = vmax.xlane.f32.xlu0 %v2297_v17  ;;  %v8477_v19 = vpop.f32.mrf.mxu0  ;;  %v2899_v14 = vrot.slane %v2891_v12, %v9147_v4 }
 0x45e   : > { %v9498_v20 = vadd.f32 %v2184_v46, %v9485_v7  ;;  %v2300_v26 = vsel %vm2102_vm2, %v9491_v9, -inf  ;;  %v2867_v46 = vrot.slane %v2859_v16, %v9147_v4  ;;  %v2777_v19 = vcombine.low %v9422_v23, %v9430_v28 }
 0x45f   : > { %v8464_v21 = vpop.f32.mrf.mxu1 }
 0x460   : > { %v2285_v25 = vsel %vm2102_vm2, %v9498_v20, -inf  ;;  %v2911_v43 = vcombine.low %v2867_v46, %v2899_v14  ;;  %v2912_v47 = vcombine.high %v2867_v46, %v2899_v14 }
 0x461   : > { %v2187_v31 = vpop.f32.mrf.mxu1  ;;  %2286 = vmax.xlane.f32.xlu0 %v2285_v25  ;;  %2301 = vmax.xlane.f32.xlu1 %v2300_v26  ;;  %v2967_v26 = vshrl.u32 %v2777_v19, 16 }
 0x462   : > { %v9508_v35 = vadd.f32 %v2187_v31, %v9501_v1  ;;  %v2952_v30 = vshrl.u32 %v2911_v43, 16  ;;  %v2960_v38 = vshrl.u32 %v2912_v47, 16 }
 0x463   : > { %v8465_v51 = vpop.f32.mrf.mxu1 }
 0x464   : > { %v2288_v52 = vsel %vm2102_vm2, %v9508_v35, -inf }
 0x465   : > { %v2228_v53 = vpop.f32.mrf.mxu1  ;;  %2289 = vmax.xlane.f32.xlu1 %v2288_v52 }
 0x466   : > { %v9526_v41 = vadd.f32 %v2228_v53, %v9519_v50 }
 0x467   : > { %v8470_v40 = vpop.f32.mrf.mxu1 }
 0x468   : > { %v2291_v8 = vsel %vm2102_vm2, %v9526_v41, -inf }
 0x469   : > { %v2231_v42 = vpop.f32.mrf.mxu1 }
 0x46a   : > { %v9532_v0 = vadd.f32 %v2231_v42, %v9529_v3 }
 0x46b   : > { %v8471_v59 = vpop.f32.mrf.mxu1 }
 0x48e   : > { %3043 = vxpose.xlu0.c.b16.start.end [1/1] (short) (narrow) %v2933_v15, 16  ;;  %v2294_v15 = vsel %vm2102_vm2, %v9532_v0, -inf }
 0x492   : > { %3059 = vxpose.xlu1.c.b16.start.end [1/1] (short) (narrow) %v9419_v22, 16  ;;  %v2755_v22 = vcombine.low %v9382_v60, %v9385_v48 }
 0x494   : > { %v2763_v11 = vrot.slane %v2755_v22, %v9147_v4 }
 0x496   : > { %v2775_v17 = vcombine.low %v2731_v10, %v2763_v11  ;;  %v2776_v60 = vcombine.high %v2731_v10, %v2763_v11 }
 0x498   : > { %v2949_v56 = vpack.i.b16 %v2911_v43, %v2775_v17  ;;  %v2951_v49 = vshrl.u32 %v2775_v17, 16  ;;  %v2957_v45 = vpack.i.b16 %v2912_v47, %v2776_v60  ;;  %v2959_v21 = vshrl.u32 %v2776_v60, 16 }
 0x49a   : > { %v2953_v48 = vpack.i.b16 %v2952_v30, %v2951_v49  ;;  %v2961_v25 = vpack.i.b16 %v2960_v38, %v2959_v21 }
 0x49b   : > { %2292 = vmax.xlane.f32.xlu0 %v2291_v8  ;;  %v9558_v51 = vpop.trf.xlu0 }
 0x49d   : > { %v9560_v52 = vpop.trf.xlu1 }
 0x49f   : > { %2295 = vmax.xlane.f32.xlu1 %v2294_v15  ;;  %v9562_v23 = vpop.trf.xlu0 }
 0x4a1   : > { %v9564_v28 = vpop.trf.xlu1 }
 0x4c8   : > { %3075 = vxpose.xlu0.c.b16.start.end [1/1] (short) (narrow) %v2941_v63, 16  ;;  %v2965_v63 = vpack.i.b16 %v2913_v2, %v2777_v19 }
 0x4cc   : > { %3107 = vxpose.xlu0.c.b16.start.end [1/1] (short) (narrow) %v2949_v56, 16  ;;  %3091 = vxpose.xlu1.c.b16.start.end [1/1] (short) (narrow) %v9427_v27, 16  ;;  %v2968_v27 = vshrl.u32 %v2913_v2, 16 }
 0x4ce   : > { %v2969_v31 = vpack.i.b16 %v2968_v27, %v2967_v26 }
 0x4d0   : > { %3139 = vxpose.xlu0.c.b16.start.end [1/1] (short) (narrow) %v2957_v45, 16  ;;  %3123 = vxpose.xlu1.c.b16.start.end [1/1] (short) (narrow) %v2953_v48, 16 }
 0x4d4   : > { %3171 = vxpose.xlu0.c.b16.start.end [1/1] (short) (narrow) %v2965_v63, 16  ;;  %3155 = vxpose.xlu1.c.b16.start.end [1/1] (short) (narrow) %v2961_v25, 16 }
 0x4d8   : > { %3187 = vxpose.xlu1.c.b16.start.end [1/1] (short) (narrow) %v2969_v31, 16 }
 0x4e2   : > { %v2281_v53 = vpop.xlane.xlu0 %2280 }
 0x4e3   : > { %v2303_v13 = vsub.f32 %v9465_v39, %v2281_v53 }
 0x4e5   : > { %v2311_v24 = vmul.f32 1.442695, %v2303_v13 }
 0x4e6   : > { %v2284_v40 = vpop.xlane.xlu1 %2283  ;;  %v2299_v42 = vpop.xlane.xlu0 %2298 }
 0x4e7   : > { %8781 = vpow2.f32 %v2311_v24  ;;  %v2304_v59 = vsub.f32 %v9482_v6, %v2284_v40  ;;  %v2309_v44 = vsub.f32 %v9474_v37, %v2299_v42 }
 0x4e9   : > { %v2313_v61 = vmul.f32 1.442695, %v2304_v59  ;;  %v2323_v8 = vmul.f32 1.442695, %v2309_v44 }
 0x4ea   : > { %v2287_v15 = vpop.xlane.xlu0 %2286  ;;  %v2302_v22 = vpop.xlane.xlu1 %2301 }
 0x4eb   : > { %8783 = vpow2.f32 %v2313_v61  ;;  %v2305_v5 = vsub.f32 %v9498_v20, %v2287_v15  ;;  %v2310_v12 = vsub.f32 %v9491_v9, %v2302_v22 }
 0x4ec   : > { %8785 = vpow2.f32 %v2323_v8 }
 0x4ed   : > { %v2315_v11 = vmul.f32 1.442695, %v2305_v5  ;;  %v2325_v39 = vmul.f32 1.442695, %v2310_v12 }
 0x4ee   : > { %v2290_v16 = vpop.xlane.xlu1 %2289 }
 0x4ef   : > { %8787 = vpow2.f32 %v2315_v11  ;;  %v2306_v10 = vsub.f32 %v9508_v35, %v2290_v16 }
 0x4f0   : > { %8789 = vpow2.f32 %v2325_v39  ;;  %v9584_v30 = vpop.trf.xlu0 }
 0x4f1   : > { %v2317_v6 = vmul.f32 1.442695, %v2306_v10 }
 0x4f3   : > { %8791 = vpow2.f32 %v2317_v6 }
 0x4f4   : > { %v8782_v37 = vpop.eup %8781  ;;  %v9586_v45 = vpop.trf.xlu1 }
 0x4f5   : > { %v2327_v14 = vsel %vm2102_vm2, %v8782_v37, 0.0 }
 0x4f6   : > { %2328 = vadd.xlane.f32.xlu0 %v2327_v14 }
 0x4f8   : > { %v8784_v17 = vpop.eup %8783 }
 0x4f9   : > { %v9573_v46 = vpop.eup %8785  ;;  %v2330_v20 = vsel %vm2102_vm2, %v8784_v17, 0.0 }
 0x4fa   : > { %v2345_v9 = vsel %vm2102_vm2, %v9573_v46, 0.0  ;;  %2331 = vadd.xlane.f32.xlu1 %v2330_v20 }
 0x4fb   : > { %2346 = vadd.xlane.f32.xlu0 %v2345_v9 }
 0x4fc   : > { %v8788_v43 = vpop.eup %8787 }
 0x4fd   : > { %v9578_v56 = vpop.eup %8789  ;;  %v2333_v35 = vsel %vm2102_vm2, %v8788_v43, 0.0 }
 0x4fe   : > { %v2348_v60 = vsel %vm2102_vm2, %v9578_v56, 0.0 }
 0x4ff   : > { %2334 = vadd.xlane.f32.xlu0 %v2333_v35  ;;  %2349 = vadd.xlane.f32.xlu1 %v2348_v60 }
 0x500   : > { %v8792_v49 = vpop.eup %8791 }
 0x501   : > { %v2336_v47 = vsel %vm2102_vm2, %v8792_v49, 0.0 }
 0x503   : > { %2337 = vadd.xlane.f32.xlu1 %v2336_v47  ;;  %v3285_v47 = vcombine.low %v9560_v52, %v9586_v45 }
 0x524   : > { %v2293_v48 = vpop.xlane.xlu0 %2292 }
 0x525   : > { %v2307_v19 = vsub.f32 %v9526_v41, %v2293_v48 }
 0x527   : > { %v2319_v21 = vmul.f32 1.442695, %v2307_v19 }
 0x528   : > { %v2296_v2 = vpop.xlane.xlu1 %2295 }
 0x529   : > { %8793 = vpow2.f32 %v2319_v21  ;;  %v2308_v38 = vsub.f32 %v9532_v0, %v2296_v2 }
 0x52a   : > { %v3083_v41 = vpop.trf.xlu0 }
 0x52b   : > { %v2321_v63 = vmul.f32 1.442695, %v2308_v38 }
 0x52d   : > { %8795 = vpow2.f32 %v2321_v63 }
 0x52e   : > { %v3099_v0 = vpop.trf.xlu1  ;;  %v3115_v53 = vpop.trf.xlu0 }
 0x52f   : > { %v3293_v60 = vcombine.low %v9564_v28, %v3099_v0  ;;  %v3292_v28 = vrot.slane %v3285_v47, %v9140_v58 }
 0x532   : > { %v3131_v13 = vpop.trf.xlu1  ;;  %v3147_v24 = vpop.trf.xlu0 }
 0x536   : > { %v9590_v25 = vpop.eup %8793  ;;  %v3163_v40 = vpop.trf.xlu1 }
 0x537   : > { %v2339_v26 = vsel %vm2102_vm2, %v9590_v25, 0.0  ;;  %v3179_v42 = vpop.trf.xlu0 }
 0x538   : > { %2340 = vadd.xlane.f32.xlu0 %v2339_v26 }
 0x53a   : > { %v9594_v27 = vpop.eup %8795  ;;  %v3195_v59 = vpop.trf.xlu1 }
 0x53b   : > { %v2342_v31 = vsel %vm2102_vm2, %v9594_v27, 0.0 }
 0x53c   : > { %2343 = vadd.xlane.f32.xlu1 %v2342_v31 }
 0x565   : > { %3203 = vxpose.xlu0.c.b16.start.end [1/1] (short) (narrow) %v2973_v34, 16 }
 0x569   : > { %3219 = vxpose.xlu1.c.b16.start.end [1/1] (short) (narrow) %v9444_v33, 16 }
 0x57f   : > { %v2329_v44 = vpop.xlane.xlu0 %2328 }
 0x580   : > { %8797 = vrcp.f32 %v2329_v44 }
 0x583   : > { %v2332_v61 = vpop.xlane.xlu1 %2331 }
 0x584   : > { %v2347_v8 = vpop.xlane.xlu0 %2346  ;;  %8799 = vrcp.f32 %v2332_v61 }
 0x588   : > { %v2335_v15 = vpop.xlane.xlu0 %2334  ;;  %v2350_v22 = vpop.xlane.xlu1 %2349 }
 0x589   : > { %8801 = vrcp.f32 %v2335_v15 }
 0x58c   : > { %v2338_v29 = vpop.xlane.xlu1 %2337 }
 0x58d   : > { %8803 = vrcp.f32 %v2338_v29  ;;  %v8798_v32 = vpop.eup %8797 }
 0x58e   : > { %v2359_v33 = vmul.f32 %v8798_v32, %v8782_v37  ;;  %8805 = vrcp.f32 %v2350_v22  ;;  %v3243_v37 = vcombine.low %v9562_v23, %v3083_v41  ;;  %v3300_v23 = vrot.slane %v3293_v60, %v9140_v58 }
 0x58f   : > { %8807 = vrcp.f32 %v2347_v8 }
 0x590   : > { %v3250_v48 = vrot.slane %v3243_v37, %v9140_v58  ;;  %v3317_v41 = vcombine.low %v3292_v28, %v3300_v23  ;;  %v8733_v28 = vld [vmem:[%s10435_s5 + $0x18] sm:$0xff]  }
 0x591   : > { %v8800_v34 = vpop.eup %8799 }
 0x592   : > { %v2360_v5 = vmul.f32 %v8800_v34, %v8784_v17  ;;  %v3235_v17 = vcombine.low %v9558_v51, %v9584_v30  ;;  %v3301_v51 = vcombine.low %v3131_v13, %v3195_v59  ;;  %v3324_v44 = vrot.slane %v3317_v41, %v9147_v4 }
 0x594   : > { %v2367_v12 = vpack.c.bf16 %v2360_v5, %v2359_v33  ;;  %v3242_v21 = vrot.slane %v3235_v17, %v9140_v58  ;;  %v3308_v52 = vrot.slane %v3301_v51, %v9140_v58 }
 0x596   : > { %v3351_v11 = vsel %vm2102_vm2, %v2367_v12, 0  ;;  %v8802_v39 = vpop.eup %8801  ;;  %v3267_v63 = vcombine.low %v3242_v21, %v3250_v48 }
 0x597   : > { %8479 = vmatpush3.bf16.xpose.msra.mxu1 %v3351_v11  ;;  %v2361_v10 = vmul.f32 %v8802_v39, %v8788_v43  ;;  %v3251_v43 = vcombine.low %v3115_v53, %v3179_v42 }
 0x598   : > { %8490 = vmatprep.subr.bf16.mxu1 %v8926_v36 }
 0x599   : > { %v3258_v2 = vrot.slane %v3251_v43, %v9140_v58 }
 0x59a   : > { %v8804_v16 = vpop.eup %8803 }
 0x59b   : > { %v2362_v6 = vmul.f32 %v8804_v16, %v8792_v49  ;;  %v8806_v53 = vpop.eup %8805 }
 0x59c   : > { %v8808_v13 = vpop.eup %8807 }
 0x59d   : > { %v2368_v14 = vpack.c.bf16 %v2362_v6, %v2361_v10  ;;  %v2365_v32 = vmul.f32 %v8808_v13, %v9573_v46 }
 0x59f   : > { %v3398_v20 = vsel %vm2102_vm2, %v2368_v14, 0 }
 0x5a0   : > { %8485 = vmatpush3.bf16.xpose.msra.mxu0 %v3398_v20 }
 0x5a1   : > { %8496 = vmatprep.subr.bf16.mxu0 %v8926_v36 }
 0x5c1   : > { %v2341_v9 = vpop.xlane.xlu0 %2340 }
 0x5c2   : > { %8809 = vrcp.f32 %v2341_v9 }
 0x5c5   : > { %v2344_v35 = vpop.xlane.xlu1 %2343 }
 0x5c6   : > { %8811 = vrcp.f32 %v2344_v35 }
 0x5c7   : > { %v3211_v49 = vpop.trf.xlu0 }
 0x5c8   : > { %v3259_v19 = vcombine.low %v3147_v24, %v3211_v49  ;;  %v3274_v24 = vrot.slane %v3267_v63, %v9147_v4  ;;  %v8734_v63 = vld [vmem:[%s10435_s5 + $0x10] sm:$0xff]  }
 0x5ca   : > { %v3266_v30 = vrot.slane %v3259_v19, %v9140_v58 }
 0x5cb   : > { %v3227_v38 = vpop.trf.xlu1 }
 0x5cc   : > { %v3275_v26 = vcombine.low %v3258_v2, %v3266_v30  ;;  %v3309_v31 = vcombine.low %v3163_v40, %v3227_v38  ;;  %v2366_v40 = vmul.f32 %v8806_v53, %v9578_v56 }
 0x5ce   : > { %v3282_v45 = vrot.slane %v3275_v26, %v9147_v4  ;;  %v3316_v0 = vrot.slane %v3309_v31, %v9140_v58  ;;  %v2370_v11 = vpack.c.bf16 %v2366_v40, %v2365_v32 }
 0x5cf   : > { %v8810_v59 = vpop.eup %8809 }
 0x5d0   : > { %v3325_v42 = vcombine.low %v3308_v52, %v3316_v0  ;;  %v3283_v61 = vcombine.low %v3274_v24, %v3282_v45  ;;  %v2363_v34 = vmul.f32 %v8810_v59, %v9590_v25  ;;  %v3284_v56 = vcombine.high %v3274_v24, %v3282_v45 }
 0x5d1   : > { %v3492_v46 = vsel %vm2102_vm2, %v2370_v11, 0 }
 0x5d2   : > { %v3332_v8 = vrot.slane %v3325_v42, %v9147_v4  ;;  %v3338_v33 = vshrl.u32 %v3283_v61, 16 }
 0x5d3   : > { %v8812_v15 = vpop.eup %8811 }
 0x5d4   : > { %v3333_v22 = vcombine.low %v3324_v44, %v3332_v8  ;;  %v2364_v29 = vmul.f32 %v8812_v15, %v9594_v27  ;;  %v3334_v16 = vcombine.high %v3324_v44, %v3332_v8  ;;  %v3344_v27 = vshrl.u32 %v3284_v56, 16 }
 0x5d6   : > { %v3337_v5 = vpack.i.b16 %v3333_v22, %v3283_v61  ;;  %v3339_v12 = vshrl.u32 %v3333_v22, 16  ;;  %v2369_v39 = vpack.c.bf16 %v2364_v29, %v2363_v34  ;;  %v3345_v25 = vshrl.u32 %v3334_v16, 16 }
 0x5d7   : > { %v3343_v14 = vpack.i.b16 %v3334_v16, %v3284_v56 }
 0x5d8   : > { %8481 = vmatmul.mubr.msk.bf16.vlgmr.msra.gmra.mxu1 %vm2102_vm2, %v3337_v5  ;;  %v3340_v10 = vpack.i.b16 %v3339_v12, %v3338_v33  ;;  %v3445_v6 = vsel %vm2102_vm2, %v2369_v39, 0  ;;  %v3346_v20 = vpack.i.b16 %v3345_v25, %v3344_v27 }
 0x5d9   : > { %8492 = vmatprep.mubr.msk.bf16.mxu1 %vm8933_vm1, %v8926_v36  ;;  %8491 = vmatpush3.bf16.xpose.msra.mxu1 %v3445_v6 }
 0x5da   : > { %8487 = vmatmul.mubr.msk.bf16.vlgmr.msra.gmra.mxu0 %vm2102_vm2, %v3340_v10  ;;  %8526 = vmatprep.subr.bf16.mxu1 %v8926_v36 }
 0x5db   : > { %8497 = vmatpush3.bf16.xpose.msra.mxu0 %v3492_v46  ;;  %8498 = vmatprep.mubr.msk.bf16.mxu0 %vm8933_vm1, %v8926_v36 }
 0x5dc   : > { %8502 = vmatprep.subr.bf16.mxu0 %v8926_v36 }
 0x5e0   : > { %8493 = vmatmul.mubr.msk.bf16.vlgmr.msra.gmra.mxu1 %vm2102_vm2, %v3343_v14 }
 0x5e1   : > { %8542 = vmatprep.mubr.msk.bf16.mxu1 %vm8933_vm1, %v8926_v36 }
 0x5e2   : > { %8499 = vmatmul.mubr.msk.bf16.vlgmr.msra.gmra.mxu0 %vm2102_vm2, %v3346_v20 }
 0x5e3   : > { %8510 = vmatprep.mubr.msk.bf16.mxu0 %vm8933_vm1, %v8926_v36  ;;  %8503 = vmatpush3.bf16.msra.mxu0 %v8733_v28 }
 0x5e4   : > { %8504 = vmatprep.subr.bf16.mxu0 %v8926_v36 }
 0x5e7   : > { %8505 = vmatpush3.bf16.msra.mxu0 %v8734_v63 }
 0x5e8   : > { %8506 = vmatprep.subr.bf16.mxu0 %v8926_v36 }
 0x698   : > { %v3387_v9 = vpop.f32.mrf.mxu1 }
 0x699   : > { %3535 = vxpose.xlu0.b32.start [1/2] (short) (narrow) %v3387_v9, 16 }
 0x69a   : > { %v8482_v37 = vpop.f32.mrf.mxu1  ;;  %v3434_v17 = vpop.f32.mrf.mxu0 }
 0x69b   : > { %3567 = vxpose.xlu1.b32.start [1/2] (short) (narrow) %v3434_v17, 16 }
 0x69c   : > { %v3390_v35 = vpop.f32.mrf.mxu1  ;;  %v8488_v60 = vpop.f32.mrf.mxu0 }
 0x69d   : > { %3536 = vxpose.xlu0.b32.end [2/2] (short) (narrow) %v3390_v35, 16 }
 0x69e   : > { %v8483_v43 = vpop.f32.mrf.mxu1  ;;  %v3437_v49 = vpop.f32.mrf.mxu0 }
 0x69f   : > { %3568 = vxpose.xlu1.b32.end [2/2] (short) (narrow) %v3437_v49, 16 }
 0x6a0   : > { %v8489_v47 = vpop.f32.mrf.mxu0  ;;  %v3481_v48 = vpop.f32.mrf.mxu1 }
 0x6a1   : > { %3599 = vxpose.xlu0.b32.start [1/2] (short) (narrow) %v3481_v48, 16 }
 0x6a2   : > { %v3528_v19 = vpop.f32.mrf.mxu0  ;;  %v8494_v21 = vpop.f32.mrf.mxu1 }
 0x6a4   : > { %v8500_v23 = vpop.f32.mrf.mxu0  ;;  %v3484_v2 = vpop.f32.mrf.mxu1 }
 0x6a5   : > { %3600 = vxpose.xlu0.b32.end [2/2] (short) (narrow) %v3484_v2, 16 }
 0x6a6   : > { %v3531_v51 = vpop.f32.mrf.mxu0  ;;  %v8495_v30 = vpop.f32.mrf.mxu1 }
 0x6a8   : > { %v8501_v38 = vpop.f32.mrf.mxu0 }
 0x6a9   : > { %3631 = vxpose.xlu0.b32.start [1/2] (short) (narrow) %v3528_v19, 16 }
 0x6ad   : > { %3632 = vxpose.xlu0.b32.end [2/2] (short) (narrow) %v3531_v51, 16 }
 0x715   : > { %v3551_v26 = vpop.trf.xlu0 }
 0x717   : > { %v3583_v45 = vpop.trf.xlu1 }
 0x719   : > { %v3552_v31 = vpop.trf.xlu0 }
 0x71b   : > { %v3584_v40 = vpop.trf.xlu1 }
 0x71d   : > { %v3615_v41 = vpop.trf.xlu0 }
 0x71e   : > { %v3663_v0 = vcombine.low %v3551_v26, %v3615_v41  ;;  %v3664_v53 = vcombine.high %v3551_v26, %v3615_v41 }
 0x720   : > { %v3671_v59 = vrot.slane %v3663_v0, %v9140_v58  ;;  %v3678_v44 = vrot.slane %v3664_v53, %v9140_v58  ;;  %v8735_v53 = vld [vmem:[%s10435_s5 + $0x8] sm:$0xff]  }
 0x721   : > { %v3616_v52 = vpop.trf.xlu0  ;;  %8507 = vmatpush3.bf16.msra.mxu0 %v8735_v53 }
 0x722   : > { %v3731_v15 = vcombine.low %v3552_v31, %v3616_v52  ;;  %v3732_v22 = vcombine.high %v3552_v31, %v3616_v52  ;;  %8508 = vmatprep.subr.bf16.mxu0 %v8926_v36 }
 0x724   : > { %v3739_v56 = vrot.slane %v3731_v15, %v9140_v58  ;;  %v3746_v46 = vrot.slane %v3732_v22, %v9140_v58 }
 0x725   : > { %v3647_v24 = vpop.trf.xlu0 }
 0x726   : > { %v3679_v42 = vcombine.low %v3583_v45, %v3647_v24  ;;  %v3680_v13 = vcombine.high %v3583_v45, %v3647_v24 }
 0x728   : > { %v3687_v61 = vrot.slane %v3679_v42, %v9140_v58  ;;  %v3694_v8 = vrot.slane %v3680_v13, %v9140_v58 }
 0x729   : > { %v3648_v29 = vpop.trf.xlu0 }
 0x72a   : > { %v3695_v32 = vcombine.low %v3671_v59, %v3687_v61  ;;  %v3696_v34 = vcombine.high %v3671_v59, %v3687_v61  ;;  %v3711_v33 = vcombine.low %v3678_v44, %v3694_v8  ;;  %v3712_v5 = vcombine.high %v3678_v44, %v3694_v8 }
 0x72b   : > { %v3747_v12 = vcombine.low %v3584_v40, %v3648_v29  ;;  %v3748_v11 = vcombine.high %v3584_v40, %v3648_v29 }
 0x72c   : > { %v3703_v39 = vrot.slane %v3695_v32, %v9147_v4  ;;  %v3710_v16 = vrot.slane %v3696_v34, %v9147_v4  ;;  %v3719_v10 = vrot.slane %v3711_v33, %v9147_v4  ;;  %v3726_v6 = vrot.slane %v3712_v5, %v9147_v4 }
 0x72d   : > { %v3755_v25 = vrot.slane %v3747_v12, %v9140_v58  ;;  %v3762_v27 = vrot.slane %v3748_v11, %v9140_v58  ;;  %v8736_v12 = vld [vmem:[%s10435_s5] sm:$0xff]  }
 0x72e   : > { %v3799_v14 = vcombine.low %v3703_v39, %v3710_v16  ;;  %v8262_v20 = vcombine.high %v3703_v39, %v3710_v16  ;;  %v3815_v9 = vcombine.low %v3719_v10, %v3726_v6  ;;  %v8263_v37 = vcombine.high %v3719_v10, %v3726_v6  ;;  %8509 = vmatpush3.bf16.msra.mxu0 %v8736_v12 }
 0x72f   : > { %v3763_v17 = vcombine.low %v3739_v56, %v3755_v25  ;;  %v3764_v35 = vcombine.high %v3739_v56, %v3755_v25  ;;  %v3779_v60 = vcombine.low %v3746_v46, %v3762_v27  ;;  %v3780_v43 = vcombine.high %v3746_v46, %v3762_v27  ;;  %8514 = vmatprep.subr.bf16.mxu0 %v8926_v36 }
 0x730   : > { %v3806_v49 = vrot.slane %v3799_v14, %v9140_v58  ;;  %v3814_v47 = vrot.slane %v8262_v20, %v9140_v58  ;;  %v3822_v48 = vrot.slane %v3815_v9, %v9140_v58  ;;  %v3830_v19 = vrot.slane %v8263_v37, %v9140_v58 }
 0x731   : > { %v3771_v21 = vrot.slane %v3763_v17, %v9147_v4  ;;  %v3778_v23 = vrot.slane %v3764_v35, %v9147_v4  ;;  %v3787_v2 = vrot.slane %v3779_v60, %v9147_v4  ;;  %v3794_v51 = vrot.slane %v3780_v43, %v9147_v4 }
 0x732   : > { %v3832_v30 = vcombine.high %v3806_v49, %v3814_v47  ;;  %v3848_v38 = vcombine.high %v3822_v48, %v3830_v19  ;;  %v3831_v28 = vcombine.low %v3806_v49, %v3814_v47  ;;  %v3847_v63 = vcombine.low %v3822_v48, %v3830_v19 }
 0x733   : > { %v3867_v26 = vcombine.low %v3771_v21, %v3778_v23  ;;  %v8264_v31 = vcombine.high %v3771_v21, %v3778_v23  ;;  %v3883_v41 = vcombine.low %v3787_v2, %v3794_v51  ;;  %v8265_v52 = vcombine.high %v3787_v2, %v3794_v51 }
 0x734   : > { %v3839_v45 = vrot.slane %v3831_v28, %v9147_v4  ;;  %v3855_v0 = vrot.slane %v3847_v63, %v9147_v4  ;;  %v3846_v44 = vrot.slane %v3832_v30, %v9147_v4  ;;  %v3862_v61 = vrot.slane %v3848_v38, %v9147_v4  ;;  %v8861_v28 = vld [vmem:[%s9053_s12] sm:$0xff] }
 0x735   : > { %v3874_v24 = vrot.slane %v3867_v26, %v9140_v58  ;;  %v3882_v42 = vrot.slane %v8264_v31, %v9140_v58  ;;  %v3890_v13 = vrot.slane %v3883_v41, %v9140_v58  ;;  %v3898_v59 = vrot.slane %v8265_v52, %v9140_v58  ;;  %v8862_v52 = vld [vmem:[%s9053_s12 + $0x8] sm:$0xff] }
 0x736   : > { %v3863_v8 = vcombine.low %v3839_v45, %v3855_v0  ;;  %v3865_v11 = vcombine.low %v3846_v44, %v3862_v61  ;;  %v3864_v16 = vcombine.high %v3839_v45, %v3855_v0  ;;  %v3866_v27 = vcombine.high %v3846_v44, %v3862_v61  ;;  %v8739_v44 = vld [vmem:[%s10437_s7 + $0x8] sm:$0xff]   ;;  %v8740_v61 = vld [vmem:[%s10437_s7] sm:$0xff]  }
 0x737   : > { %v3900_v40 = vcombine.high %v3874_v24, %v3882_v42  ;;  %v3916_v15 = vcombine.high %v3890_v13, %v3898_v59  ;;  %v3899_v22 = vcombine.low %v3874_v24, %v3882_v42  ;;  %v3915_v29 = vcombine.low %v3890_v13, %v3898_v59  ;;  %v8737_v13 = vld [vmem:[%s10437_s7 + $0x18] sm:$0xff]   ;;  %v8738_v59 = vld [vmem:[%s10437_s7 + $0x10] sm:$0xff]  }
 0x739   : > { %v3914_v32 = vrot.slane %v3900_v40, %v9147_v4  ;;  %v3930_v34 = vrot.slane %v3916_v15, %v9147_v4  ;;  %v3907_v33 = vrot.slane %v3899_v22, %v9147_v4  ;;  %v3923_v5 = vrot.slane %v3915_v29, %v9147_v4  ;;  %v8742_v40 = vld [vmem:[%s10438_s8 + $0x30] sm:$0xff]   ;;  %v8743_v15 = vld [vmem:[%s10438_s8 + $0x28] sm:$0xff]   ;;  %v8744_v22 = vld [vmem:[%s10438_s8 + $0x20] sm:$0xff]  }
 0x73a   : > { %v8745_v29 = vld [vmem:[%s10438_s8 + $0x18] sm:$0xff]  }
 0x73b   : > { %v3933_v39 = vcombine.low %v3914_v32, %v3930_v34  ;;  %v3932_v10 = vcombine.high %v3907_v33, %v3923_v5  ;;  %v3931_v6 = vcombine.low %v3907_v33, %v3923_v5  ;;  %v3934_v25 = vcombine.high %v3914_v32, %v3930_v34  ;;  %v8746_v32 = vld [vmem:[%s10438_s8 + $0x10] sm:$0xff]  }
 0x73d   : > { %v8696_v56 = vpack.i.bf16 %v3933_v39, %v3865_v11  ;;  %v8691_v46 = vpack.i.bf16 %v3932_v10, %v3864_v16  ;;  %v8701_v14 = vpack.i.bf16 %v3934_v25, %v3866_v27 }
 0x73f   : > { %8697 = vrot.lane.b32.xlu0 %v8696_v56, %s10447_s21  ;;  %8692 = vrot.lane.b32.xlu1 %v8691_v46, %s10446_s25  ;;  %v8271_v56 = vld [vmem:[%s10436_s6] ss:$0 sm:$0xff]  ;;  %s361_s25 = sand.u32 1, %s8915_s14  }
 0x743   : > { %8702 = vrot.lane.b32.xlu1 %v8701_v14, %s10445_s18  ;;  %s8233_s18 = sshll.u32 %s361_s25, 4 }
 0x7b1   : > { %v8698_v20 = vpop.permute.xlu0 %8697  ;;  %v8693_v9 = vpop.permute.xlu1 %8692 }
 0x7b2   : > { %v8695_v37 = vunpack.i.h.bf16 %v8693_v9  ;;  %v8694_v17 = vunpack.i.l.bf16 %v8693_v9  ;;  %v8700_v35 = vunpack.i.h.bf16 %v8698_v20  ;;  %v8699_v60 = vunpack.i.l.bf16 %v8698_v20  ;;  %v8747_v20 = vld [vmem:[%s10438_s8 + $0x8] sm:$0xff]   ;;  %v8748_v9 = vld [vmem:[%s10438_s8] sm:$0xff]  }
 0x7b4   : > { %v3959_v43 = vsel %vm2102_vm2, %v3863_v8, %v8694_v17  ;;  %v3960_v49 = vsel %vm2102_vm2, %v3931_v6, %v8695_v37  ;;  %v8741_v8 = vld [vmem:[%s10438_s8 + $0x38] sm:$0xff]  }
 0x7b5   : > { %v8703_v47 = vpop.permute.xlu1 %8702  ;;  %v3962_v21 = vsel %vm3961_vm3, %v3959_v43, %v8699_v60  ;;  %v3963_v23 = vsel %vm3961_vm3, %v3960_v49, %v8700_v35  ;;  %8527 = vmatpush3.bf16.msra.mxu1 %v8741_v8 }
 0x7b6   : > { %v8705_v48 = vunpack.i.h.bf16 %v8703_v47  ;;  %v8704_v19 = vunpack.i.l.bf16 %v8703_v47  ;;  %8528 = vmatprep.subr.bf16.mxu1 %v8926_v36 }
 0x7b8   : > { %v3965_v2 = vsel %vm3964_vm4, %v3962_v21, %v8704_v19  ;;  %v3966_v51 = vsel %vm3964_vm4, %v3963_v23, %v8705_v48 }
 0x7b9   : > { %v3967_v30 = vpack.c.bf16 %v3966_v51, %v3965_v2  ;;  %8529 = vmatpush3.bf16.msra.mxu1 %v8742_v40 }
 0x7ba   : > { %8530 = vmatprep.subr.bf16.mxu1 %v8926_v36 }
 0x7bb   : > { %8511 = vmatmul.mubr.msk.bf16.vlgmr.msra.gmra.mxu0 %vm403_vm0, %v3967_v30 }
 0x7bc   : > { %8522 = vmatprep.mubr.msk.bf16.mxu0 %vm8933_vm1, %v8926_v36  ;;  %8515 = vmatpush3.bf16.msra.mxu0 %v8737_v13 }
 0x7bd   : > { %8516 = vmatprep.subr.bf16.mxu0 %v8926_v36  ;;  %8531 = vmatpush3.bf16.msra.mxu1 %v8743_v15 }
 0x7be   : > { %8532 = vmatprep.subr.bf16.mxu1 %v8926_v36 }
 0x7c0   : > { %8517 = vmatpush3.bf16.msra.mxu0 %v8738_v59 }
 0x7c1   : > { %8518 = vmatprep.subr.bf16.mxu0 %v8926_v36  ;;  %8533 = vmatpush3.bf16.msra.mxu1 %v8744_v22  ;;  %v8286_v22 = vld [vmem:[%s10433_s3 + $0x1] ss:$0 sm:$0xff] }
 0x7c2   : > { %8534 = vmatprep.subr.bf16.mxu1 %v8926_v36 }
 0x7c4   : > { %8519 = vmatpush3.bf16.msra.mxu0 %v8739_v44 }
 0x7c5   : > { %8520 = vmatprep.subr.bf16.mxu0 %v8926_v36  ;;  %8535 = vmatpush3.bf16.msra.mxu1 %v8745_v29 }
 0x7c6   : > { %8536 = vmatprep.subr.bf16.mxu1 %v8926_v36 }
 0x7c8   : > { %8521 = vmatpush3.bf16.msra.mxu0 %v8740_v61 }
 0x7c9   : > { %8537 = vmatpush3.bf16.msra.mxu1 %v8746_v32 }
 0x7ca   : > { %8538 = vmatprep.subr.bf16.mxu1 %v8926_v36 }
 0x7cd   : > { %8539 = vmatpush3.bf16.msra.mxu1 %v8747_v20 }
 0x7ce   : > { %8540 = vmatprep.subr.bf16.mxu1 %v8926_v36 }
 0x7d1   : > { %8541 = vmatpush3.bf16.msra.mxu1 %v8748_v9 }
 0x7d2   : > { %8558 = vmatprep.subr.bf16.mxu1 %v8926_v36 }
 0x87b   : > { %v4037_v38 = vpop.f32.mrf.mxu0 }
 0x87c   : > { %v9705_v63 = vadd.f32 %v8861_v28, %v4037_v38 }
 0x87d   : > { %v8512_v26 = vpop.f32.mrf.mxu0 }
 0x87e   : > { %v4047_v31 = vmul.f32 %v9705_v63, %v9705_v63  ;;  %v8751_v26 = vld [vmem:[%s10434_s4 + $0x74] ss:$8 sps:$4 sm:$0xff]  }
 0x87f   : > { %v4040_v41 = vpop.f32.mrf.mxu0  ;;  %4345 = vmatprep.subr.bf16.mxu0 %v8751_v26 }
 0x880   : > { %v9710_v45 = vadd.f32 %v8862_v52, %v4040_v41  ;;  %v4049_v0 = vsel %vm403_vm0, %v4047_v31, 0.0  ;;  %v8754_v31 = vld [vmem:[%s10434_s4 + $0x64] ss:$8 sps:$4 sm:$0xff]   ;;  %v8752_v41 = vld [vmem:[%s10434_s4 + $0x60] ss:$8 sps:$4 sm:$0xff]  }
 0x881   : > { %4050 = vadd.xlane.f32.xlu1 %v4049_v0  ;;  %v8513_v53 = vpop.f32.mrf.mxu0  ;;  %v8757_v52 = vld [vmem:[%s10434_s4 + $0x54] ss:$8 sps:$4 sm:$0xff]   ;;  %v8760_v0 = vld [vmem:[%s10434_s4 + $0x44] ss:$8 sps:$4 sm:$0xff]  }
 0x882   : > { %v4048_v24 = vmul.f32 %v9710_v45, %v9710_v45  ;;  %v8758_v53 = vld [vmem:[%s10434_s4 + $0x40] ss:$8 sps:$4 sm:$0xff]  }
 0x884   : > { %v4052_v42 = vsel %vm403_vm0, %v4048_v24, 0.0 }
 0x885   : > { %4053 = vadd.xlane.f32.xlu0 %v4052_v42 }
 0x90a   : > { %v4051_v34 = vpop.xlane.xlu1 %4050 }
 0x90b   : > { %v4055_v33 = vmul.f32 0.015625, %v4051_v34 }
 0x90d   : > { %v4057_v5 = vadd.f32 1e-06, %v4055_v33 }
 0x90e   : > { %v4054_v12 = vpop.xlane.xlu0 %4053 }
 0x90f   : > { %8813 = vrsqrt.f32 %v4057_v5  ;;  %v4056_v11 = vmul.f32 0.015625, %v4054_v12 }
 0x911   : > { %v4058_v39 = vadd.f32 1e-06, %v4056_v11 }
 0x913   : > { %8815 = vrsqrt.f32 %v4058_v39 }
 0x91c   : > { %v8814_v16 = vpop.eup %8813 }
 0x91d   : > { %v4061_v10 = vmul.f32 %v8814_v16, %v9705_v63 }
 0x91f   : > { %v4069_v25 = vmul.f32 %v8271_v56, %v4061_v10 }
 0x920   : > { %v8816_v6 = vpop.eup %8815 }
 0x921   : > { %v4062_v46 = vmul.f32 %v8816_v6, %v9710_v45 }
 0x923   : > { %v4070_v27 = vmul.f32 %v8271_v56, %v4062_v46 }
 0x925   : > { %v4071_v14 = vpack.c.bf16 %v4070_v27, %v4069_v25 }
 0x927   : > { %8523 = vmatmul.mubr.msk.bf16.vlgmr.msra.gmra.mxu0 %vm403_vm0, %v4071_v14 }
 0x928   : > { %4369 = vmatprep.mubr.bf16.mxu0 %v8925_v18 }
 0x9e7   : > { %v4141_v37 = vpop.f32.mrf.mxu0 }
 0x9e8   : > { %v4148_v60 = vmax.f32 %v4141_v37, 0.0 }
 0x9e9   : > { %v8524_v17 = vpop.f32.mrf.mxu0 }
 0x9eb   : > { %v4144_v35 = vpop.f32.mrf.mxu0 }
 0x9ec   : > { %v4149_v43 = vmax.f32 %v4144_v35, 0.0 }
 0x9ed   : > { %v8525_v18 = vpop.f32.mrf.mxu0 }
 0x9ee   : > { %v4150_v49 = vpack.c.bf16 %v4149_v43, %v4148_v60 }
 0x9f0   : > { %8543 = vmatmul.mubr.bf16.vlgmr.msra.gmra.mxu1 %v4150_v49 }
 0x9f1   : > { %8560 = vmatprep.mubr.msk.bf16.mxu1 %vm8933_vm1, %v8926_v36 }
 0xab0   : > { %v4249_v47 = vpop.f32.mrf.mxu1 }
 0xab1   : > { %v9773_v48 = vadd.f32 %v4249_v47, %v9705_v63  ;;  %v8749_v63 = vld [vmem:[%s10434_s4 + $0x70] ss:$8 sps:$4 sm:$0xff]  }
 0xab2   : > { %v8544_v19 = vpop.f32.mrf.mxu1  ;;  %4346 = vmatpush1.bf16.msra.mxu0 %v8749_v63 }
 0xab3   : > { %v4260_v21 = vmul.f32 %v9773_v48, %v9773_v48  ;;  %4347 = vmatprep.subr.bf16.mxu0 %v8754_v31 }
 0xab4   : > { %v4252_v23 = vpop.f32.mrf.mxu1 }
 0xab5   : > { %v9778_v2 = vadd.f32 %v4252_v23, %v9710_v45  ;;  %v4262_v51 = vsel %vm403_vm0, %v4260_v21, 0.0  ;;  %v8755_v45 = vld [vmem:[%s10434_s4 + $0x50] ss:$8 sps:$4 sm:$0xff]  }
 0xab6   : > { %4263 = vadd.xlane.f32.xlu1 %v4262_v51  ;;  %v8545_v30 = vpop.f32.mrf.mxu1  ;;  %4348 = vmatpush1.bf16.msra.mxu0 %v8752_v41 }
 0xab7   : > { %v4261_v38 = vmul.f32 %v9778_v2, %v9778_v2  ;;  %4349 = vmatprep.subr.bf16.mxu0 %v8757_v52 }
 0xab9   : > { %v4265_v28 = vsel %vm403_vm0, %v4261_v38, 0.0 }
 0xaba   : > { %4266 = vadd.xlane.f32.xlu1 %v4265_v28  ;;  %4350 = vmatpush1.bf16.msra.mxu0 %v8755_v45 }
 0xabb   : > { %4351 = vmatprep.subr.bf16.mxu0 %v8760_v0 }
 0xabe   : > { %4352 = vmatpush1.bf16.msra.mxu0 %v8758_v53 }
 0xabf   : > { %8546 = vmatprep.subr.bf16.mxu0 %v8926_v36 }
 0xb3f   : > { %v4264_v24 = vpop.xlane.xlu1 %4263 }
 0xb40   : > { %v4268_v42 = vmul.f32 0.015625, %v4264_v24 }
 0xb42   : > { %v4270_v13 = vadd.f32 1e-06, %v4268_v42 }
 0xb43   : > { %v4267_v59 = vpop.xlane.xlu1 %4266 }
 0xb44   : > { %8817 = vrsqrt.f32 %v4270_v13  ;;  %v4269_v44 = vmul.f32 0.015625, %v4267_v59 }
 0xb46   : > { %v4271_v61 = vadd.f32 1e-06, %v4269_v44 }
 0xb48   : > { %8819 = vrsqrt.f32 %v4271_v61 }
 0xb51   : > { %v8818_v8 = vpop.eup %8817 }
 0xb52   : > { %v4274_v40 = vmul.f32 %v8818_v8, %v9773_v48 }
 0xb54   : > { %v4282_v32 = vmul.f32 %v8286_v22, %v4274_v40 }
 0xb55   : > { %v8820_v15 = vpop.eup %8819 }
 0xb56   : > { %v4275_v29 = vmul.f32 %v8820_v15, %v9778_v2 }
 0xb58   : > { %v4283_v34 = vmul.f32 %v8286_v22, %v4275_v29 }
 0xb5a   : > { %v4284_v33 = vpack.c.bf16 %v4283_v34, %v4282_v32 }
 0xb5c   : > { %8303 = vmatmul.mubr.msk.bf16.vlgmr.msra.gmra.mxu0 %vm403_vm0, %v4284_v33 }
 0xb5d   : > { %8548 = vmatprep.mubr.msk.bf16.mxu0 %vm8933_vm1, %v8926_v36 }
 0xc1c   : > { %v4371_v5 = vpop.f32.mrf.mxu0 }
 0xc1d   : > { %4382 = vrot.lane.b32.xlu1 %v4371_v5, %s8928_s11 }
 0xc1e   : > { %v9818_v12 = vpop.f32.mrf.mxu0 }
 0xc20   : > { %v4375_v11 = vpop.f32.mrf.mxu0 }
 0xc21   : > { %4388 = vrot.lane.b32.xlu1 %v4371_v5, %s10452_s20  ;;  %4384 = vrot.lane.b32.xlu0 %v4375_v11, %s8928_s11 }
 0xc25   : > { %4390 = vrot.lane.b32.xlu1 %v4375_v11, %s10452_s20  ;;  %4394 = vrot.lane.b32.xlu0 %v4371_v5, %s10453_s26 }
 0xc29   : > { %4396 = vrot.lane.b32.xlu1 %v4375_v11, %s10453_s26  ;;  %4536 = vrot.lane.b32.xlu0 %v4371_v5, %s10454_s27 }
 0xc2d   : > { %4538 = vrot.lane.b32.xlu1 %v4375_v11, %s10454_s27 }
 0xc8f   : > { %v4383_v39 = vpop.permute.xlu1 %4382 }
 0xc90   : > { %4540 = vrot.lane.b32.xlu0 %v4383_v39, %s10454_s27 }
 0xc93   : > { %v4389_v16 = vpop.permute.xlu1 %4388  ;;  %v4385_v10 = vpop.permute.xlu0 %4384 }
 0xc94   : > { %4544 = vrot.lane.b32.xlu0 %v4389_v16, %s10454_s27  ;;  %4542 = vrot.lane.b32.xlu1 %v4385_v10, %s10454_s27  ;;  %v4400_v6 = vcombine.low %v4371_v5, %v4389_v16  ;;  %v4401_v56 = vcombine.high %v4371_v5, %v4389_v16 }
 0xc96   : > { %v4408_v20 = vrot.slane %v4400_v6, %v9140_v58  ;;  %v4415_v9 = vrot.slane %v4401_v56, %v9140_v58 }
 0xc97   : > { %v4391_v46 = vpop.permute.xlu1 %4390  ;;  %v4395_v25 = vpop.permute.xlu0 %4394 }
 0xc98   : > { %v4416_v27 = vcombine.low %v4383_v39, %v4395_v25  ;;  %v4417_v14 = vcombine.high %v4383_v39, %v4395_v25  ;;  %4546 = vrot.lane.b32.xlu1 %v4391_v46, %s10454_s27  ;;  %4548 = vrot.lane.b32.xlu0 %v4395_v25, %s10454_s27  ;;  %v4468_v35 = vcombine.low %v4375_v11, %v4391_v46 }
 0xc99   : > { %v4469_v60 = vcombine.high %v4375_v11, %v4391_v46 }
 0xc9a   : > { %v4424_v37 = vrot.slane %v4416_v27, %v9140_v58  ;;  %v4431_v17 = vrot.slane %v4417_v14, %v9140_v58  ;;  %v4476_v63 = vrot.slane %v4468_v35, %v9140_v58 }
 0xc9b   : > { %v4397_v43 = vpop.permute.xlu1 %4396  ;;  %v4483_v26 = vrot.slane %v4469_v60, %v9140_v58 }
 0xc9c   : > { %v4432_v18 = vcombine.low %v4408_v20, %v4424_v37  ;;  %v4433_v49 = vcombine.high %v4408_v20, %v4424_v37  ;;  %v4448_v47 = vcombine.low %v4415_v9, %v4431_v17  ;;  %v4449_v19 = vcombine.high %v4415_v9, %v4431_v17  ;;  %4550 = vrot.lane.b32.xlu1 %v4397_v43, %s10454_s27  ;;  %s10457_s27 = smov 48  }
 0xc9d   : > { %v4484_v21 = vcombine.low %v4385_v10, %v4397_v43  ;;  %v4485_v23 = vcombine.high %v4385_v10, %v4397_v43 }
 0xc9e   : > { %v4440_v51 = vrot.slane %v4432_v18, %v9147_v4  ;;  %v4447_v30 = vrot.slane %v4433_v49, %v9147_v4  ;;  %v4456_v38 = vrot.slane %v4448_v47, %v9147_v4  ;;  %v4463_v28 = vrot.slane %v4449_v19, %v9147_v4 }
 0xc9f   : > { %v4492_v31 = vrot.slane %v4484_v21, %v9140_v58  ;;  %v4499_v41 = vrot.slane %v4485_v23, %v9140_v58 }
 0xca0   : > { %v4464_v52 = vcombine.high %v4440_v51, %v8926_v36  ;;  %v4465_v45 = vcombine.high %v4447_v30, %v8926_v36  ;;  %v4466_v0 = vcombine.high %v4456_v38, %v8926_v36  ;;  %v4467_v53 = vcombine.high %v4463_v28, %v8926_v36 }
 0xca1   : > { %v8304_v24 = vpack.c.bf16 %v4456_v38, %v4440_v51  ;;  %v8305_v42 = vpack.c.bf16 %v4463_v28, %v4447_v30  ;;  %v4500_v13 = vcombine.low %v4476_v63, %v4492_v31  ;;  %v4501_v59 = vcombine.high %v4476_v63, %v4492_v31 }
 0xca2   : > { %v8308_v44 = vpack.c.bf16 %v4466_v0, %v4464_v52  ;;  %v8309_v61 = vpack.c.bf16 %v4467_v53, %v4465_v45  ;;  %v4516_v8 = vcombine.low %v4483_v26, %v4499_v41  ;;  %v4517_v40 = vcombine.high %v4483_v26, %v4499_v41  ;;  %v4537_v0 = vpop.permute.xlu0 %4536  ;;  %v4539_v53 = vpop.permute.xlu1 %4538 }
 0xca3   : > { %v4891_v15 = vrot.slane %v8304_v24, %v9140_v58  ;;  %v4899_v22 = vrot.slane %v8305_v42, %v9140_v58  ;;  %v4508_v29 = vrot.slane %v4500_v13, %v9147_v4  ;;  %v4515_v32 = vrot.slane %v4501_v59, %v9147_v4 }
 0xca4   : > { %v4941_v34 = vrot.slane %v8308_v44, %v9140_v58  ;;  %v4949_v33 = vrot.slane %v8309_v61, %v9140_v58  ;;  %v4524_v5 = vrot.slane %v4516_v8, %v9147_v4  ;;  %v4531_v11 = vrot.slane %v4517_v40, %v9147_v4 }
 0xca5   : > { %v4916_v39 = vcombine.low %v4891_v15, %v4899_v22  ;;  %v4532_v16 = vcombine.high %v4508_v29, %v8926_v36  ;;  %v4533_v10 = vcombine.high %v4515_v32, %v8926_v36 }
 0xca6   : > { %v4966_v6 = vcombine.low %v4941_v34, %v4949_v33  ;;  %v4534_v56 = vcombine.high %v4524_v5, %v8926_v36  ;;  %v4535_v46 = vcombine.high %v4531_v11, %v8926_v36  ;;  %v8306_v25 = vpack.c.bf16 %v4524_v5, %v4508_v29 }
 0xca7   : > { %v8307_v27 = vpack.c.bf16 %v4531_v11, %v4515_v32  ;;  %v4923_v18 = vrot.slane %v4916_v39, %v9147_v4 }
 0xca8   : > { %v4907_v14 = vrot.slane %v8306_v25, %v9140_v58  ;;  %v8310_v20 = vpack.c.bf16 %v4534_v56, %v4532_v16  ;;  %v8311_v9 = vpack.c.bf16 %v4535_v46, %v4533_v10  ;;  %v4973_v47 = vrot.slane %v4966_v6, %v9147_v4 }
 0xca9   : > { %v4915_v37 = vrot.slane %v8307_v27, %v9140_v58 }
 0xcaa   : > { %v4957_v17 = vrot.slane %v8310_v20, %v9140_v58  ;;  %v4965_v35 = vrot.slane %v8311_v9, %v9140_v58 }
 0xcab   : > { %v4924_v60 = vcombine.low %v4907_v14, %v4915_v37 }
 0xcac   : > { %v4974_v43 = vcombine.low %v4957_v17, %v4965_v35 }
 0xcad   : > { %v4931_v49 = vrot.slane %v4924_v60, %v9147_v4 }
 0xcae   : > { %v4981_v19 = vrot.slane %v4974_v43, %v9147_v4 }
 0xcaf   : > { %v9869_v21 = vcombine.low %v4923_v18, %v4931_v49  ;;  %v9871_v23 = vcombine.high %v4923_v18, %v4931_v49 }
 0xcb0   : > { %v9873_v51 = vcombine.low %v4973_v47, %v4981_v19  ;;  %v9875_v30 = vcombine.high %v4973_v47, %v4981_v19 }
 0xcb1   : > { %v4987_v38 = vshrl.u32 %v9869_v21, 16  ;;  %v4993_v28 = vshrl.u32 %v9871_v23, 16 }
 0xcb2   : > { %v4986_v63 = vpack.i.b16 %v9873_v51, %v9869_v21  ;;  %v4992_v26 = vpack.i.b16 %v9875_v30, %v9871_v23  ;;  %v4988_v31 = vshrl.u32 %v9873_v51, 16  ;;  %v4994_v41 = vshrl.u32 %v9875_v30, 16 }
 0xcb4   : > { %v9885_v52 = vpack.i.b16 %v4988_v31, %v4987_v38  ;;  %v9887_v45 = vpack.i.b16 %v4994_v41, %v4993_v28 }
 0xd02   : > { %v4541_v24 = vpop.permute.xlu0 %4540 }
 0xd06   : > { %v4543_v42 = vpop.permute.xlu1 %4542  ;;  %v4545_v13 = vpop.permute.xlu0 %4544 }
 0xd07   : > { %v4560_v59 = vcombine.low %v4537_v0, %v4545_v13  ;;  %v4561_v44 = vcombine.high %v4537_v0, %v4545_v13 }
 0xd09   : > { %v4568_v22 = vrot.slane %v4560_v59, %v9140_v58  ;;  %v4575_v29 = vrot.slane %v4561_v44, %v9140_v58 }
 0xd0a   : > { %v4547_v61 = vpop.permute.xlu1 %4546  ;;  %v4549_v8 = vpop.permute.xlu0 %4548 }
 0xd0b   : > { %v4576_v40 = vcombine.low %v4541_v24, %v4549_v8  ;;  %v4577_v15 = vcombine.high %v4541_v24, %v4549_v8  ;;  %v4628_v6 = vcombine.low %v4539_v53, %v4547_v61  ;;  %v4629_v47 = vcombine.high %v4539_v53, %v4547_v61 }
 0xd0d   : > { %v4584_v32 = vrot.slane %v4576_v40, %v9140_v58  ;;  %v4591_v34 = vrot.slane %v4577_v15, %v9140_v58  ;;  %v4636_v37 = vrot.slane %v4628_v6, %v9140_v58  ;;  %v4643_v24 = vrot.slane %v4629_v47, %v9140_v58 }
 0xd0e   : > { %v4551_v33 = vpop.permute.xlu1 %4550 }
 0xd0f   : > { %v4644_v5 = vcombine.low %v4543_v42, %v4551_v33  ;;  %v4592_v11 = vcombine.low %v4568_v22, %v4584_v32  ;;  %v4593_v39 = vcombine.high %v4568_v22, %v4584_v32  ;;  %v4608_v16 = vcombine.low %v4575_v29, %v4591_v34 }
 0xd10   : > { %v4609_v10 = vcombine.high %v4575_v29, %v4591_v34  ;;  %v4645_v17 = vcombine.high %v4543_v42, %v4551_v33 }
 0xd11   : > { %v4616_v56 = vrot.slane %v4608_v16, %v9147_v4  ;;  %v4600_v46 = vrot.slane %v4592_v11, %v9147_v4  ;;  %v4652_v25 = vrot.slane %v4644_v5, %v9140_v58  ;;  %v4607_v9 = vrot.slane %v4593_v39, %v9147_v4 }
 0xd12   : > { %v4623_v20 = vrot.slane %v4609_v10, %v9147_v4  ;;  %v4659_v19 = vrot.slane %v4645_v17, %v9140_v58 }
 0xd13   : > { %v4872_v27 = vpack.c.bf16 %v4616_v56, %v4616_v56  ;;  %v4868_v14 = vpack.c.bf16 %v4600_v46, %v4600_v46  ;;  %v4660_v35 = vcombine.low %v4636_v37, %v4652_v25  ;;  %v4870_v43 = vpack.c.bf16 %v4607_v9, %v4607_v9 }
 0xd14   : > { %v4874_v60 = vpack.c.bf16 %v4623_v20, %v4623_v20  ;;  %v4625_v18 = vcombine.high %v4607_v9, %v8926_v36  ;;  %v4624_v49 = vcombine.high %v4600_v46, %v8926_v36  ;;  %v4661_v38 = vcombine.high %v4636_v37, %v4652_v25 }
 0xd15   : > { %5060 = vxpose.xlu1.c.b16.start.end [1/1] (short) (narrow) %v4872_v27, 16  ;;  %4996 = vxpose.xlu0.c.b16.start.end [1/1] (short) (narrow) %v4868_v14, 16  ;;  %v4626_v41 = vcombine.high %v4616_v56, %v8926_v36  ;;  %v4668_v0 = vrot.slane %v4660_v35, %v9147_v4  ;;  %v4676_v42 = vcombine.low %v4643_v24, %v4659_v19 }
 0xd16   : > { %v4871_v28 = vpack.c.bf16 %v4625_v18, %v4625_v18  ;;  %v4869_v31 = vpack.c.bf16 %v4624_v49, %v4624_v49  ;;  %v4627_v53 = vcombine.high %v4623_v20, %v8926_v36  ;;  %v4675_v44 = vrot.slane %v4661_v38, %v9147_v4 }
 0xd17   : > { %v4873_v13 = vpack.c.bf16 %v4626_v41, %v4626_v41  ;;  %v4876_v59 = vpack.c.bf16 %v4668_v0, %v4668_v0  ;;  %v4677_v61 = vcombine.high %v4643_v24, %v4659_v19  ;;  %v4692_v15 = vcombine.high %v4668_v0, %v8926_v36 }
 0xd18   : > { %v4875_v8 = vpack.c.bf16 %v4627_v53, %v4627_v53  ;;  %v4878_v40 = vpack.c.bf16 %v4675_v44, %v4675_v44  ;;  %v4684_v22 = vrot.slane %v4676_v42, %v9147_v4  ;;  %v4693_v34 = vcombine.high %v4675_v44, %v8926_v36 }
 0xd19   : > { %5092 = vxpose.xlu1.c.b16.start.end [1/1] (short) (narrow) %v4874_v60, 16  ;;  %5028 = vxpose.xlu0.c.b16.start.end [1/1] (short) (narrow) %v4870_v43, 16  ;;  %v4877_v29 = vpack.c.bf16 %v4692_v15, %v4692_v15  ;;  %v4691_v33 = vrot.slane %v4677_v61, %v9147_v4 }
 0xd1a   : > { %v4880_v32 = vpack.c.bf16 %v4684_v22, %v4684_v22  ;;  %v4879_v5 = vpack.c.bf16 %v4693_v34, %v4693_v34  ;;  %v4694_v39 = vcombine.high %v4684_v22, %v8926_v36 }
 0xd1b   : > { %v4882_v11 = vpack.c.bf16 %v4691_v33, %v4691_v33  ;;  %v4695_v10 = vcombine.high %v4691_v33, %v8926_v36 }
 0xd1c   : > { %v4881_v16 = vpack.c.bf16 %v4694_v39, %v4694_v39 }
 0xd1d   : > { %5044 = vxpose.xlu0.c.b16.start.end [1/1] (short) (narrow) %v4871_v28, 16  ;;  %5012 = vxpose.xlu1.c.b16.start.end [1/1] (short) (narrow) %v4869_v31, 16  ;;  %v4883_v6 = vpack.c.bf16 %v4695_v10, %v4695_v10 }
 0xd21   : > { %5076 = vxpose.xlu0.c.b16.start.end [1/1] (short) (narrow) %v4873_v13, 16  ;;  %5124 = vxpose.xlu1.c.b16.start.end [1/1] (short) (narrow) %v4876_v59, 16 }
 0xd25   : > { %5108 = vxpose.xlu0.c.b16.start.end [1/1] (short) (narrow) %v4875_v8, 16  ;;  %5156 = vxpose.xlu1.c.b16.start.end [1/1] (short) (narrow) %v4878_v40, 16 }
 0xd29   : > { %5140 = vxpose.xlu0.c.b16.start.end [1/1] (short) (narrow) %v4877_v29, 16  ;;  %5188 = vxpose.xlu1.c.b16.start.end [1/1] (short) (narrow) %v4880_v32, 16 }
 0xd2d   : > { %5172 = vxpose.xlu0.c.b16.start.end [1/1] (short) (narrow) %v4879_v5, 16  ;;  %5220 = vxpose.xlu1.c.b16.start.end [1/1] (short) (narrow) %v4882_v11, 16 }
 0xd31   : > { %5204 = vxpose.xlu0.c.b16.start.end [1/1] (short) (narrow) %v4881_v16, 16 }
 0xd35   : > { %5236 = vxpose.xlu0.c.b16.start.end [1/1] (short) (narrow) %v4883_v6, 16 }
 0xd77   : > { %v9913_v56 = vpop.trf.xlu1  ;;  %v9915_v46 = vpop.trf.xlu0 }
 0xd78   : > { %v5252_v28 = vcombine.low %v9915_v46, %v9913_v56  ;;  %v5253_v5 = vcombine.high %v9915_v46, %v9913_v56 }
 0xd7a   : > { %v5260_v59 = vrot.slane %v5252_v28, %v9140_v58 }
 0xd7b   : > { %v9917_v25 = vpop.trf.xlu1  ;;  %v9919_v27 = vpop.trf.xlu0 }
 0xd7c   : > { %v5268_v47 = vcombine.low %v9919_v27, %v9917_v25 }
 0xd7e   : > { %v5276_v24 = vrot.slane %v5268_v47, %v9140_v58 }
 0xd7f   : > { %v5052_v14 = vpop.trf.xlu0  ;;  %v9921_v20 = vpop.trf.xlu1 }
 0xd80   : > { %v5316_v40 = vcombine.low %v5260_v59, %v5276_v24 }
 0xd82   : > { %v5324_v6 = vrot.slane %v5316_v40, %v9147_v4 }
 0xd83   : > { %v5084_v9 = vpop.trf.xlu0  ;;  %v5132_v37 = vpop.trf.xlu1 }
 0xd84   : > { %v5388_v42 = vcombine.low %v9921_v20, %v5084_v9  ;;  %v5389_v56 = vcombine.high %v9921_v20, %v5084_v9 }
 0xd86   : > { %v5396_v15 = vrot.slane %v5388_v42, %v9140_v58 }
 0xd87   : > { %v5116_v17 = vpop.trf.xlu0  ;;  %v5164_v35 = vpop.trf.xlu1 }
 0xd88   : > { %v5404_v31 = vcombine.low %v5052_v14, %v5116_v17  ;;  %v5405_v11 = vcombine.high %v5052_v14, %v5116_v17 }
 0xd8a   : > { %v5412_v53 = vrot.slane %v5404_v31, %v9140_v58  ;;  %v5269_v31 = vcombine.high %v9919_v27, %v9917_v25  ;;  %v5419_v46 = vrot.slane %v5405_v11, %v9140_v58 }
 0xd8b   : > { %v5148_v60 = vpop.trf.xlu0  ;;  %v5196_v43 = vpop.trf.xlu1 }
 0xd8c   : > { %v5284_v19 = vcombine.low %v5132_v37, %v5196_v43  ;;  %v5452_v29 = vcombine.low %v5396_v15, %v5412_v53  ;;  %v5453_v47 = vcombine.high %v5396_v15, %v5412_v53  ;;  %v5285_v14 = vcombine.high %v5132_v37, %v5196_v43 }
 0xd8d   : > { %v5283_v37 = vrot.slane %v5269_v31, %v9140_v58  ;;  %v5403_v43 = vrot.slane %v5389_v56, %v9140_v58 }
 0xd8e   : > { %v5292_v13 = vrot.slane %v5284_v19, %v9140_v58  ;;  %v5460_v42 = vrot.slane %v5452_v29, %v9147_v4  ;;  %v5267_v29 = vrot.slane %v5253_v5, %v9140_v58 }
 0xd8f   : > { %v5180_v18 = vpop.trf.xlu0  ;;  %v5228_v49 = vpop.trf.xlu1 }
 0xd90   : > { %v5300_v38 = vcombine.low %v5164_v35, %v5228_v49  ;;  %v5301_v19 = vcombine.high %v5164_v35, %v5228_v49  ;;  %v5467_v49 = vrot.slane %v5453_v47, %v9147_v4 }
 0xd92   : > { %v5308_v41 = vrot.slane %v5300_v38, %v9140_v58  ;;  %v5315_v25 = vrot.slane %v5301_v19, %v9140_v58 }
 0xd93   : > { %v5212_v0 = vpop.trf.xlu0 }
 0xd94   : > { %v5348_v44 = vcombine.low %v5292_v13, %v5308_v41  ;;  %v5420_v61 = vcombine.low %v5148_v60, %v5212_v0  ;;  %v5349_v38 = vcombine.high %v5292_v13, %v5308_v41  ;;  %v5421_v28 = vcombine.high %v5148_v60, %v5212_v0 }
 0xd95   : > { %v5299_v13 = vrot.slane %v5285_v14, %v9140_v58 }
 0xd96   : > { %v5356_v32 = vrot.slane %v5348_v44, %v9147_v4  ;;  %v5428_v34 = vrot.slane %v5420_v61, %v9140_v58  ;;  %v5363_v27 = vrot.slane %v5349_v38, %v9147_v4  ;;  %v5435_v41 = vrot.slane %v5421_v28, %v9140_v58 }
 0xd97   : > { %v5244_v8 = vpop.trf.xlu0 }
 0xd98   : > { %v5436_v22 = vcombine.low %v5180_v18, %v5244_v8  ;;  %v5437_v39 = vcombine.high %v5180_v18, %v5244_v8  ;;  %v5380_v61 = vcombine.low %v5324_v6, %v5356_v32  ;;  %v5381_v9 = vcombine.high %v5324_v6, %v5356_v32 }
 0xd9a   : > { %v5444_v33 = vrot.slane %v5436_v22, %v9140_v58  ;;  %v5317_v22 = vcombine.high %v5260_v59, %v5276_v24  ;;  %v5451_v17 = vrot.slane %v5437_v39, %v9140_v58  ;;  %v5528_v24 = vshrl.u32 %v5380_v61, 16 }
 0xd9b   : > { %v5536_v32 = vshrl.u32 %v5381_v9, 16 }
 0xd9c   : > { %v5484_v16 = vcombine.low %v5428_v34, %v5444_v33  ;;  %v5485_v10 = vcombine.high %v5428_v34, %v5444_v33  ;;  %v5331_v59 = vrot.slane %v5317_v22, %v9147_v4  ;;  %v5500_v53 = vcombine.low %v5435_v41, %v5451_v17 }
 0xd9d   : > { %v5468_v34 = vcombine.low %v5403_v43, %v5419_v46  ;;  %v5364_v33 = vcombine.low %v5299_v13, %v5315_v25 }
 0xd9e   : > { %v5492_v44 = vrot.slane %v5484_v16, %v9147_v4  ;;  %v5499_v35 = vrot.slane %v5485_v10, %v9147_v4  ;;  %v5382_v39 = vcombine.low %v5331_v59, %v5363_v27  ;;  %v5332_v16 = vcombine.low %v5267_v29, %v5283_v37 }
 0xd9f   : > { %v5508_v10 = vrot.slane %v5500_v53, %v9147_v4  ;;  %v5476_v38 = vrot.slane %v5468_v34, %v9147_v4  ;;  %v5372_v28 = vrot.slane %v5364_v33, %v9147_v4 }
 0xda0   : > { %v5516_v18 = vcombine.low %v5460_v42, %v5492_v44  ;;  %v5517_v60 = vcombine.high %v5460_v42, %v5492_v44  ;;  %v5518_v15 = vcombine.low %v5467_v49, %v5499_v35  ;;  %v5519_v19 = vcombine.high %v5467_v49, %v5499_v35 }
 0xda1   : > { %v5544_v5 = vshrl.u32 %v5382_v39, 16  ;;  %v5383_v42 = vcombine.high %v5331_v59, %v5363_v27  ;;  %v5340_v44 = vrot.slane %v5332_v16, %v9147_v4  ;;  %v5520_v14 = vcombine.low %v5476_v38, %v5508_v10 }
 0xda2   : > { %v5526_v0 = vpack.i.b16 %v5516_v18, %v5380_v61  ;;  %v5529_v20 = vshrl.u32 %v5516_v18, 16  ;;  %v5537_v40 = vshrl.u32 %v5517_v60, 16  ;;  %v5534_v11 = vpack.i.b16 %v5517_v60, %v5381_v9 }
 0xda3   : > { %v5545_v47 = vshrl.u32 %v5518_v15, 16  ;;  %v5542_v31 = vpack.i.b16 %v5518_v15, %v5382_v39  ;;  %v5501_v61 = vcombine.high %v5435_v41, %v5451_v17  ;;  %v5553_v56 = vshrl.u32 %v5519_v19, 16 }
 0xda4   : > { %5588 = vxpose.xlu1.c.b16.start.end [1/1] (short) (narrow) %v5526_v0, 16  ;;  %v5530_v8 = vpack.i.b16 %v5529_v20, %v5528_v24  ;;  %v5538_v6 = vpack.i.b16 %v5537_v40, %v5536_v32  ;;  %v5469_v18 = vcombine.high %v5403_v43, %v5419_v46  ;;  %v5365_v60 = vcombine.high %v5299_v13, %v5315_v25 }
 0xda5   : > { %v5546_v22 = vpack.i.b16 %v5545_v47, %v5544_v5  ;;  %v5550_v0 = vpack.i.b16 %v5519_v19, %v5383_v42  ;;  %v5552_v35 = vshrl.u32 %v5383_v42, 16  ;;  %v5384_v49 = vcombine.low %v5340_v44, %v5372_v28 }
 0xda6   : > { %5604 = vxpose.xlu0.c.b16.start.end [1/1] (short) (narrow) %v5530_v8, 16  ;;  %v5333_v24 = vcombine.high %v5267_v29, %v5283_v37  ;;  %v5515_v20 = vrot.slane %v5501_v61, %v9147_v4  ;;  %v5561_v53 = vshrl.u32 %v5520_v14, 16  ;;  %v5521_v27 = vcombine.high %v5476_v38, %v5508_v10 }
 0xda7   : > { %v5554_v9 = vpack.i.b16 %v5553_v56, %v5552_v35  ;;  %v5483_v59 = vrot.slane %v5469_v18, %v9147_v4  ;;  %v5379_v17 = vrot.slane %v5365_v60, %v9147_v4  ;;  %v5558_v41 = vpack.i.b16 %v5520_v14, %v5384_v49 }
 0xda8   : > { %5620 = vxpose.xlu1.c.b16.start.end [1/1] (short) (narrow) %v5534_v11, 16  ;;  %v5560_v8 = vshrl.u32 %v5384_v49, 16  ;;  %v5385_v46 = vcombine.high %v5340_v44, %v5372_v28  ;;  %v5569_v43 = vshrl.u32 %v5521_v27, 16  ;;  %v5347_v13 = vrot.slane %v5333_v24, %v9147_v4  ;;  %v9969_v28 = vpop.f32.mrf.mxu0 }
 0xda9   : > { %v5522_v37 = vcombine.low %v5483_v59, %v5515_v20  ;;  %v5523_v11 = vcombine.high %v5483_v59, %v5515_v20 }
 0xdaa   : > { %5636 = vxpose.xlu0.c.b16.start.end [1/1] (short) (narrow) %v5538_v6, 16  ;;  %v5562_v25 = vpack.i.b16 %v5561_v53, %v5560_v8  ;;  %v5566_v40 = vpack.i.b16 %v5521_v27, %v5385_v46  ;;  %v5568_v15 = vshrl.u32 %v5385_v46, 16  ;;  %v5386_v29 = vcombine.low %v5347_v13, %v5379_v17 }
 0xdab   : > { %v5577_v33 = vshrl.u32 %v5522_v37, 16  ;;  %v5387_v16 = vcombine.high %v5347_v13, %v5379_v17  ;;  %v5585_v6 = vshrl.u32 %v5523_v11, 16 }
 0xdac   : > { %5652 = vxpose.xlu1.c.b16.start.end [1/1] (short) (narrow) %v5542_v31, 16  ;;  %v5570_v34 = vpack.i.b16 %v5569_v43, %v5568_v15  ;;  %v5574_v32 = vpack.i.b16 %v5522_v37, %v5386_v29  ;;  %v5576_v39 = vshrl.u32 %v5386_v29, 16 }
 0xdad   : > { %v5582_v47 = vpack.i.b16 %v5523_v11, %v5387_v16  ;;  %v5584_v19 = vshrl.u32 %v5387_v16, 16 }
 0xdae   : > { %5668 = vxpose.xlu0.c.b16.start.end [1/1] (short) (narrow) %v5546_v22, 16  ;;  %v5578_v10 = vpack.i.b16 %v5577_v33, %v5576_v39 }
 0xdaf   : > { %v5586_v38 = vpack.i.b16 %v5585_v6, %v5584_v19 }
 0xdb0   : > { %5684 = vxpose.xlu1.c.b16.start.end [1/1] (short) (narrow) %v5550_v0, 16 }
 0xdb2   : > { %5700 = vxpose.xlu0.c.b16.start.end [1/1] (short) (narrow) %v5554_v9, 16 }
 0xdb4   : > { %5716 = vxpose.xlu1.c.b16.start.end [1/1] (short) (narrow) %v5558_v41, 16 }
 0xdb6   : > { %5732 = vxpose.xlu0.c.b16.start.end [1/1] (short) (narrow) %v5562_v25, 16 }
 0xdb8   : > { %5748 = vxpose.xlu1.c.b16.start.end [1/1] (short) (narrow) %v5566_v40, 16 }
 0xdba   : > { %5764 = vxpose.xlu0.c.b16.start.end [1/1] (short) (narrow) %v5570_v34, 16 }
 0xdbc   : > { %5780 = vxpose.xlu1.c.b16.start.end [1/1] (short) (narrow) %v5574_v32, 16 }
 0xdbe   : > { %5796 = vxpose.xlu0.c.b16.start.end [1/1] (short) (narrow) %v5578_v10, 16 }
 0xdc0   : > { %5812 = vxpose.xlu1.c.b16.start.end [1/1] (short) (narrow) %v5582_v47, 16 }
 0xdc2   : > { %5828 = vxpose.xlu0.c.b16.start.end [1/1] (short) (narrow) %v5586_v38, 16 }
 0xdc4   : > { %4698 = vrot.lane.b32.xlu1 %v9818_v12, %s8928_s11 }
 0xdc8   : > { %4704 = vrot.lane.b32.xlu1 %v9818_v12, %s10452_s20 }
 0xdcb   : > { %4700 = vrot.lane.b32.xlu0 %v9969_v28, %s8928_s11 }
 0xdcc   : > { %4706 = vrot.lane.b32.xlu1 %v9969_v28, %s10452_s20  ;;  %s10455_s20 = smov 32  }
 0xdcf   : > { %4710 = vrot.lane.b32.xlu0 %v9818_v12, %s10453_s26 }
 0xdd0   : > { %4712 = vrot.lane.b32.xlu1 %v9969_v28, %s10453_s26  ;;  %s10456_s26 = smov 16  }
 0xe06   : > { %v5596_v31 = vpop.trf.xlu1 }
 0xe08   : > { %v5612_v5 = vpop.trf.xlu0 }
 0xe0a   : > { %v5628_v42 = vpop.trf.xlu1 }
 0xe0c   : > { %v5644_v44 = vpop.trf.xlu0 }
 0xe0e   : > { %v5660_v61 = vpop.trf.xlu1 }
 0xe0f   : > { %v5844_v9 = vcombine.low %v5596_v31, %v5660_v61 }
 0xe10   : > { %v5676_v22 = vpop.trf.xlu0 }
 0xe11   : > { %v5894_v27 = vcombine.low %v5612_v5, %v5676_v22  ;;  %v5851_v43 = vrot.slane %v5844_v9, %v9140_v58 }
 0xe12   : > { %v5692_v56 = vpop.trf.xlu1 }
 0xe13   : > { %v5852_v49 = vcombine.low %v5628_v42, %v5692_v56  ;;  %v5901_v37 = vrot.slane %v5894_v27, %v9140_v58 }
 0xe14   : > { %v5708_v14 = vpop.trf.xlu0 }
 0xe15   : > { %v5902_v20 = vcombine.low %v5644_v44, %v5708_v14  ;;  %v5859_v17 = vrot.slane %v5852_v49, %v9140_v58 }
 0xe16   : > { %v5724_v18 = vpop.trf.xlu1 }
 0xe17   : > { %v5909_v8 = vrot.slane %v5902_v20, %v9140_v58  ;;  %v5876_v34 = vcombine.low %v5851_v43, %v5859_v17 }
 0xe18   : > { %v5740_v60 = vpop.trf.xlu0 }
 0xe19   : > { %v5926_v33 = vcombine.low %v5901_v37, %v5909_v8  ;;  %v5883_v6 = vrot.slane %v5876_v34, %v9147_v4 }
 0xe1a   : > { %v5756_v0 = vpop.trf.xlu1 }
 0xe1b   : > { %v5933_v47 = vrot.slane %v5926_v33, %v9147_v4 }
 0xe1c   : > { %v5772_v35 = vpop.trf.xlu0 }
 0xe1e   : > { %v5788_v24 = vpop.trf.xlu1 }
 0xe1f   : > { %v5860_v59 = vcombine.low %v5724_v18, %v5788_v24 }
 0xe20   : > { %v5804_v53 = vpop.trf.xlu0 }
 0xe21   : > { %v5910_v46 = vcombine.low %v5740_v60, %v5804_v53  ;;  %v5867_v40 = vrot.slane %v5860_v59, %v9140_v58 }
 0xe22   : > { %v5820_v41 = vpop.trf.xlu1 }
 0xe23   : > { %v5868_v25 = vcombine.low %v5756_v0, %v5820_v41  ;;  %v5917_v11 = vrot.slane %v5910_v46, %v9140_v58 }
 0xe24   : > { %v5836_v13 = vpop.trf.xlu0 }
 0xe25   : > { %v5875_v15 = vrot.slane %v5868_v25, %v9140_v58  ;;  %v5918_v29 = vcombine.low %v5772_v35, %v5836_v13 }
 0xe27   : > { %v5884_v32 = vcombine.low %v5867_v40, %v5875_v15  ;;  %v5925_v39 = vrot.slane %v5918_v29, %v9140_v58 }
 0xe29   : > { %v5891_v16 = vrot.slane %v5884_v32, %v9147_v4  ;;  %v5934_v10 = vcombine.low %v5917_v11, %v5925_v39 }
 0xe2b   : > { %v5941_v19 = vrot.slane %v5934_v10, %v9147_v4  ;;  %v5892_v38 = vcombine.low %v5883_v6, %v5891_v16  ;;  %v5893_v31 = vcombine.high %v5883_v6, %v5891_v16 }
 0xe2d   : > { %v5942_v5 = vcombine.low %v5933_v47, %v5941_v19  ;;  %v5943_v42 = vcombine.high %v5933_v47, %v5941_v19  ;;  %v5948_v56 = vshrl.u32 %v5892_v38, 16  ;;  %v5956_v0 = vshrl.u32 %v5893_v31, 16 }
 0xe2f   : > { %v5946_v44 = vpack.i.b16 %v5942_v5, %v5892_v38  ;;  %v5954_v61 = vpack.i.b16 %v5943_v42, %v5893_v31  ;;  %v5949_v22 = vshrl.u32 %v5942_v5, 16  ;;  %v5957_v60 = vshrl.u32 %v5943_v42, 16 }
 0xe31   : > { %8547 = vmatpush3.bf16.msra.mxu0 %v5946_v44  ;;  %8559 = vmatpush3.bf16.msra.mxu1 %v5954_v61  ;;  %v5950_v14 = vpack.i.b16 %v5949_v22, %v5948_v56  ;;  %v5958_v51 = vpack.i.b16 %v5957_v60, %v5956_v0 }
 0xe32   : > { %8552 = vmatprep.subr.bf16.mxu0 %v8926_v36  ;;  %8570 = vmatprep.subr.bf16.mxu1 %v8926_v36 }
 0xe34   : > { %8549 = vmatmul.mubr.msk.bf16.vlgmr.msra.gmra.mxu0 %vm2102_vm2, %v4986_v63  ;;  %8561 = vmatmul.mubr.msk.bf16.vlgmr.msra.gmra.mxu1 %vm2102_vm2, %v4992_v26 }
 0xe35   : > { %8553 = vmatpush3.bf16.msra.mxu0 %v5950_v14  ;;  %8554 = vmatprep.mubr.msk.bf16.mxu0 %vm8933_vm1, %v8926_v36 }
 0xe36   : > { %v4699_v18 = vpop.permute.xlu1 %4698  ;;  %8564 = vmatprep.subr.bf16.mxu0 %v8926_v36  ;;  %8572 = vmatprep.mubr.msk.bf16.mxu1 %vm8933_vm1, %v8926_v36 }
 0xe3a   : > { %v4705_v21 = vpop.permute.xlu1 %4704 }
 0xe3b   : > { %v4716_v63 = vcombine.low %v9818_v12, %v4705_v21  ;;  %v4717_v35 = vcombine.high %v9818_v12, %v4705_v21 }
 0xe3c   : > { %8555 = vmatmul.mubr.msk.bf16.vlgmr.msra.gmra.mxu0 %vm2102_vm2, %v9885_v52 }
 0xe3d   : > { %8565 = vmatpush3.bf16.msra.mxu0 %v5958_v51  ;;  %v4701_v23 = vpop.permute.xlu0 %4700  ;;  %8566 = vmatprep.mubr.msk.bf16.mxu0 %vm8933_vm1, %v8926_v36  ;;  %v4724_v20 = vrot.slane %v4716_v63, %v9140_v58  ;;  %v4731_v27 = vrot.slane %v4717_v35, %v9140_v58 }
 0xe3e   : > { %8576 = vmatprep.subr.bf16.mxu0 %v8926_v36  ;;  %v4707_v30 = vpop.permute.xlu1 %4706 }
 0xe3f   : > { %v4784_v46 = vcombine.low %v9969_v28, %v4707_v30  ;;  %v4785_v10 = vcombine.high %v9969_v28, %v4707_v30 }
 0xe41   : > { %v4711_v26 = vpop.permute.xlu0 %4710  ;;  %v4792_v29 = vrot.slane %v4784_v46, %v9140_v58  ;;  %v4799_v42 = vrot.slane %v4785_v10, %v9140_v58 }
 0xe42   : > { %v4732_v49 = vcombine.low %v4699_v18, %v4711_v26  ;;  %v4733_v24 = vcombine.high %v4699_v18, %v4711_v26  ;;  %v4713_v53 = vpop.permute.xlu1 %4712 }
 0xe43   : > { %v4800_v8 = vcombine.low %v4701_v23, %v4713_v53  ;;  %v4801_v11 = vcombine.high %v4701_v23, %v4713_v53 }
 0xe44   : > { %v4740_v9 = vrot.slane %v4732_v49, %v9140_v58  ;;  %v4747_v52 = vrot.slane %v4733_v24, %v9140_v58  ;;  %8567 = vmatmul.mubr.msk.bf16.vlgmr.msra.gmra.mxu0 %vm2102_vm2, %v9887_v45 }
 0xe45   : > { %8578 = vmatprep.mubr.msk.bf16.mxu0 %vm8933_vm1, %v8926_v36  ;;  %v4808_v37 = vrot.slane %v4800_v8, %v9140_v58  ;;  %v4815_v19 = vrot.slane %v4801_v11, %v9140_v58 }
 0xe46   : > { %v4748_v59 = vcombine.low %v4724_v20, %v4740_v9  ;;  %v4749_v17 = vcombine.high %v4724_v20, %v4740_v9  ;;  %v4764_v41 = vcombine.low %v4731_v27, %v4747_v52  ;;  %v4765_v45 = vcombine.high %v4731_v27, %v4747_v52 }
 0xe47   : > { %v4816_v32 = vcombine.low %v4792_v29, %v4808_v37  ;;  %v4817_v38 = vcombine.high %v4792_v29, %v4808_v37  ;;  %v4832_v22 = vcombine.low %v4799_v42, %v4815_v19  ;;  %v4833_v60 = vcombine.high %v4799_v42, %v4815_v19 }
 0xe48   : > { %v4756_v12 = vrot.slane %v4748_v59, %v9147_v4  ;;  %v4763_v13 = vrot.slane %v4749_v17, %v9147_v4  ;;  %v4772_v15 = vrot.slane %v4764_v41, %v9147_v4  ;;  %v4779_v16 = vrot.slane %v4765_v45, %v9147_v4 }
 0xe49   : > { %v4824_v5 = vrot.slane %v4816_v32, %v9147_v4  ;;  %v4831_v56 = vrot.slane %v4817_v38, %v9147_v4  ;;  %v4840_v21 = vrot.slane %v4832_v22, %v9147_v4  ;;  %v4847_v63 = vrot.slane %v4833_v60, %v9147_v4 }
 0xe4a   : > { %v6228_v25 = vpack.c.bf16 %v4756_v12, %v4756_v12  ;;  %v4780_v43 = vcombine.high %v4756_v12, %v8926_v36  ;;  %v6230_v34 = vpack.c.bf16 %v4763_v13, %v4763_v13  ;;  %v4781_v33 = vcombine.high %v4763_v13, %v8926_v36 }
 0xe4b   : > { %v6232_v39 = vpack.c.bf16 %v4772_v15, %v4772_v15  ;;  %v4782_v47 = vcombine.high %v4772_v15, %v8926_v36  ;;  %v6234_v31 = vpack.c.bf16 %v4779_v16, %v4779_v16  ;;  %v4783_v61 = vcombine.high %v4779_v16, %v8926_v36 }
 0xe4c   : > { %6244 = vxpose.xlu0.c.b16.start.end [1/1] (short) (narrow) %v6228_v25, 16  ;;  %v6229_v40 = vpack.c.bf16 %v4780_v43, %v4780_v43  ;;  %v6231_v6 = vpack.c.bf16 %v4781_v33, %v4781_v33  ;;  %v6236_v28 = vpack.c.bf16 %v4824_v5, %v4824_v5  ;;  %v4848_v18 = vcombine.high %v4824_v5, %v8926_v36 }
 0xe4d   : > { %v6233_v44 = vpack.c.bf16 %v4782_v47, %v4782_v47  ;;  %v6235_v14 = vpack.c.bf16 %v4783_v61, %v4783_v61  ;;  %v6238_v0 = vpack.c.bf16 %v4831_v56, %v4831_v56  ;;  %v4849_v23 = vcombine.high %v4831_v56, %v8926_v36 }
 0xe4e   : > { %6260 = vxpose.xlu1.c.b16.start.end [1/1] (short) (narrow) %v6229_v40, 16  ;;  %v6237_v51 = vpack.c.bf16 %v4848_v18, %v4848_v18  ;;  %v6240_v30 = vpack.c.bf16 %v4840_v21, %v4840_v21  ;;  %v4850_v35 = vcombine.high %v4840_v21, %v8926_v36  ;;  %v6242_v49 = vpack.c.bf16 %v4847_v63, %v4847_v63 }
 0xe4f   : > { %v6239_v26 = vpack.c.bf16 %v4849_v23, %v4849_v23  ;;  %v4851_v20 = vcombine.high %v4847_v63, %v8926_v36 }
 0xe50   : > { %6276 = vxpose.xlu0.c.b16.start.end [1/1] (short) (narrow) %v6230_v34, 16  ;;  %v6241_v24 = vpack.c.bf16 %v4850_v35, %v4850_v35 }
 0xe51   : > { %v6243_v9 = vpack.c.bf16 %v4851_v20, %v4851_v20 }
 0xe52   : > { %6308 = vxpose.xlu1.c.b16.start.end [1/1] (short) (narrow) %v6232_v39, 16 }
 0xe54   : > { %6292 = vxpose.xlu0.c.b16.start.end [1/1] (short) (narrow) %v6231_v6, 16 }
 0xe56   : > { %6340 = vxpose.xlu1.c.b16.start.end [1/1] (short) (narrow) %v6234_v31, 16 }
 0xe58   : > { %6324 = vxpose.xlu0.c.b16.start.end [1/1] (short) (narrow) %v6233_v44, 16 }
 0xe5a   : > { %6372 = vxpose.xlu1.c.b16.start.end [1/1] (short) (narrow) %v6236_v28, 16 }
 0xe5c   : > { %6356 = vxpose.xlu0.c.b16.start.end [1/1] (short) (narrow) %v6235_v14, 16 }
 0xe5e   : > { %6404 = vxpose.xlu1.c.b16.start.end [1/1] (short) (narrow) %v6238_v0, 16 }
 0xe60   : > { %6388 = vxpose.xlu0.c.b16.start.end [1/1] (short) (narrow) %v6237_v51, 16 }
 0xe62   : > { %6436 = vxpose.xlu1.c.b16.start.end [1/1] (short) (narrow) %v6240_v30, 16 }
 0xe64   : > { %6420 = vxpose.xlu0.c.b16.start.end [1/1] (short) (narrow) %v6239_v26, 16 }
 0xe66   : > { %6468 = vxpose.xlu1.c.b16.start.end [1/1] (short) (narrow) %v6242_v49, 16 }
 0xe68   : > { %6452 = vxpose.xlu0.c.b16.start.end [1/1] (short) (narrow) %v6241_v24, 16 }
 0xe6c   : > { %6484 = vxpose.xlu0.c.b16.start.end [1/1] (short) (narrow) %v6243_v9, 16 }
 0xeae   : > { %v6252_v52 = vpop.trf.xlu0 }
 0xeb0   : > { %v6268_v53 = vpop.trf.xlu1 }
 0xeb2   : > { %v6284_v27 = vpop.trf.xlu0 }
 0xeb4   : > { %v6316_v59 = vpop.trf.xlu1 }
 0xeb5   : > { %v6500_v17 = vcombine.low %v6252_v52, %v6316_v59  ;;  %v6501_v12 = vcombine.high %v6252_v52, %v6316_v59 }
 0xeb6   : > { %v6300_v41 = vpop.trf.xlu0 }
 0xeb7   : > { %v6508_v46 = vrot.slane %v6500_v17, %v9140_v58  ;;  %v6515_v25 = vrot.slane %v6501_v12, %v9140_v58 }
 0xeb8   : > { %v6348_v8 = vpop.trf.xlu1 }
 0xeb9   : > { %v6516_v43 = vcombine.low %v6284_v27, %v6348_v8  ;;  %v6517_v13 = vcombine.high %v6284_v27, %v6348_v8 }
 0xeba   : > { %v6332_v45 = vpop.trf.xlu0 }
 0xebb   : > { %v6524_v37 = vrot.slane %v6516_v43, %v9140_v58  ;;  %v6531_v40 = vrot.slane %v6517_v13, %v9140_v58  ;;  %v6637_v15 = vcombine.high %v6268_v53, %v6332_v45  ;;  %v6636_v29 = vcombine.low %v6268_v53, %v6332_v45 }
 0xebc   : > { %v6380_v34 = vpop.trf.xlu1 }
 0xebd   : > { %v6565_v33 = vcombine.high %v6508_v46, %v6524_v37  ;;  %v6580_v11 = vcombine.low %v6515_v25, %v6531_v40  ;;  %v6581_v32 = vcombine.high %v6515_v25, %v6531_v40  ;;  %v6644_v16 = vrot.slane %v6636_v29, %v9140_v58 }
 0xebe   : > { %v6364_v39 = vpop.trf.xlu0  ;;  %v6651_v10 = vrot.slane %v6637_v15, %v9140_v58  ;;  %v6564_v18 = vcombine.low %v6508_v46, %v6524_v37 }
 0xebf   : > { %v6652_v6 = vcombine.low %v6300_v41, %v6364_v39  ;;  %v6653_v47 = vcombine.high %v6300_v41, %v6364_v39  ;;  %v6579_v59 = vrot.slane %v6565_v33, %v9147_v4  ;;  %v6588_v17 = vrot.slane %v6580_v11, %v9147_v4 }
 0xec0   : > { %v6412_v19 = vpop.trf.xlu1  ;;  %v6572_v20 = vrot.slane %v6564_v18, %v9147_v4  ;;  %v6595_v12 = vrot.slane %v6581_v32, %v9147_v4 }
 0xec1   : > { %v6660_v38 = vrot.slane %v6652_v6, %v9140_v58  ;;  %v6667_v31 = vrot.slane %v6653_v47, %v9140_v58 }
 0xec2   : > { %v6396_v5 = vpop.trf.xlu0 }
 0xec3   : > { %v6701_v42 = vcombine.high %v6644_v16, %v6660_v38  ;;  %v6716_v44 = vcombine.low %v6651_v10, %v6667_v31  ;;  %v6717_v61 = vcombine.high %v6651_v10, %v6667_v31  ;;  %v6700_v30 = vcombine.low %v6644_v16, %v6660_v38 }
 0xec4   : > { %v6444_v22 = vpop.trf.xlu1 }
 0xec5   : > { %v6532_v28 = vcombine.low %v6380_v34, %v6444_v22  ;;  %v6533_v56 = vcombine.high %v6380_v34, %v6444_v22  ;;  %v6708_v41 = vrot.slane %v6700_v30, %v9147_v4  ;;  %v6715_v6 = vrot.slane %v6701_v42, %v9147_v4 }
 0xec6   : > { %v6428_v14 = vpop.trf.xlu0  ;;  %v6724_v47 = vrot.slane %v6716_v44, %v9147_v4 }
 0xec7   : > { %v6540_v0 = vrot.slane %v6532_v28, %v9140_v58  ;;  %v6547_v21 = vrot.slane %v6533_v56, %v9140_v58 }
 0xec8   : > { %v6476_v60 = vpop.trf.xlu1 }
 0xec9   : > { %v6548_v51 = vcombine.low %v6412_v19, %v6476_v60  ;;  %v6549_v23 = vcombine.high %v6412_v19, %v6476_v60  ;;  %v6731_v19 = vrot.slane %v6717_v61, %v9147_v4 }
 0xeca   : > { %v6460_v63 = vpop.trf.xlu0 }
 0xecb   : > { %v6556_v26 = vrot.slane %v6548_v51, %v9140_v58  ;;  %v6563_v35 = vrot.slane %v6549_v23, %v9140_v58  ;;  %v6668_v49 = vcombine.low %v6396_v5, %v6460_v63  ;;  %v6669_v24 = vcombine.high %v6396_v5, %v6460_v63 }
 0xecd   : > { %v6596_v9 = vcombine.low %v6540_v0, %v6556_v26  ;;  %v6597_v52 = vcombine.high %v6540_v0, %v6556_v26  ;;  %v6612_v53 = vcombine.low %v6547_v21, %v6563_v35  ;;  %v6613_v27 = vcombine.high %v6547_v21, %v6563_v35 }
 0xece   : > { %v6492_v8 = vpop.trf.xlu0  ;;  %v6676_v13 = vrot.slane %v6668_v49, %v9140_v58  ;;  %v6683_v37 = vrot.slane %v6669_v24, %v9140_v58 }
 0xecf   : > { %v6604_v46 = vrot.slane %v6596_v9, %v9147_v4  ;;  %v6611_v25 = vrot.slane %v6597_v52, %v9147_v4  ;;  %v6620_v43 = vrot.slane %v6612_v53, %v9147_v4  ;;  %v6627_v45 = vrot.slane %v6613_v27, %v9147_v4 }
 0xed0   : > { %v6684_v40 = vcombine.low %v6428_v14, %v6492_v8  ;;  %v6685_v15 = vcombine.high %v6428_v14, %v6492_v8 }
 0xed1   : > { %v6628_v29 = vcombine.low %v6572_v20, %v6604_v46  ;;  %v6629_v34 = vcombine.high %v6572_v20, %v6604_v46  ;;  %v10066_v33 = vcombine.low %v6579_v59, %v6611_v25  ;;  %v10068_v11 = vcombine.high %v6579_v59, %v6611_v25 }
 0xed2   : > { %v6692_v32 = vrot.slane %v6684_v40, %v9140_v58  ;;  %v6699_v39 = vrot.slane %v6685_v15, %v9140_v58  ;;  %v10072_v16 = vcombine.low %v6588_v17, %v6620_v43  ;;  %v10074_v10 = vcombine.high %v6588_v17, %v6620_v43 }
 0xed3   : > { %v6776_v38 = vshrl.u32 %v6628_v29, 16  ;;  %v6784_v56 = vshrl.u32 %v6629_v34, 16  ;;  %v6792_v14 = vshrl.u32 %v10066_v33, 16  ;;  %v10080_v18 = vcombine.low %v6595_v12, %v6627_v45 }
 0xed4   : > { %v6732_v31 = vcombine.low %v6676_v13, %v6692_v32  ;;  %v6733_v5 = vcombine.high %v6676_v13, %v6692_v32  ;;  %v6748_v22 = vcombine.low %v6683_v37, %v6699_v39  ;;  %v6749_v28 = vcombine.high %v6683_v37, %v6699_v39 }
 0xed5   : > { %v10082_v60 = vcombine.high %v6595_v12, %v6627_v45  ;;  %v6800_v21 = vshrl.u32 %v10068_v11, 16  ;;  %v6808_v51 = vshrl.u32 %v10072_v16, 16  ;;  %v6816_v23 = vshrl.u32 %v10074_v10, 16 }
 0xed6   : > { %v6740_v0 = vrot.slane %v6732_v31, %v9147_v4  ;;  %v6747_v42 = vrot.slane %v6733_v5, %v9147_v4  ;;  %v6756_v44 = vrot.slane %v6748_v22, %v9147_v4  ;;  %v6763_v61 = vrot.slane %v6749_v28, %v9147_v4 }
 0xed7   : > { %v6824_v30 = vshrl.u32 %v10080_v18, 16  ;;  %v6832_v17 = vshrl.u32 %v10082_v60, 16 }
 0xed8   : > { %v6764_v63 = vcombine.low %v6708_v41, %v6740_v0  ;;  %v6765_v26 = vcombine.high %v6708_v41, %v6740_v0  ;;  %v10092_v35 = vcombine.low %v6715_v6, %v6747_v42  ;;  %v10094_v49 = vcombine.high %v6715_v6, %v6747_v42 }
 0xed9   : > { %v10096_v24 = vcombine.low %v6724_v47, %v6756_v44  ;;  %v10098_v20 = vcombine.high %v6724_v47, %v6756_v44  ;;  %v10100_v9 = vcombine.low %v6731_v19, %v6763_v61  ;;  %v10102_v52 = vcombine.high %v6731_v19, %v6763_v61 }
 0xeda   : > { %v6774_v53 = vpack.i.b16 %v6764_v63, %v6628_v29  ;;  %v6777_v27 = vshrl.u32 %v6764_v63, 16  ;;  %v6782_v59 = vpack.i.b16 %v6765_v26, %v6629_v34  ;;  %v6790_v12 = vpack.i.b16 %v10092_v35, %v10066_v33 }
 0xedb   : > { %v6793_v41 = vshrl.u32 %v10092_v35, 16  ;;  %v6798_v8 = vpack.i.b16 %v10094_v49, %v10068_v11  ;;  %v6806_v46 = vpack.i.b16 %v10096_v24, %v10072_v16  ;;  %v6785_v43 = vshrl.u32 %v6765_v26, 16 }
 0xedc   : > { %6836 = vxpose.xlu1.c.b16.start.end [1/1] (short) (narrow) %v6774_v53, 16  ;;  %v6778_v25 = vpack.i.b16 %v6777_v27, %v6776_v38  ;;  %v6801_v13 = vshrl.u32 %v10094_v49, 16  ;;  %v6814_v45 = vpack.i.b16 %v10098_v20, %v10074_v10  ;;  %v6809_v40 = vshrl.u32 %v10096_v24, 16 }
 0xedd   : > { %v6794_v37 = vpack.i.b16 %v6793_v41, %v6792_v14  ;;  %v6822_v15 = vpack.i.b16 %v10100_v9, %v10080_v18  ;;  %v6817_v29 = vshrl.u32 %v10098_v20, 16  ;;  %v6825_v33 = vshrl.u32 %v10100_v9, 16 }
 0xede   : > { %6852 = vxpose.xlu0.c.b16.start.end [1/1] (short) (narrow) %v6778_v25, 16  ;;  %v6802_v34 = vpack.i.b16 %v6801_v13, %v6800_v21  ;;  %v6830_v32 = vpack.i.b16 %v10102_v52, %v10082_v60  ;;  %v6833_v39 = vshrl.u32 %v10102_v52, 16  ;;  %v6810_v6 = vpack.i.b16 %v6809_v40, %v6808_v51 }
 0xedf   : > { %v6818_v47 = vpack.i.b16 %v6817_v29, %v6816_v23  ;;  %v6786_v10 = vpack.i.b16 %v6785_v43, %v6784_v56  ;;  %v6826_v19 = vpack.i.b16 %v6825_v33, %v6824_v30 }
 0xee0   : > { %6868 = vxpose.xlu1.c.b16.start.end [1/1] (short) (narrow) %v6782_v59, 16  ;;  %v10123_v38 = vpack.i.b16 %v6833_v39, %v6832_v17 }
 0xee2   : > { %6884 = vxpose.xlu0.c.b16.start.end [1/1] (short) (narrow) %v6786_v10, 16 }
 0xef4   : > { %v5997_v31 = vpop.f32.mrf.mxu0  ;;  %v6085_v5 = vpop.f32.mrf.mxu1 }
 0xef5   : > { %v5998_v22 = vadd.f32 %v5997_v31, %v9453_v55  ;;  %v6086_v18 = vadd.f32 %v6085_v5, %v9519_v50 }
 0xef6   : > { %v8550_v28 = vpop.f32.mrf.mxu0  ;;  %v8562_v14 = vpop.f32.mrf.mxu1 }
 0xef7   : > { %v6136_v0 = vsel %vm2102_vm2, %v5998_v22, -inf  ;;  %v6148_v23 = vsel %vm2102_vm2, %v6086_v18, -inf }
 0xef8   : > { %v6088_v42 = vpop.f32.mrf.mxu1  ;;  %6137 = vmax.xlane.f32.xlu1 %v6136_v0  ;;  %v6000_v44 = vpop.f32.mrf.mxu0 }
 0xef9   : > { %v6001_v61 = vadd.f32 %v6000_v44, %v9468_v57  ;;  %v6089_v51 = vadd.f32 %v6088_v42, %v9529_v3 }
 0xefa   : > { %v8551_v56 = vpop.f32.mrf.mxu0  ;;  %v8563_v21 = vpop.f32.mrf.mxu1 }
 0xefb   : > { %v6139_v30 = vsel %vm2102_vm2, %v6001_v61, -inf  ;;  %v6151_v26 = vsel %vm2102_vm2, %v6089_v51, -inf }
 0xefc   : > { %6149 = vmax.xlane.f32.xlu1 %v6148_v23  ;;  %6140 = vmax.xlane.f32.xlu0 %v6139_v30  ;;  %v6041_v55 = vpop.f32.mrf.mxu0 }
 0xefd   : > { %v6042_v50 = vadd.f32 %v6041_v55, %v9485_v7 }
 0xefe   : > { %v8556_v63 = vpop.f32.mrf.mxu0 }
 0xeff   : > { %v6142_v35 = vsel %vm2102_vm2, %v6042_v50, -inf }
 0xf00   : > { %6152 = vmax.xlane.f32.xlu0 %v6151_v26  ;;  %6143 = vmax.xlane.f32.xlu1 %v6142_v35  ;;  %v6044_v57 = vpop.f32.mrf.mxu0 }
 0xf01   : > { %v6045_v20 = vadd.f32 %v6044_v57, %v9501_v1 }
 0xf02   : > { %v8557_v3 = vpop.f32.mrf.mxu0 }
 0xf03   : > { %v6145_v9 = vsel %vm2102_vm2, %v6045_v20, -inf }
 0xf04   : > { %6146 = vmax.xlane.f32.xlu0 %v6145_v9  ;;  %v6129_v53 = vpop.f32.mrf.mxu0 }
 0xf05   : > { %v10138_v7 = vadd.f32 %v6129_v53, %v9459_v54 }
 0xf06   : > { %v8568_v27 = vpop.f32.mrf.mxu0 }
 0xf07   : > { %v6154_v25 = vsel %vm2102_vm2, %v10138_v7, -inf }
 0xf08   : > { %v6132_v59 = vpop.f32.mrf.mxu0 }
 0xf09   : > { %v10141_v41 = vadd.f32 %v6132_v59, %v9479_v62 }
 0xf0a   : > { %v8569_v17 = vpop.f32.mrf.mxu0 }
 0xf0b   : > { %v6157_v1 = vsel %vm2102_vm2, %v10141_v41, -inf }
 0xf2d   : > { %6900 = vxpose.xlu1.c.b16.start.end [1/1] (short) (narrow) %v6790_v12, 16 }
 0xf31   : > { %6916 = vxpose.xlu0.c.b16.start.end [1/1] (short) (narrow) %v6794_v37, 16 }
 0xf3a   : > { %6155 = vmax.xlane.f32.xlu1 %v6154_v25 }
 0xf3e   : > { %6158 = vmax.xlane.f32.xlu0 %v6157_v1  ;;  %v6844_v54 = vpop.trf.xlu1 }
 0xf40   : > { %v10153_v62 = vpop.trf.xlu0 }
 0xf42   : > { %v6876_v12 = vpop.trf.xlu1 }
 0xf44   : > { %v10155_v43 = vpop.trf.xlu0 }
 0xf67   : > { %6932 = vxpose.xlu1.c.b16.start.end [1/1] (short) (narrow) %v6798_v8, 16 }
 0xf6b   : > { %6964 = vxpose.xlu1.c.b16.start.end [1/1] (short) (narrow) %v6806_v46, 16  ;;  %6948 = vxpose.xlu0.c.b16.start.end [1/1] (short) (narrow) %v6802_v34, 16 }
 0xf6f   : > { %6996 = vxpose.xlu1.c.b16.start.end [1/1] (short) (narrow) %v6814_v45, 16  ;;  %6980 = vxpose.xlu0.c.b16.start.end [1/1] (short) (narrow) %v6810_v6, 16 }
 0xf73   : > { %7028 = vxpose.xlu1.c.b16.start.end [1/1] (short) (narrow) %v6822_v15, 16  ;;  %7012 = vxpose.xlu0.c.b16.start.end [1/1] (short) (narrow) %v6818_v47, 16 }
 0xf77   : > { %7044 = vxpose.xlu0.c.b16.start.end [1/1] (short) (narrow) %v6826_v19, 16 }
 0xf81   : > { %v6138_v13 = vpop.xlane.xlu1 %6137 }
 0xf82   : > { %v6160_v37 = vsub.f32 %v5998_v22, %v6138_v13 }
 0xf84   : > { %v6168_v11 = vmul.f32 1.442695, %v6160_v37 }
 0xf85   : > { %v6150_v49 = vpop.xlane.xlu1 %6149  ;;  %v6141_v8 = vpop.xlane.xlu0 %6140 }
 0xf86   : > { %8821 = vpow2.f32 %v6168_v11  ;;  %v6164_v16 = vsub.f32 %v6086_v18, %v6150_v49  ;;  %v6161_v24 = vsub.f32 %v6001_v61, %v6141_v8 }
 0xf88   : > { %v6176_v46 = vmul.f32 1.442695, %v6164_v16  ;;  %v6170_v45 = vmul.f32 1.442695, %v6161_v24 }
 0xf89   : > { %v6153_v40 = vpop.xlane.xlu0 %6152  ;;  %v6144_v15 = vpop.xlane.xlu1 %6143 }
 0xf8a   : > { %8823 = vpow2.f32 %v6176_v46  ;;  %v6165_v29 = vsub.f32 %v6089_v51, %v6153_v40  ;;  %v6162_v34 = vsub.f32 %v6042_v50, %v6144_v15 }
 0xf8b   : > { %8825 = vpow2.f32 %v6170_v45 }
 0xf8c   : > { %v6178_v33 = vmul.f32 1.442695, %v6165_v29  ;;  %v6172_v39 = vmul.f32 1.442695, %v6162_v34 }
 0xf8d   : > { %v6147_v6 = vpop.xlane.xlu0 %6146 }
 0xf8e   : > { %8827 = vpow2.f32 %v6178_v33  ;;  %v6163_v47 = vsub.f32 %v6045_v20, %v6147_v6 }
 0xf8f   : > { %8829 = vpow2.f32 %v6172_v39  ;;  %v6908_v21 = vpop.trf.xlu1 }
 0xf90   : > { %v6174_v10 = vmul.f32 1.442695, %v6163_v47  ;;  %v7092_v63 = vcombine.low %v6844_v54, %v6908_v21 }
 0xf92   : > { %8831 = vpow2.f32 %v6174_v10  ;;  %v10181_v3 = vrot.slane %v7092_v63, %v9140_v58 }
 0xf93   : > { %v10157_v19 = vpop.eup %8821  ;;  %v6924_v51 = vpop.trf.xlu0 }
 0xf94   : > { %v6184_v31 = vsel %vm2102_vm2, %v10157_v19, 0.0  ;;  %v7142_v9 = vcombine.low %v10153_v62, %v6924_v51 }
 0xf95   : > { %6185 = vadd.xlane.f32.xlu1 %v6184_v31 }
 0xf97   : > { %v10161_v5 = vpop.eup %8823 }
 0xf98   : > { %v10163_v22 = vpop.eup %8825  ;;  %v6196_v28 = vsel %vm2102_vm2, %v10161_v5, 0.0 }
 0xf99   : > { %6197 = vadd.xlane.f32.xlu1 %v6196_v28  ;;  %v6187_v14 = vsel %vm2102_vm2, %v10163_v22, 0.0 }
 0xf9a   : > { %6188 = vadd.xlane.f32.xlu0 %v6187_v14 }
 0xf9b   : > { %v10169_v18 = vpop.eup %8827 }
 0xf9c   : > { %v10171_v0 = vpop.eup %8829  ;;  %v6199_v42 = vsel %vm2102_vm2, %v10169_v18, 0.0 }
 0xf9d   : > { %v6190_v44 = vsel %vm2102_vm2, %v10171_v0, 0.0 }
 0xf9e   : > { %6191 = vadd.xlane.f32.xlu1 %v6190_v44  ;;  %6200 = vadd.xlane.f32.xlu0 %v6199_v42 }
 0xf9f   : > { %v8832_v61 = vpop.eup %8831 }
 0xfa0   : > { %v6193_v56 = vsel %vm2102_vm2, %v8832_v61, 0.0 }
 0xfa2   : > { %6194 = vadd.xlane.f32.xlu0 %v6193_v56 }
 0xfc3   : > { %v6156_v23 = vpop.xlane.xlu1 %6155 }
 0xfc4   : > { %v6166_v30 = vsub.f32 %v10138_v7, %v6156_v23  ;;  %v10191_v7 = vrot.slane %v7142_v9, %v9140_v58 }
 0xfc6   : > { %v6180_v55 = vmul.f32 1.442695, %v6166_v30 }
 0xfc7   : > { %v6159_v50 = vpop.xlane.xlu0 %6158 }
 0xfc8   : > { %8833 = vpow2.f32 %v6180_v55  ;;  %v6167_v26 = vsub.f32 %v10141_v41, %v6159_v50 }
 0xfc9   : > { %v6940_v35 = vpop.trf.xlu1 }
 0xfca   : > { %v6182_v57 = vmul.f32 1.442695, %v6167_v26  ;;  %v7100_v20 = vcombine.low %v6876_v12, %v6940_v35 }
 0xfcc   : > { %8835 = vpow2.f32 %v6182_v57  ;;  %v10185_v53 = vrot.slane %v7100_v20, %v9140_v58 }
 0xfcd   : > { %v6956_v27 = vpop.trf.xlu0 }
 0xfce   : > { %v7124_v59 = vcombine.low %v10181_v3, %v10185_v53  ;;  %v7150_v17 = vcombine.low %v10155_v43, %v6956_v27  ;;  %v6972_v43 = vpop.trf.xlu1 }
 0xfd0   : > { %v10194_v41 = vrot.slane %v7150_v17, %v9140_v58  ;;  %v7131_v30 = vrot.slane %v7124_v59, %v9147_v4 }
 0xfd1   : > { %v6988_v13 = vpop.trf.xlu0 }
 0xfd2   : > { %v7174_v25 = vcombine.low %v10191_v7, %v10194_v41  ;;  %v7004_v37 = vpop.trf.xlu1 }
 0xfd4   : > { %v7181_v53 = vrot.slane %v7174_v25, %v9147_v4 }
 0xfd5   : > { %v10198_v1 = vpop.eup %8833  ;;  %v7020_v11 = vpop.trf.xlu0 }
 0xfd6   : > { %v6202_v54 = vsel %vm2102_vm2, %v10198_v1, 0.0  ;;  %v7036_v49 = vpop.trf.xlu1 }
 0xfd7   : > { %6203 = vadd.xlane.f32.xlu1 %v6202_v54  ;;  %v7108_v28 = vcombine.low %v6972_v43, %v7036_v49 }
 0xfd9   : > { %v10202_v62 = vpop.eup %8835  ;;  %v7052_v8 = vpop.trf.xlu0  ;;  %v7115_v44 = vrot.slane %v7108_v28, %v9140_v58 }
 0xfda   : > { %v6205_v12 = vsel %vm2102_vm2, %v10202_v62, 0.0  ;;  %v7158_v56 = vcombine.low %v6988_v13, %v7052_v8 }
 0xfdb   : > { %6206 = vadd.xlane.f32.xlu0 %v6205_v12 }
 0xfdc   : > { %v7165_v55 = vrot.slane %v7158_v56, %v9140_v58 }
0x1004   : > { %7060 = vxpose.xlu1.c.b16.start.end [1/1] (short) (narrow) %v6830_v32, 16 }
0x1008   : > { %7076 = vxpose.xlu0.c.b16.start.end [1/1] (short) (narrow) %v10123_v38, 16 }
0x101e   : > { %v6186_v16 = vpop.xlane.xlu1 %6185 }
0x101f   : > { %8837 = vrcp.f32 %v6186_v16 }
0x1022   : > { %v6198_v24 = vpop.xlane.xlu1 %6197 }
0x1023   : > { %v6189_v46 = vpop.xlane.xlu0 %6188 }
0x1024   : > { %8839 = vrcp.f32 %v6189_v46 }
0x1027   : > { %v6192_v45 = vpop.xlane.xlu1 %6191  ;;  %v6201_v40 = vpop.xlane.xlu0 %6200 }
0x1028   : > { %8841 = vrcp.f32 %v6192_v45 }
0x102b   : > { %v6195_v15 = vpop.xlane.xlu0 %6194 }
0x102c   : > { %8843 = vrcp.f32 %v6195_v15  ;;  %v8838_v60 = vpop.eup %8837 }
0x102d   : > { %v6216_v32 = vmul.f32 %v8838_v60, %v10157_v19  ;;  %8845 = vrcp.f32 %v6201_v40 }
0x102e   : > { %8847 = vrcp.f32 %v6198_v24 }
0x1031   : > { %v8840_v52 = vpop.eup %8839 }
0x1032   : > { %v6217_v38 = vmul.f32 %v8840_v52, %v10163_v22 }
0x1034   : > { %v6224_v29 = vpack.c.bf16 %v6217_v38, %v6216_v32 }
0x1035   : > { %v8842_v33 = vpop.eup %8841 }
0x1036   : > { %v7208_v34 = vsel %vm2102_vm2, %v6224_v29, 0  ;;  %v6218_v6 = vmul.f32 %v8842_v33, %v10171_v0 }
0x1037   : > { %8571 = vmatpush3.bf16.xpose.msra.mxu1 %v7208_v34 }
0x1038   : > { %8582 = vmatprep.subr.bf16.mxu1 %v8926_v36 }
0x1039   : > { %v8844_v39 = vpop.eup %8843 }
0x103a   : > { %v6219_v47 = vmul.f32 %v8844_v39, %v8832_v61  ;;  %v8846_v23 = vpop.eup %8845 }
0x103b   : > { %v8848_v26 = vpop.eup %8847  ;;  %v6221_v3 = vmul.f32 %v8846_v23, %v10169_v18 }
0x103c   : > { %v6225_v10 = vpack.c.bf16 %v6219_v47, %v6218_v6  ;;  %v6220_v59 = vmul.f32 %v8848_v26, %v10161_v5 }
0x103e   : > { %v7255_v31 = vsel %vm2102_vm2, %v6225_v10, 0  ;;  %v6226_v43 = vpack.c.bf16 %v6221_v3, %v6220_v59 }
0x103f   : > { %8577 = vmatpush3.bf16.xpose.msra.mxu0 %v7255_v31  ;;  %v8761_v31 = vld [vmem:[%s10435_s5 + $0x38] sm:$0xff]  }
0x1040   : > { %8588 = vmatprep.subr.bf16.mxu0 %v8926_v36  ;;  %v7302_v41 = vsel %vm2102_vm2, %v6226_v43, 0 }
0x1060   : > { %v6204_v19 = vpop.xlane.xlu1 %6203 }
0x1061   : > { %8849 = vrcp.f32 %v6204_v19  ;;  %v8762_v19 = vld [vmem:[%s10435_s5 + $0x30] sm:$0xff]  }
0x1064   : > { %v6207_v22 = vpop.xlane.xlu0 %6206 }
0x1065   : > { %8851 = vrcp.f32 %v6207_v22 }
0x1066   : > { %v7068_v14 = vpop.trf.xlu1 }
0x1067   : > { %v7116_v42 = vcombine.low %v7004_v37, %v7068_v14 }
0x1069   : > { %v7123_v0 = vrot.slane %v7116_v42, %v9140_v58 }
0x106a   : > { %v7084_v61 = vpop.trf.xlu0 }
0x106b   : > { %v7132_v21 = vcombine.low %v7115_v44, %v7123_v0  ;;  %v7166_v51 = vcombine.low %v7020_v11, %v7084_v61 }
0x106d   : > { %v7139_v50 = vrot.slane %v7132_v21, %v9147_v4  ;;  %v7173_v63 = vrot.slane %v7166_v51, %v9140_v58 }
0x106e   : > { %v8850_v9 = vpop.eup %8849 }
0x106f   : > { %v7140_v35 = vcombine.low %v7131_v30, %v7139_v50  ;;  %v7141_v57 = vcombine.high %v7131_v30, %v7139_v50  ;;  %v7182_v20 = vcombine.low %v7165_v55, %v7173_v63  ;;  %v6222_v18 = vmul.f32 %v8850_v9, %v10198_v1 }
0x1071   : > { %v7189_v27 = vrot.slane %v7182_v20, %v9147_v4  ;;  %v7195_v37 = vshrl.u32 %v7140_v35, 16  ;;  %v7201_v11 = vshrl.u32 %v7141_v57, 16 }
0x1072   : > { %v8852_v17 = vpop.eup %8851 }
0x1073   : > { %v7190_v54 = vcombine.low %v7181_v53, %v7189_v27  ;;  %v7191_v12 = vcombine.high %v7181_v53, %v7189_v27  ;;  %v6223_v13 = vmul.f32 %v8852_v17, %v10202_v62 }
0x1075   : > { %v7194_v49 = vpack.i.b16 %v7190_v54, %v7140_v35  ;;  %v7196_v8 = vshrl.u32 %v7190_v54, 16  ;;  %v7200_v16 = vpack.i.b16 %v7191_v12, %v7141_v57  ;;  %v7202_v24 = vshrl.u32 %v7191_v12, 16 }
0x1076   : > { %v6227_v7 = vpack.c.bf16 %v6223_v13, %v6222_v18 }
0x1077   : > { %8573 = vmatmul.mubr.msk.bf16.vlgmr.msra.gmra.mxu1 %vm2102_vm2, %v7194_v49  ;;  %v7197_v5 = vpack.i.b16 %v7196_v8, %v7195_v37  ;;  %v7203_v25 = vpack.i.b16 %v7202_v24, %v7201_v11 }
0x1078   : > { %8583 = vmatpush3.bf16.xpose.msra.mxu1 %v7302_v41  ;;  %v7349_v46 = vsel %vm2102_vm2, %v6227_v7, 0  ;;  %8584 = vmatprep.mubr.msk.bf16.mxu1 %vm8933_vm1, %v8926_v36 }
0x1079   : > { %8579 = vmatmul.mubr.msk.bf16.vlgmr.msra.gmra.mxu0 %vm2102_vm2, %v7197_v5  ;;  %8594 = vmatprep.subr.bf16.mxu1 %v8926_v36 }
0x107a   : > { %8589 = vmatpush3.bf16.xpose.msra.mxu0 %v7349_v46  ;;  %8590 = vmatprep.mubr.msk.bf16.mxu0 %vm8933_vm1, %v8926_v36 }
0x107b   : > { %8606 = vmatprep.subr.bf16.mxu0 %v8926_v36 }
0x107f   : > { %8585 = vmatmul.mubr.msk.bf16.vlgmr.msra.gmra.mxu1 %vm2102_vm2, %v7200_v16 }
0x1080   : > { %8602 = vmatprep.mubr.msk.bf16.mxu1 %vm8933_vm1, %v8926_v36  ;;  %8595 = vmatpush3.bf16.msra.mxu1 %v8761_v31 }
0x1081   : > { %8591 = vmatmul.mubr.msk.bf16.vlgmr.msra.gmra.mxu0 %vm2102_vm2, %v7203_v25  ;;  %8596 = vmatprep.subr.bf16.mxu1 %v8926_v36 }
0x1082   : > { %8614 = vmatprep.mubr.msk.bf16.mxu0 %vm8933_vm1, %v8926_v36 }
0x1084   : > { %8597 = vmatpush3.bf16.msra.mxu1 %v8762_v19  ;;  %v8763_v19 = vld [vmem:[%s10435_s5 + $0x28] sm:$0xff]  }
0x1085   : > { %8598 = vmatprep.subr.bf16.mxu1 %v8926_v36 }
0x1088   : > { %8599 = vmatpush3.bf16.msra.mxu1 %v8763_v19 }
0x1089   : > { %8600 = vmatprep.subr.bf16.mxu1 %v8926_v36 }
0x1137   : > { %v7244_v1 = vpop.f32.mrf.mxu1 }
0x1138   : > { %7392 = vxpose.xlu1.b32.start [1/2] (short) (narrow) %v7244_v1, 16 }
0x1139   : > { %v8574_v62 = vpop.f32.mrf.mxu1  ;;  %v7291_v45 = vpop.f32.mrf.mxu0 }
0x113a   : > { %7424 = vxpose.xlu0.b32.start [1/2] (short) (narrow) %v7291_v45, 16 }
0x113b   : > { %v7247_v40 = vpop.f32.mrf.mxu1  ;;  %v8580_v15 = vpop.f32.mrf.mxu0 }
0x113c   : > { %7393 = vxpose.xlu1.b32.end [2/2] (short) (narrow) %v7247_v40, 16 }
0x113d   : > { %v8575_v60 = vpop.f32.mrf.mxu1  ;;  %v7294_v52 = vpop.f32.mrf.mxu0 }
0x113e   : > { %7425 = vxpose.xlu0.b32.end [2/2] (short) (narrow) %v7294_v52, 16 }
0x113f   : > { %v8581_v32 = vpop.f32.mrf.mxu0  ;;  %v7338_v38 = vpop.f32.mrf.mxu1 }
0x1141   : > { %v8586_v29 = vpop.f32.mrf.mxu1  ;;  %v7385_v34 = vpop.f32.mrf.mxu0 }
0x1142   : > { %7456 = vxpose.xlu0.b32.start [1/2] (short) (narrow) %v7338_v38, 16  ;;  %7488 = vxpose.xlu1.b32.start [1/2] (short) (narrow) %v7385_v34, 16 }
0x1143   : > { %v7341_v33 = vpop.f32.mrf.mxu1  ;;  %v8592_v39 = vpop.f32.mrf.mxu0 }
0x1145   : > { %v8587_v6 = vpop.f32.mrf.mxu1  ;;  %v7388_v47 = vpop.f32.mrf.mxu0 }
0x1146   : > { %7457 = vxpose.xlu0.b32.end [2/2] (short) (narrow) %v7341_v33, 16  ;;  %7489 = vxpose.xlu1.b32.end [2/2] (short) (narrow) %v7388_v47, 16 }
0x1147   : > { %v8593_v10 = vpop.f32.mrf.mxu0 }
0x11b4   : > { %v7408_v22 = vpop.trf.xlu1 }
0x11b6   : > { %v7440_v28 = vpop.trf.xlu0 }
0x11b8   : > { %v7409_v14 = vpop.trf.xlu1 }
0x11ba   : > { %v7441_v42 = vpop.trf.xlu0 }
0x11be   : > { %v7472_v44 = vpop.trf.xlu0  ;;  %v7504_v56 = vpop.trf.xlu1 }
0x11bf   : > { %v7520_v0 = vcombine.low %v7408_v22, %v7472_v44  ;;  %v7521_v61 = vcombine.high %v7408_v22, %v7472_v44  ;;  %v7536_v21 = vcombine.low %v7440_v28, %v7504_v56  ;;  %v7537_v51 = vcombine.high %v7440_v28, %v7504_v56 }
0x11c1   : > { %v7528_v23 = vrot.slane %v7520_v0, %v9140_v58  ;;  %v7535_v30 = vrot.slane %v7521_v61, %v9140_v58  ;;  %v7544_v55 = vrot.slane %v7536_v21, %v9140_v58  ;;  %v7551_v50 = vrot.slane %v7537_v51, %v9140_v58 }
0x11c2   : > { %v7473_v63 = vpop.trf.xlu0  ;;  %v7505_v26 = vpop.trf.xlu1 }
0x11c3   : > { %v7552_v35 = vcombine.low %v7528_v23, %v7544_v55  ;;  %v7553_v57 = vcombine.high %v7528_v23, %v7544_v55  ;;  %v7568_v20 = vcombine.low %v7535_v30, %v7551_v50  ;;  %v7569_v3 = vcombine.high %v7535_v30, %v7551_v50 }
0x11c4   : > { %v7588_v9 = vcombine.low %v7409_v14, %v7473_v63  ;;  %v7589_v53 = vcombine.high %v7409_v14, %v7473_v63  ;;  %v7604_v27 = vcombine.low %v7441_v42, %v7505_v26  ;;  %v7605_v59 = vcombine.high %v7441_v42, %v7505_v26  ;;  %v8764_v63 = vld [vmem:[%s10435_s5 + $0x20] sm:$0xff]  }
0x11c5   : > { %v7560_v17 = vrot.slane %v7552_v35, %v9147_v4  ;;  %v7567_v54 = vrot.slane %v7553_v57, %v9147_v4  ;;  %v7576_v12 = vrot.slane %v7568_v20, %v9147_v4  ;;  %v7583_v43 = vrot.slane %v7569_v3, %v9147_v4  ;;  %8601 = vmatpush3.bf16.msra.mxu1 %v8764_v63 }
0x11c6   : > { %v7596_v13 = vrot.slane %v7588_v9, %v9140_v58  ;;  %v7603_v37 = vrot.slane %v7589_v53, %v9140_v58  ;;  %v7612_v11 = vrot.slane %v7604_v27, %v9140_v58  ;;  %v7619_v18 = vrot.slane %v7605_v59, %v9140_v58  ;;  %8618 = vmatprep.subr.bf16.mxu1 %v8926_v36 }
0x11c7   : > { %v7656_v49 = vcombine.low %v7560_v17, %v7567_v54  ;;  %v8320_v8 = vcombine.high %v7560_v17, %v7567_v54  ;;  %v7672_v16 = vcombine.low %v7576_v12, %v7583_v43  ;;  %v8321_v24 = vcombine.high %v7576_v12, %v7583_v43 }
0x11c8   : > { %v7620_v7 = vcombine.low %v7596_v13, %v7612_v11  ;;  %v7621_v41 = vcombine.high %v7596_v13, %v7612_v11  ;;  %v7636_v5 = vcombine.low %v7603_v37, %v7619_v18  ;;  %v7637_v25 = vcombine.high %v7603_v37, %v7619_v18 }
0x11c9   : > { %v7663_v46 = vrot.slane %v7656_v49, %v9140_v58  ;;  %v7671_v1 = vrot.slane %v8320_v8, %v9140_v58  ;;  %v7679_v62 = vrot.slane %v7672_v16, %v9140_v58  ;;  %v7687_v45 = vrot.slane %v8321_v24, %v9140_v58 }
0x11ca   : > { %v7628_v40 = vrot.slane %v7620_v7, %v9147_v4  ;;  %v7635_v15 = vrot.slane %v7621_v41, %v9147_v4  ;;  %v7644_v60 = vrot.slane %v7636_v5, %v9147_v4  ;;  %v7651_v52 = vrot.slane %v7637_v25, %v9147_v4 }
0x11cb   : > { %v7689_v32 = vcombine.high %v7663_v46, %v7671_v1  ;;  %v7705_v38 = vcombine.high %v7679_v62, %v7687_v45  ;;  %v7688_v29 = vcombine.low %v7663_v46, %v7671_v1  ;;  %v7704_v34 = vcombine.low %v7679_v62, %v7687_v45 }
0x11cc   : > { %v7724_v33 = vcombine.low %v7628_v40, %v7635_v15  ;;  %v8322_v39 = vcombine.high %v7628_v40, %v7635_v15  ;;  %v7740_v6 = vcombine.low %v7644_v60, %v7651_v52  ;;  %v8323_v47 = vcombine.high %v7644_v60, %v7651_v52 }
0x11cd   : > { %v7696_v10 = vrot.slane %v7688_v29, %v9147_v4  ;;  %v7712_v31 = vrot.slane %v7704_v34, %v9147_v4  ;;  %v7703_v44 = vrot.slane %v7689_v32, %v9147_v4  ;;  %v7719_v56 = vrot.slane %v7705_v38, %v9147_v4  ;;  %v8767_v29 = vld [vmem:[%s10437_s7 + $0x28] sm:$0xff]   ;;  %v8768_v34 = vld [vmem:[%s10437_s7 + $0x20] sm:$0xff]  }
0x11ce   : > { %v7731_v22 = vrot.slane %v7724_v33, %v9140_v58  ;;  %v7739_v28 = vrot.slane %v8322_v39, %v9140_v58  ;;  %v7747_v14 = vrot.slane %v7740_v6, %v9140_v58  ;;  %v7755_v42 = vrot.slane %v8323_v47, %v9140_v58  ;;  %v8769_v33 = vld [vmem:[%s10438_s8 + $0x78] sm:$0xff]   ;;  %v8770_v39 = vld [vmem:[%s10438_s8 + $0x70] sm:$0xff]   ;;  %v8771_v6 = vld [vmem:[%s10438_s8 + $0x68] sm:$0xff]  }
0x11cf   : > { %v7720_v0 = vcombine.low %v7696_v10, %v7712_v31  ;;  %v7722_v26 = vcombine.low %v7703_v44, %v7719_v56  ;;  %v7721_v57 = vcombine.high %v7696_v10, %v7712_v31  ;;  %v8772_v47 = vld [vmem:[%s10438_s8 + $0x60] sm:$0xff]   ;;  %v8773_v10 = vld [vmem:[%s10438_s8 + $0x58] sm:$0xff]   ;;  %v8774_v31 = vld [vmem:[%s10438_s8 + $0x50] sm:$0xff]  }
0x11d0   : > { %v7757_v61 = vcombine.high %v7731_v22, %v7739_v28  ;;  %v7773_v21 = vcombine.high %v7747_v14, %v7755_v42  ;;  %v7756_v51 = vcombine.low %v7731_v22, %v7739_v28  ;;  %v7772_v23 = vcombine.low %v7747_v14, %v7755_v42 }
0x11d2   : > { %v7771_v30 = vrot.slane %v7757_v61, %v9147_v4  ;;  %v7787_v55 = vrot.slane %v7773_v21, %v9147_v4  ;;  %v7764_v50 = vrot.slane %v7756_v51, %v9147_v4  ;;  %v7780_v58 = vrot.slane %v7772_v23, %v9147_v4  ;;  %v8338_v21 = vld [vmem:[%s10436_s6 + $0x1] ss:$0 sm:$0xff] }
0x11d3   : > { %v7723_v4 = vcombine.high %v7703_v44, %v7719_v56 }
0x11d4   : > { %v7790_v35 = vcombine.low %v7771_v30, %v7787_v55  ;;  %v7789_v20 = vcombine.high %v7764_v50, %v7780_v58  ;;  %v7788_v3 = vcombine.low %v7764_v50, %v7780_v58  ;;  %v7791_v27 = vcombine.high %v7771_v30, %v7787_v55  ;;  %v8775_v50 = vld [vmem:[%s10438_s8 + $0x48] sm:$0xff]   ;;  %v8776_v58 = vld [vmem:[%s10438_s8 + $0x40] sm:$0xff]  }
0x11d6   : > { %v8711_v9 = vpack.i.bf16 %v7790_v35, %v7722_v26  ;;  %v8706_v53 = vpack.i.bf16 %v7789_v20, %v7721_v57  ;;  %v8716_v59 = vpack.i.bf16 %v7791_v27, %v7723_v4 }
0x11d8   : > { %8712 = vrot.lane.b32.xlu1 %v8711_v9, %s10455_s20  ;;  %8707 = vrot.lane.b32.xlu0 %v8706_v53, %s10456_s26  ;;  %s8383_s20 = sshll.u32 %s9016_s17, 8  ;;  %s363_s26 = scalar_lea.vmem [#allocation2], %s8233_s18 }
0x11d9   : > { %s10385_s12 = scalar_lea.hbm %s10440_s10, %s8383_s20  ;;  %s10390_s17 = scalar_lea.sflag [#allocation3], %s361_s25 }
0x11da   : > { %s8937_s18 = smov [#allocation2]  }
0x11db   : > { %s8867_s30 = sshll.u32 %s8937_s18, 4  ;;  %s8868_s30 = int_to_ptr.vmem [resolvable:$false] %s8867_s30 }
0x11dc   : > { %8717 = vrot.lane.b32.xlu1 %v8716_v59, %s10457_s27  ;;  %s8158_s27 = sshll.u32 %s363_s26, 4  ;;  %s8869_s21 = scalar_lea.vmem %s8868_s30, 512  ;;  %s10387_s27 = int_to_ptr.vmem [resolvable:$true] %s8158_s27 }
0x11dd   : > { %s8863_s29 = scalar_lea.vmem %s10387_s27, 256  ;;  %p8870_p0 = scmp.lt.s32.totalorder %s10387_s27, %s8868_s30 }
0x11de   : > { %p8864_p11 = scmp.ne.s32.totalorder %s10387_s27, %s8863_s29  ;;  %p8871_p1 = scmp.lt.s32.totalorder %s8869_s21, %s8863_s29 }
0x11e0   : > { %p8865_p12 = pnand %p8864_p11, %p9033_p5  ;;  %p8872_p2 = por %p8871_p1, %p8870_p0 }
0x11e2   : > { %p8866_p13 = pneg %p8865_p12 }
0x11e4   : > { %p8873_p3 = pnand %p8872_p2, %p8866_p13 }
0x124a   : > { %v8713_v17 = vpop.permute.xlu1 %8712  ;;  %v8708_v54 = vpop.permute.xlu0 %8707 }
0x124b   : > { %v8710_v12 = vunpack.i.h.bf16 %v8708_v54  ;;  %v8709_v43 = vunpack.i.l.bf16 %v8708_v54  ;;  %v8715_v13 = vunpack.i.h.bf16 %v8713_v17  ;;  %v8714_v37 = vunpack.i.l.bf16 %v8713_v17 }
0x124d   : > { %v7816_v11 = vsel %vm2102_vm2, %v7720_v0, %v8709_v43  ;;  %v7817_v18 = vsel %vm2102_vm2, %v7788_v3, %v8710_v12 }
0x124e   : > { %v8718_v49 = vpop.permute.xlu1 %8717  ;;  %v7818_v24 = vsel %vm3961_vm3, %v7816_v11, %v8714_v37  ;;  %v7819_v7 = vsel %vm3961_vm3, %v7817_v18, %v8715_v13 }
0x124f   : > { %v8720_v8 = vunpack.i.h.bf16 %v8718_v49  ;;  %v8719_v16 = vunpack.i.l.bf16 %v8718_v49 }
0x1251   : > { %v7820_v41 = vsel %vm3964_vm4, %v7818_v24, %v8719_v16  ;;  %v7821_v5 = vsel %vm3964_vm4, %v7819_v7, %v8720_v8  ;;  %v8376_v7 = vld [vmem:[%s10439_s9] ss:$0 sm:$0xff] }
0x1252   : > { %v7822_v25 = vpack.c.bf16 %v7821_v5, %v7820_v41 }
0x1254   : > { %8603 = vmatmul.mubr.msk.bf16.vlgmr.msra.gmra.mxu1 %vm403_vm0, %v7822_v25 }
0x1255   : > { %8634 = vmatprep.mubr.msk.bf16.mxu1 %vm8933_vm1, %v8926_v36  ;;  %8619 = vmatpush3.bf16.msra.mxu1 %v8769_v33 }
0x1256   : > { %8620 = vmatprep.subr.bf16.mxu1 %v8926_v36 }
0x1259   : > { %8621 = vmatpush3.bf16.msra.mxu1 %v8770_v39 }
0x125a   : > { %8622 = vmatprep.subr.bf16.mxu1 %v8926_v36 }
0x125d   : > { %8623 = vmatpush3.bf16.msra.mxu1 %v8771_v6 }
0x125e   : > { %8624 = vmatprep.subr.bf16.mxu1 %v8926_v36 }
0x1261   : > { %8625 = vmatpush3.bf16.msra.mxu1 %v8772_v47 }
0x1262   : > { %8626 = vmatprep.subr.bf16.mxu1 %v8926_v36 }
0x1265   : > { %8627 = vmatpush3.bf16.msra.mxu1 %v8773_v10 }
0x1266   : > { %8628 = vmatprep.subr.bf16.mxu1 %v8926_v36 }
0x1269   : > { %8629 = vmatpush3.bf16.msra.mxu1 %v8774_v31 }
0x126a   : > { %8630 = vmatprep.subr.bf16.mxu1 %v8926_v36 }
0x126d   : > { %8631 = vmatpush3.bf16.msra.mxu1 %v8775_v50 }
0x126e   : > { %8632 = vmatprep.subr.bf16.mxu1 %v8926_v36 }
0x1271   : > { %8633 = vmatpush3.bf16.msra.mxu1 %v8776_v58 }
0x1314   : > { %v7893_v46 = vpop.f32.mrf.mxu1 }
0x1315   : > { %v10309_v1 = vadd.f32 %v7893_v46, %v9773_v48  ;;  %v8765_v48 = vld [vmem:[%s10437_s7 + $0x38] sm:$0xff]  }
0x1316   : > { %v8604_v62 = vpop.f32.mrf.mxu1  ;;  %8607 = vmatpush3.bf16.msra.mxu0 %v8765_v48 }
0x1317   : > { %v7904_v45 = vmul.f32 %v10309_v1, %v10309_v1  ;;  %8608 = vmatprep.subr.bf16.mxu0 %v8926_v36 }
0x1318   : > { %v7896_v40 = vpop.f32.mrf.mxu1 }
0x1319   : > { %v10314_v15 = vadd.f32 %v7896_v40, %v9778_v2  ;;  %v7906_v60 = vsel %vm403_vm0, %v7904_v45, 0.0  ;;  %v8766_v2 = vld [vmem:[%s10437_s7 + $0x30] sm:$0xff]  }
0x131a   : > { %7907 = vadd.xlane.f32.xlu1 %v7906_v60  ;;  %v8605_v52 = vpop.f32.mrf.mxu1  ;;  %8609 = vmatpush3.bf16.msra.mxu0 %v8766_v2 }
0x131b   : > { %v7905_v32 = vmul.f32 %v10314_v15, %v10314_v15  ;;  %8610 = vmatprep.subr.bf16.mxu0 %v8926_v36 }
0x131d   : > { %v7909_v38 = vsel %vm403_vm0, %v7905_v32, 0.0 }
0x131e   : > { %7910 = vadd.xlane.f32.xlu0 %v7909_v38  ;;  %8611 = vmatpush3.bf16.msra.mxu0 %v8767_v29 }
0x131f   : > { %8612 = vmatprep.subr.bf16.mxu0 %v8926_v36 }
0x1322   : > { %8613 = vmatpush3.bf16.msra.mxu0 %v8768_v34 }
0x13a3   : > { %v7908_v19 = vpop.xlane.xlu1 %7907 }
0x13a4   : > { %v7912_v22 = vmul.f32 0.015625, %v7908_v19 }
0x13a6   : > { %v7914_v28 = vadd.f32 1e-06, %v7912_v22 }
0x13a7   : > { %v7911_v14 = vpop.xlane.xlu0 %7910 }
0x13a8   : > { %8853 = vrsqrt.f32 %v7914_v28  ;;  %v7913_v42 = vmul.f32 0.015625, %v7911_v14 }
0x13aa   : > { %v7915_v44 = vadd.f32 1e-06, %v7913_v42 }
0x13ac   : > { %8855 = vrsqrt.f32 %v7915_v44 }
0x13b5   : > { %v8854_v56 = vpop.eup %8853 }
0x13b6   : > { %v7918_v0 = vmul.f32 %v8854_v56, %v10309_v1 }
0x13b8   : > { %v7926_v23 = vmul.f32 %v8338_v21, %v7918_v0 }
0x13b9   : > { %v8856_v61 = vpop.eup %8855 }
0x13ba   : > { %v7919_v51 = vmul.f32 %v8856_v61, %v10314_v15 }
0x13bc   : > { %v7927_v30 = vmul.f32 %v8338_v21, %v7919_v51 }
0x13be   : > { %v7928_v55 = vpack.c.bf16 %v7927_v30, %v7926_v23 }
0x13c0   : > { %8615 = vmatmul.mubr.msk.bf16.vlgmr.msra.gmra.mxu0 %vm403_vm0, %v7928_v55 }
0x1480   : > { %v7999_v63 = vpop.f32.mrf.mxu0 }
0x1481   : > { %v8006_v57 = vmax.f32 %v7999_v63, 0.0 }
0x1482   : > { %v8616_v26 = vpop.f32.mrf.mxu0 }
0x1484   : > { %v8002_v35 = vpop.f32.mrf.mxu0 }
0x1485   : > { %v8007_v20 = vmax.f32 %v8002_v35, 0.0 }
0x1486   : > { %v8617_v3 = vpop.f32.mrf.mxu0 }
0x1487   : > { %v8008_v9 = vpack.c.bf16 %v8007_v20, %v8006_v57 }
0x1489   : > { %8635 = vmatmul.mubr.bf16.vlgmr.msra.gmra.mxu1 %v8008_v9 }
0x1549   : > { %v8108_v53 = vpop.f32.mrf.mxu1 }
0x154a   : > { %v8115_v27 = vadd.f32 %v8108_v53, %v10309_v1 }
0x154b   : > { %v8636_v4 = vpop.f32.mrf.mxu1 }
0x154c   : > { %v8118_v59 = vmul.f32 %v8115_v27, %v8115_v27 }
0x154d   : > { %v8111_v17 = vpop.f32.mrf.mxu1 }
0x154e   : > { %v8116_v36 = vadd.f32 %v8111_v17, %v10314_v15  ;;  %v8120_v54 = vsel %vm403_vm0, %v8118_v59, 0.0 }
0x154f   : > { %8121 = vadd.xlane.f32.xlu0 %v8120_v54  ;;  %v8637_v12 = vpop.f32.mrf.mxu1 }
0x1550   : > { %v8119_v43 = vmul.f32 %v8116_v36, %v8116_v36 }
0x1552   : > { %v8123_v13 = vsel %vm403_vm0, %v8119_v43, 0.0 }
0x1553   : > { %8124 = vadd.xlane.f32.xlu1 %v8123_v13 }
0x15d8   : > { %v8122_v37 = vpop.xlane.xlu0 %8121 }
0x15d9   : > { %v8126_v11 = vmul.f32 0.015625, %v8122_v37 }
0x15db   : > { %v8128_v18 = vadd.f32 1e-06, %v8126_v11 }
0x15dc   : > { %v8125_v49 = vpop.xlane.xlu1 %8124 }
0x15dd   : > { %8857 = vrsqrt.f32 %v8128_v18  ;;  %v8127_v8 = vmul.f32 0.015625, %v8125_v49 }
0x15df   : > { %v8129_v16 = vadd.f32 1e-06, %v8127_v8 }
0x15e1   : > { %8859 = vrsqrt.f32 %v8129_v16 }
0x15ea   : > { %v8858_v24 = vpop.eup %8857 }
0x15eb   : > { %v8132_v41 = vmul.f32 %v8858_v24, %v8115_v27 }
0x15ed   : > { %v8140_v5 = vmul.f32 %v8376_v7, %v8132_v41 }
0x15ee   : > { %v8860_v25 = vpop.eup %8859 }
0x15ef   : > { %v8133_v46 = vmul.f32 %v8860_v25, %v8116_v36  ;;  %8142 = vst.msk [vmem:[%s363_s26] sm:$0xff] %vm403_vm0, %v8140_v5 }
0x15f1   : > { %v8141_v1 = vmul.f32 %v8376_v7, %v8133_v46 }
0x15f3   : > { %8143 = vst.msk [vmem:[%s363_s26 + $0x8] sm:$0xff] %vm403_vm0, %v8141_v1 }
0x15f4   : > { %8876 = shalt.err (!%p8873_p3)
}
0x15f5   : > { %s8877_s25 = scalar_lea.hbm %s10385_s12, 256  ;;  %s8881_s11 = scalar_lea.hbm %s10440_s10, 512 }
0x15f6   : > { %p8878_p4 = scmp.ne.s32.totalorder %s10385_s12, %s8877_s25  ;;  %p8882_p9 = scmp.lt.s32.totalorder %s10385_s12, %s10440_s10 }
0x15f7   : > { %p8883_p10 = scmp.lt.s32.totalorder %s8881_s11, %s8877_s25 }
0x15f8   : > { %p8879_p7 = pnand %p8878_p4, %p9033_p5 }
0x15f9   : > { %p8884_p11 = por %p8883_p10, %p8882_p9 }
0x15fa   : > { %p8880_p8 = pneg %p8879_p7 }
0x15fc   : > { %p8885_p12 = pnand %p8884_p11, %p8880_p8 }
0x15fe   : > { %8888 = shalt.err (!%p8885_p12)
}
0x15ff   : > { %s8938_s29 = smov 128   ;;  %s8939_s30 = smov 8  }
0x1600   : > { %8638 = dma.vmem_to_hbm [thread:$0]  (%p9033_p5), %s10387_s27, 256, %s10385_s12, %s10390_s17, %s8938_s29, %s8938_s29, %s8939_s30  }
0x1601 PF: > { %p8644_p13 = scmp.ge.s32.totalorder %s8923_s16, 2  ;;  %s8173_s21 = sand.u32 1, %s8911_s13  }
0x1602   : > { %s8174_s25 = scalar_lea.sflag [#allocation3], %s8173_s21 }
0x1603   : > { %p8641_p0 = pnand %p8644_p13, %p9037_p6 }
0x1605   : > { %p8642_p1 = pneg %p8641_p0 }
0x1607   : > { %8906 = dma.done.wait (%p8642_p1), %s8174_s25, 256  }
0x1608   : > { %8908 = vsyncadd (%p8642_p1), %s8174_s25, 4294967040  ;;  %p20_p2 = scmp.ge.s32.totalorder %s9020_s19, 4   ;;  %s10458_s13 = smov %s8915_s14 }
0x1609   : > { %s10459_s14 = smov %s8919_s15  ;;  %s10460_s15 = smov %s9031_s22 }
0x160a   : > { %s10461_s16 = smov %s9020_s19  ;;  %22 = sbr.rel (!%p20_p2) target bundleno = 3 (0x3), region = 104 }
0x160f   :  { %8179 = vsyncpa [#allocation3], 1 }
0x1610   :  { %8181 = vsyncpa [#allocation3 + $0x1], 1 }

</bundles_post_ra>
